<compile_context>
chip_gen: v7x
topology: tpu7x:2x2x1
jax: 0.10.0
libtpu: 0.0.40
codegen_flags: <defaults>
</compile_context>

<pallas_src>
import functools

import jax
import jax.numpy as jnp
from jax.experimental import pallas as pl
from jax.experimental.pallas import tpu as pltpu

LN_EPS = 1e-5   # torch.nn.LayerNorm default eps
LANE = 128      # TPU lane width: last-dim padding target


def _round_up(v, m):
    return ((v + m - 1) // m) * m


# ------------------------------ kernel helpers ------------------------------
def _elu(x):
    # PyTorch F.elu, alpha=1.0. exp(min(x,0))-1 keeps the +branch finite and
    # uses the plain EUP exp (guaranteed Mosaic lowering).
    return jnp.where(x > 0, x, jnp.exp(jnp.minimum(x, 0.0)) - 1.0)


def _layernorm(h, gamma, beta):
    # One-pass variance: both reductions issue back-to-back from h, removing
    # the (h-mean)**2 elementwise pass between the two XLU reduces.
    m = jnp.mean(h, axis=-1, keepdims=True)
    m2 = jnp.mean(h * h, axis=-1, keepdims=True)
    var = jnp.maximum(m2 - m * m, 0.0)
    return (h - m) * jax.lax.rsqrt(var + LN_EPS) * gamma + beta


def _mm(a, w_ref, b):
    # MXU matmul in the weight dtype (bf16 default); f32 accumulation + bias.
    w = w_ref[...]
    return jnp.dot(a.astype(w.dtype), w, preferred_element_type=jnp.float32) + b


# ---------------------------------- kernel ----------------------------------
def vae_kernel(lat_pad,
               x_ref, eps_ref,
               w_e1, w_e2, w_head, w_d1, w_d2, w_out,
               vec_h,    # [12, H] f32: (bias, gamma, beta) x {enc1, enc2, dec1, dec2}
               b_head,   # [1, 2*Lp] f32: [b_mu | b_logvar]  (zero-padded)
               b_out,    # [1, Dp]   f32                     (zero-padded)
               recon_ref, head_ref):
    def row(i):                         # static Ref slice -> zero-cost [1, H] row
        return vec_h[i:i + 1, :]

    # ---------------- encode (dropout = identity in eval mode) ----------------
    h1 = _elu(_layernorm(_mm(x_ref[...], w_e1, row(0)), row(1), row(2)))
    h2 = _elu(_layernorm(_mm(h1, w_e2, row(3)), row(4), row(5))) + h1

    head = _mm(h2, w_head, b_head[...])           # [TB, 2*Lp] = [mu | logvar]
    mu = head[:, :lat_pad]                        # lane-aligned slices (Lp % 128 == 0)
    logvar = head[:, lat_pad:]

    # ---------------- reparameterize ----------------
    std = jnp.exp(0.5 * jnp.clip(logvar, -20.0, 2.0))
    z = mu + eps_ref[...].astype(jnp.float32) * std   # padded cols stay exactly 0

    # ---------------- decode ----------------
    d1 = _elu(_layernorm(_mm(z, w_d1, row(6)), row(7), row(8)))
    d2 = _elu(_layernorm(_mm(d1, w_d2, row(9)), row(10), row(11))) + d1

    recon_ref[...] = _mm(d2, w_out, b_out[...])   # [TB, Dp] lane-dense store
    head_ref[...] = head                          # raw (unclipped) mu / logvar


# ----------------------------- one-time weight prep -------------------------
def prepare_params(params, *, matmul_dtype=jnp.bfloat16):
    """Hoisted out of the per-forward path: bf16 cast, fused [mu|logvar] head,
    zero-padding of the small D / L dims to multiples of 128, and packing of
    the 12 H-sized bias/gamma/beta vectors into one [12, H] slab."""
    D, H = params["w_e1"].shape
    L = params["w_mu"].shape[1]
    Dp = _round_up(D, LANE)
    Lp = _round_up(L, LANE)

    def padc(a, n):  # pad columns (last dim) with zeros up to n
        return jnp.pad(a, ((0, 0), (0, n - a.shape[1])))

    def padr(a, n):  # pad rows (first dim) with zeros up to n
        return jnp.pad(a, ((0, n - a.shape[0]), (0, 0)))

    w_head = jnp.concatenate([padc(params["w_mu"], Lp), padc(params["w_lv"], Lp)], axis=1)
    b_head = jnp.concatenate([padc(params["b_mu"], Lp), padc(params["b_lv"], Lp)], axis=1)

    return {
        "w_e1": padr(params["w_e1"], Dp).astype(matmul_dtype),    # [Dp, H]
        "w_e2": params["w_e2"].astype(matmul_dtype),              # [H,  H]
        "w_head": w_head.astype(matmul_dtype),                    # [H,  2*Lp]
        "w_d1": padr(params["w_d1"], Lp).astype(matmul_dtype),    # [Lp, H]
        "w_d2": params["w_d2"].astype(matmul_dtype),              # [H,  H]
        "w_out": padc(params["w_out"], Dp).astype(matmul_dtype),  # [H,  Dp]
        "vec_h": jnp.concatenate([
            params["b_e1"], params["g_e1"], params["be_e1"],
            params["b_e2"], params["g_e2"], params["be_e2"],
            params["b_d1"], params["g_d1"], params["be_d1"],
            params["b_d2"], params["g_d2"], params["be_d2"],
        ], axis=0).astype(jnp.float32),                           # [12, H]
        "b_head": b_head.astype(jnp.float32),                     # [1, 2*Lp]
        "b_out": padc(params["b_out"], Dp).astype(jnp.float32),   # [1, Dp]
        "dims": (D, H, L, Dp, Lp),
        "matmul_dtype": matmul_dtype,
    }


# ---------------------------------- wrapper ----------------------------------
def _vmem_budget_bytes():
    """~75% of this chip's VMEM; conservative 48 MiB fallback (fits v7x 64 MiB/TC)."""
    try:
        info = pltpu.get_tpu_info()
        cap = int(getattr(info, "vmem_capacity_bytes", 0) or 0)
        if cap > 0:
            return (cap * 3) // 4
    except Exception:
        pass
    return 48 << 20


def vae_forward(x, eps, prepared, *, block_batch=256):
    D, H, L, Dp, Lp = prepared["dims"]
    B = x.shape[0]
    assert x.shape[1] == D and eps.shape[1] == L

    stream_dtype = prepared["matmul_dtype"]       # stream x / eps at matmul width
    weight_names = ("w_e1", "w_e2", "w_head", "w_d1", "w_d2", "w_out",
                    "vec_h", "b_head", "b_out")
    weights = tuple(prepared[n] for n in weight_names)
    weight_bytes = sum(int(a.size) * a.dtype.itemsize for a in weights)

    # --- batch tile from the VMEM budget: resident weights (2x, conservative),
    #     double-buffered streamed tiles, and the live [TB, *] intermediates ---
    budget = _vmem_budget_bytes()
    s_item = jnp.dtype(stream_dtype).itemsize
    stream_row = 2 * s_item * (Dp + Lp) + 2 * 4 * (Dp + 2 * Lp)     # in + out, double-buffered
    live_row = 4 * (6 * H + 4 * Lp + 2 * Dp)                        # h1,h2,d1,d2 + head/z/temps (f32)
    per_row = stream_row + live_row
    avail = max(budget - 2 * weight_bytes - (4 << 20), 2 << 20)
    tb = int(min(block_batch, max(8, avail // per_row), _round_up(B, 8)))
    if tb >= 256:
        tb = (tb // 256) * 256        # MXU-friendly on v6e/v7x (256-wide MXU)
    elif tb >= 128:
        tb = (tb // 128) * 128        # lane multiple (v5e MXU width)
    else:
        tb = max(8, (tb // 8) * 8)    # sublane multiple
    if pl.cdiv(B, tb) == 1 and B >= 16:
        tb = max(8, _round_up((B + 1) // 2, 8))   # >=2 blocks so v7x megacore splits
    TB = tb

    B_pad = pl.cdiv(B, TB) * TB
    x_p = jnp.pad(x.astype(stream_dtype), ((0, B_pad - B), (0, Dp - D)))
    eps_p = jnp.pad(eps.astype(stream_dtype), ((0, B_pad - B), (0, Lp - L)))
    grid = (B_pad // TB,)
    vmem_limit = int(budget)

    def run(single_buffer_weights):
        def resident(arr):
            if single_buffer_weights:   # constant-index weights need no double buffer
                return pl.BlockSpec(arr.shape, lambda i: (0, 0),
                                    pipeline_mode=pl.Buffered(1))
            return pl.BlockSpec(arr.shape, lambda i: (0, 0))

        in_specs = [
            pl.BlockSpec((TB, Dp), lambda i: (i, 0)),        # x   (pipelined)
            pl.BlockSpec((TB, Lp), lambda i: (i, 0)),        # eps (pipelined)
        ] + [resident(a) for a in weights]
        out_specs = (
            pl.BlockSpec((TB, Dp), lambda i: (i, 0)),        # recon       (lane-dense)
            pl.BlockSpec((TB, 2 * Lp), lambda i: (i, 0)),    # [mu|logvar] (lane-dense)
        )
        out_shape = (
            jax.ShapeDtypeStruct((B_pad, Dp), jnp.float32),
            jax.ShapeDtypeStruct((B_pad, 2 * Lp), jnp.float32),
        )
        return pl.pallas_call(
            functools.partial(vae_kernel, Lp),
            grid=grid,
            out_shape=out_shape,
            in_specs=in_specs,
            out_specs=out_specs,
            compiler_params=pltpu.CompilerParams(
                dimension_semantics=("parallel",),           # megacore on v7x
                vmem_limit_bytes=vmem_limit,
            ),
        )(x_p, eps_p, *weights)

    try:
        recon, head = run(True)       # single-buffered resident weights
    except Exception:                 # pl.Buffered(1)/pipeline_mode unsupported: fall back
        recon, head = run(False)

    return recon[:B, :D], head[:B, :L], head[:B, Lp:Lp + L]


# ------------------------- init + pure-JAX reference -------------------------
def init_params(key, input_dim, hidden_dim, latent_dim):
    """Kaiming-normal (fan_in, relu) init, zero biases, LN gamma=1 / beta=0 —
    matching VAEComponent._init_weights. Weights stored as [in, out]."""
    def kaiming(k, fan_in, fan_out):
        return jax.random.normal(k, (fan_in, fan_out), jnp.float32) * jnp.sqrt(2.0 / fan_in)

    keys = jax.random.split(key, 7)
    D, H, L = input_dim, hidden_dim, latent_dim

    def vec(n, value=0.0):
        return jnp.full((1, n), value, jnp.float32)

    return {
        "w_e1": kaiming(keys[0], D, H), "b_e1": vec(H), "g_e1": vec(H, 1.0), "be_e1": vec(H),
        "w_e2": kaiming(keys[1], H, H), "b_e2": vec(H), "g_e2": vec(H, 1.0), "be_e2": vec(H),
        "w_mu": kaiming(keys[2], H, L), "b_mu": vec(L),
        "w_lv": kaiming(keys[3], H, L), "b_lv": vec(L),
        "w_d1": kaiming(keys[4], L, H), "b_d1": vec(H), "g_d1": vec(H, 1.0), "be_d1": vec(H),
        "w_d2": kaiming(keys[5], H, H), "b_d2": vec(H), "g_d2": vec(H, 1.0), "be_d2": vec(H),
        "w_out": kaiming(keys[6], H, D), "b_out": vec(D),
    }


def reference_forward(x, eps, params):
    """Plain-JAX f32 forward mirroring the PyTorch module (eval mode)."""
    hi = jax.lax.Precision.HIGHEST

    def lin(h, w, b):
        return jnp.dot(h, w, precision=hi) + b

    def ln(h, g, b):
        m = jnp.mean(h, axis=-1, keepdims=True)
        v = jnp.mean((h - m) ** 2, axis=-1, keepdims=True)
        return (h - m) * jax.lax.rsqrt(v + LN_EPS) * g + b

    def elu(h):
        return jnp.where(h > 0, h, jnp.exp(jnp.minimum(h, 0.0)) - 1.0)

    p = params
    h1 = elu(ln(lin(x, p["w_e1"], p["b_e1"]), p["g_e1"], p["be_e1"]))
    h2 = elu(ln(lin(h1, p["w_e2"], p["b_e2"]), p["g_e2"], p["be_e2"])) + h1
    mu = lin(h2, p["w_mu"], p["b_mu"])
    logvar = lin(h2, p["w_lv"], p["b_lv"])
    std = jnp.exp(0.5 * jnp.clip(logvar, -20.0, 2.0))
    z = mu + eps * std
    d1 = elu(ln(lin(z, p["w_d1"], p["b_d1"]), p["g_d1"], p["be_d1"]))
    d2 = elu(ln(lin(d1, p["w_d2"], p["b_d2"]), p["g_d2"], p["be_d2"])) + d1
    return lin(d2, p["w_out"], p["b_out"]), mu, logvar


# ------------------------------------ demo -----------------------------------
if __name__ == "__main__":
    # Module-default hidden/latent sizes; small batch/input for the demo.
    batch, input_dim, hidden_dim, latent_dim = 64, 16, 128, 32

    key = jax.random.PRNGKey(0)
    k_x, k_eps, k_params = jax.random.split(key, 3)

    x = jax.random.normal(k_x, (batch, input_dim), jnp.float32)
    eps = jax.random.normal(k_eps, (batch, latent_dim), jnp.float32)  # randn_like(std)
    params = init_params(k_params, input_dim, hidden_dim, latent_dim)

    # Default perf path: bf16 resident weights + bf16-streamed activations.
    # block_batch=32 -> grid=(2,) to exercise the batch pipeline / megacore split.
    prep_bf16 = prepare_params(params, matmul_dtype=jnp.bfloat16)
    recon, mu, logvar = jax.block_until_ready(
        vae_forward(x, eps, prep_bf16, block_batch=32))

    # Correctness: exact-f32 kernel path vs pure-JAX f32 reference.
    r_ref, m_ref, lv_ref = reference_forward(x, eps, params)
    prep_f32 = prepare_params(params, matmul_dtype=jnp.float32)
    r32, m32, lv32 = jax.block_until_ready(
        vae_forward(x, eps, prep_f32, block_batch=32))
    assert jnp.allclose(r32, r_ref, rtol=2e-2, atol=2e-2)
    assert jnp.allclose(m32, m_ref, rtol=2e-2, atol=2e-2)
    assert jnp.allclose(lv32, lv_ref, rtol=2e-2, atol=2e-2)

    # Sanity on the default bf16 path.
    assert recon.shape == (batch, input_dim)
    assert mu.shape == (batch, latent_dim) and logvar.shape == (batch, latent_dim)
    assert bool(jnp.all(jnp.isfinite(recon)))
    assert bool(jnp.all(jnp.isfinite(mu))) and bool(jnp.all(jnp.isfinite(logvar)))
    assert jnp.allclose(recon, r_ref, rtol=0.5, atol=0.5)

    print("KERNEL_OK")
</pallas_src>

<mosaic_0001>
module attributes {stable_mosaic.version = 11 : i64} {
  func.func @vae_kernel(%arg0: i32, %arg1: memref<32x128xbf16, #tpu.memory_space<vmem>>, %arg2: memref<32x128xbf16, #tpu.memory_space<vmem>>, %arg3: memref<128x128xbf16, #tpu.memory_space<vmem>>, %arg4: memref<128x128xbf16, #tpu.memory_space<vmem>>, %arg5: memref<128x256xbf16, #tpu.memory_space<vmem>>, %arg6: memref<128x128xbf16, #tpu.memory_space<vmem>>, %arg7: memref<128x128xbf16, #tpu.memory_space<vmem>>, %arg8: memref<128x128xbf16, #tpu.memory_space<vmem>>, %arg9: memref<12x128xf32, #tpu.memory_space<vmem>>, %arg10: memref<1x256xf32, #tpu.memory_space<vmem>>, %arg11: memref<1x128xf32, #tpu.memory_space<vmem>>, %arg12: memref<32x128xf32, #tpu.memory_space<vmem>>, %arg13: memref<32x256xf32, #tpu.memory_space<vmem>>) attributes {dimension_semantics = [#tpu.dimension_semantics<parallel>], iteration_bounds = array<i64: 2>, scalar_prefetch = 0 : i64, scratch_operands = 0 : i64, tpu.core_type = #tpu.core_type<tc>, window_params = [{transform_indices = @transform_0, window_bounds = array<i64: 32, 128>}, {transform_indices = @transform_1, window_bounds = array<i64: 32, 128>}, {pipeline_mode = #tpu.pipeline_mode<synchronous>, transform_indices = @transform_2, window_bounds = array<i64: 128, 128>}, {pipeline_mode = #tpu.pipeline_mode<synchronous>, transform_indices = @transform_3, window_bounds = array<i64: 128, 128>}, {pipeline_mode = #tpu.pipeline_mode<synchronous>, transform_indices = @transform_4, window_bounds = array<i64: 128, 256>}, {pipeline_mode = #tpu.pipeline_mode<synchronous>, transform_indices = @transform_5, window_bounds = array<i64: 128, 128>}, {pipeline_mode = #tpu.pipeline_mode<synchronous>, transform_indices = @transform_6, window_bounds = array<i64: 128, 128>}, {pipeline_mode = #tpu.pipeline_mode<synchronous>, transform_indices = @transform_7, window_bounds = array<i64: 128, 128>}, {pipeline_mode = #tpu.pipeline_mode<synchronous>, transform_indices = @transform_8, window_bounds = array<i64: 12, 128>}, {pipeline_mode = #tpu.pipeline_mode<synchronous>, transform_indices = @transform_9, window_bounds = array<i64: 1, 256>}, {pipeline_mode = #tpu.pipeline_mode<synchronous>, transform_indices = @transform_10, window_bounds = array<i64: 1, 128>}, {transform_indices = @transform_11, window_bounds = array<i64: 32, 128>}, {transform_indices = @transform_12, window_bounds = array<i64: 32, 256>}]} {
    %c0 = arith.constant 0 : index
    %c0_0 = arith.constant 0 : index
    %0 = vector.load %arg1[%c0, %c0_0] : memref<32x128xbf16, #tpu.memory_space<vmem>>, vector<32x128xbf16>
    %c0_1 = arith.constant 0 : index
    %c0_2 = arith.constant 0 : index
    %1 = vector.load %arg9[%c0_1, %c0_2] : memref<12x128xf32, #tpu.memory_space<vmem>>, vector<1x128xf32>
    %c0_3 = arith.constant 0 : index
    %c0_4 = arith.constant 0 : index
    %2 = vector.load %arg3[%c0_3, %c0_4] : memref<128x128xbf16, #tpu.memory_space<vmem>>, vector<128x128xbf16>
    %cst = arith.constant dense<0.000000e+00> : vector<32x128xf32>
    %3 = tpu.matmul %0, %2, %cst {dimension_numbers = #tpu.dot_dimension_numbers<[1], [0], [0], [1], [0, 0, 1, 1], [], []>} : vector<32x128xbf16>, vector<128x128xbf16>, vector<32x128xf32> -> vector<32x128xf32>
    %4 = vector.broadcast %1 : vector<1x128xf32> to vector<32x128xf32>
    %5 = arith.addf %3, %4 : vector<32x128xf32>
    %c1 = arith.constant 1 : index
    %c0_5 = arith.constant 0 : index
    %6 = vector.load %arg9[%c1, %c0_5] : memref<12x128xf32, #tpu.memory_space<vmem>>, vector<1x128xf32>
    %c2 = arith.constant 2 : index
    %c0_6 = arith.constant 0 : index
    %7 = vector.load %arg9[%c2, %c0_6] : memref<12x128xf32, #tpu.memory_space<vmem>>, vector<1x128xf32>
    %cst_7 = arith.constant dense<0.000000e+00> : vector<32xf32>
    %8 = vector.multi_reduction <add>, %5, %cst_7 [1] : vector<32x128xf32> to vector<32xf32>
    %9 = vector.shape_cast %8 : vector<32xf32> to vector<32x1xf32>
    %cst_8 = arith.constant 1.280000e+02 : f32
    %10 = vector.broadcast %cst_8 : f32 to vector<32x1xf32>
    %11 = arith.divf %9, %10 : vector<32x1xf32>
    %12 = arith.mulf %5, %5 : vector<32x128xf32>
    %cst_9 = arith.constant dense<0.000000e+00> : vector<32xf32>
    %13 = vector.multi_reduction <add>, %12, %cst_9 [1] : vector<32x128xf32> to vector<32xf32>
    %14 = vector.shape_cast %13 : vector<32xf32> to vector<32x1xf32>
    %cst_10 = arith.constant 1.280000e+02 : f32
    %15 = vector.broadcast %cst_10 : f32 to vector<32x1xf32>
    %16 = arith.divf %14, %15 : vector<32x1xf32>
    %17 = arith.mulf %11, %11 : vector<32x1xf32>
    %18 = arith.subf %16, %17 : vector<32x1xf32>
    %cst_11 = arith.constant 0.000000e+00 : f32
    %19 = vector.broadcast %cst_11 : f32 to vector<32x1xf32>
    %20 = arith.maximumf %18, %19 : vector<32x1xf32>
    %21 = vector.broadcast %11 : vector<32x1xf32> to vector<32x128xf32>
    %22 = arith.subf %5, %21 : vector<32x128xf32>
    %cst_12 = arith.constant 9.99999974E-6 : f32
    %23 = vector.broadcast %cst_12 : f32 to vector<32x1xf32>
    %24 = arith.addf %20, %23 : vector<32x1xf32>
    %25 = math.rsqrt %24 : vector<32x1xf32>
    %26 = vector.broadcast %25 : vector<32x1xf32> to vector<32x128xf32>
    %27 = arith.mulf %22, %26 : vector<32x128xf32>
    %28 = vector.broadcast %6 : vector<1x128xf32> to vector<32x128xf32>
    %29 = arith.mulf %27, %28 : vector<32x128xf32>
    %30 = vector.broadcast %7 : vector<1x128xf32> to vector<32x128xf32>
    %31 = arith.addf %29, %30 : vector<32x128xf32>
    %cst_13 = arith.constant 0.000000e+00 : f32
    %32 = vector.broadcast %cst_13 : f32 to vector<32x128xf32>
    %33 = arith.cmpf ogt, %31, %32 : vector<32x128xf32>
    %cst_14 = arith.constant 0.000000e+00 : f32
    %34 = vector.broadcast %cst_14 : f32 to vector<32x128xf32>
    %35 = arith.minimumf %31, %34 : vector<32x128xf32>
    %36 = math.exp %35 : vector<32x128xf32>
    %cst_15 = arith.constant 1.000000e+00 : f32
    %37 = vector.broadcast %cst_15 : f32 to vector<32x128xf32>
    %38 = arith.subf %36, %37 : vector<32x128xf32>
    %39 = arith.select %33, %31, %38 : vector<32x128xi1>, vector<32x128xf32>
    %c3 = arith.constant 3 : index
    %c0_16 = arith.constant 0 : index
    %40 = vector.load %arg9[%c3, %c0_16] : memref<12x128xf32, #tpu.memory_space<vmem>>, vector<1x128xf32>
    %c0_17 = arith.constant 0 : index
    %c0_18 = arith.constant 0 : index
    %41 = vector.load %arg4[%c0_17, %c0_18] : memref<128x128xbf16, #tpu.memory_space<vmem>>, vector<128x128xbf16>
    %42 = arith.truncf %39 : vector<32x128xf32> to vector<32x128xbf16>
    %cst_19 = arith.constant dense<0.000000e+00> : vector<32x128xf32>
    %43 = tpu.matmul %42, %41, %cst_19 {dimension_numbers = #tpu.dot_dimension_numbers<[1], [0], [0], [1], [0, 0, 1, 1], [], []>} : vector<32x128xbf16>, vector<128x128xbf16>, vector<32x128xf32> -> vector<32x128xf32>
    %44 = vector.broadcast %40 : vector<1x128xf32> to vector<32x128xf32>
    %45 = arith.addf %43, %44 : vector<32x128xf32>
    %c4 = arith.constant 4 : index
    %c0_20 = arith.constant 0 : index
    %46 = vector.load %arg9[%c4, %c0_20] : memref<12x128xf32, #tpu.memory_space<vmem>>, vector<1x128xf32>
    %c5 = arith.constant 5 : index
    %c0_21 = arith.constant 0 : index
    %47 = vector.load %arg9[%c5, %c0_21] : memref<12x128xf32, #tpu.memory_space<vmem>>, vector<1x128xf32>
    %cst_22 = arith.constant dense<0.000000e+00> : vector<32xf32>
    %48 = vector.multi_reduction <add>, %45, %cst_22 [1] : vector<32x128xf32> to vector<32xf32>
    %49 = vector.shape_cast %48 : vector<32xf32> to vector<32x1xf32>
    %cst_23 = arith.constant 1.280000e+02 : f32
    %50 = vector.broadcast %cst_23 : f32 to vector<32x1xf32>
    %51 = arith.divf %49, %50 : vector<32x1xf32>
    %52 = arith.mulf %45, %45 : vector<32x128xf32>
    %cst_24 = arith.constant dense<0.000000e+00> : vector<32xf32>
    %53 = vector.multi_reduction <add>, %52, %cst_24 [1] : vector<32x128xf32> to vector<32xf32>
    %54 = vector.shape_cast %53 : vector<32xf32> to vector<32x1xf32>
    %cst_25 = arith.constant 1.280000e+02 : f32
    %55 = vector.broadcast %cst_25 : f32 to vector<32x1xf32>
    %56 = arith.divf %54, %55 : vector<32x1xf32>
    %57 = arith.mulf %51, %51 : vector<32x1xf32>
    %58 = arith.subf %56, %57 : vector<32x1xf32>
    %cst_26 = arith.constant 0.000000e+00 : f32
    %59 = vector.broadcast %cst_26 : f32 to vector<32x1xf32>
    %60 = arith.maximumf %58, %59 : vector<32x1xf32>
    %61 = vector.broadcast %51 : vector<32x1xf32> to vector<32x128xf32>
    %62 = arith.subf %45, %61 : vector<32x128xf32>
    %cst_27 = arith.constant 9.99999974E-6 : f32
    %63 = vector.broadcast %cst_27 : f32 to vector<32x1xf32>
    %64 = arith.addf %60, %63 : vector<32x1xf32>
    %65 = math.rsqrt %64 : vector<32x1xf32>
    %66 = vector.broadcast %65 : vector<32x1xf32> to vector<32x128xf32>
    %67 = arith.mulf %62, %66 : vector<32x128xf32>
    %68 = vector.broadcast %46 : vector<1x128xf32> to vector<32x128xf32>
    %69 = arith.mulf %67, %68 : vector<32x128xf32>
    %70 = vector.broadcast %47 : vector<1x128xf32> to vector<32x128xf32>
    %71 = arith.addf %69, %70 : vector<32x128xf32>
    %cst_28 = arith.constant 0.000000e+00 : f32
    %72 = vector.broadcast %cst_28 : f32 to vector<32x128xf32>
    %73 = arith.cmpf ogt, %71, %72 : vector<32x128xf32>
    %cst_29 = arith.constant 0.000000e+00 : f32
    %74 = vector.broadcast %cst_29 : f32 to vector<32x128xf32>
    %75 = arith.minimumf %71, %74 : vector<32x128xf32>
    %76 = math.exp %75 : vector<32x128xf32>
    %cst_30 = arith.constant 1.000000e+00 : f32
    %77 = vector.broadcast %cst_30 : f32 to vector<32x128xf32>
    %78 = arith.subf %76, %77 : vector<32x128xf32>
    %79 = arith.select %73, %71, %78 : vector<32x128xi1>, vector<32x128xf32>
    %80 = arith.addf %79, %39 : vector<32x128xf32>
    %c0_31 = arith.constant 0 : index
    %c0_32 = arith.constant 0 : index
    %81 = vector.load %arg10[%c0_31, %c0_32] : memref<1x256xf32, #tpu.memory_space<vmem>>, vector<1x256xf32>
    %c0_33 = arith.constant 0 : index
    %c0_34 = arith.constant 0 : index
    %82 = vector.load %arg5[%c0_33, %c0_34] : memref<128x256xbf16, #tpu.memory_space<vmem>>, vector<128x256xbf16>
    %83 = arith.truncf %80 : vector<32x128xf32> to vector<32x128xbf16>
    %cst_35 = arith.constant dense<0.000000e+00> : vector<32x256xf32>
    %84 = tpu.matmul %83, %82, %cst_35 {dimension_numbers = #tpu.dot_dimension_numbers<[1], [0], [0], [1], [0, 0, 1, 1], [], []>} : vector<32x128xbf16>, vector<128x256xbf16>, vector<32x256xf32> -> vector<32x256xf32>
    %85 = vector.broadcast %81 : vector<1x256xf32> to vector<32x256xf32>
    %86 = arith.addf %84, %85 : vector<32x256xf32>
    %87 = vector.extract_strided_slice %86 {offsets = [0, 0], sizes = [32, 128], strides = [1, 1]} : vector<32x256xf32> to vector<32x128xf32>
    %88 = vector.extract_strided_slice %86 {offsets = [0, 128], sizes = [32, 128], strides = [1, 1]} : vector<32x256xf32> to vector<32x128xf32>
    %cst_36 = arith.constant -2.000000e+01 : f32
    %cst_37 = arith.constant 2.000000e+00 : f32
    %89 = vector.broadcast %cst_36 : f32 to vector<32x128xf32>
    %90 = arith.maximumf %89, %88 : vector<32x128xf32>
    %91 = vector.broadcast %cst_37 : f32 to vector<32x128xf32>
    %92 = arith.minimumf %91, %90 : vector<32x128xf32>
    %cst_38 = arith.constant 5.000000e-01 : f32
    %93 = vector.broadcast %cst_38 : f32 to vector<32x128xf32>
    %94 = arith.mulf %93, %92 : vector<32x128xf32>
    %95 = math.exp %94 : vector<32x128xf32>
    %c0_39 = arith.constant 0 : index
    %c0_40 = arith.constant 0 : index
    %96 = vector.load %arg2[%c0_39, %c0_40] : memref<32x128xbf16, #tpu.memory_space<vmem>>, vector<32x128xbf16>
    %97 = arith.extf %96 : vector<32x128xbf16> to vector<32x128xf32>
    %98 = arith.mulf %97, %95 : vector<32x128xf32>
    %99 = arith.addf %87, %98 : vector<32x128xf32>
    %c6 = arith.constant 6 : index
    %c0_41 = arith.constant 0 : index
    %100 = vector.load %arg9[%c6, %c0_41] : memref<12x128xf32, #tpu.memory_space<vmem>>, vector<1x128xf32>
    %c0_42 = arith.constant 0 : index
    %c0_43 = arith.constant 0 : index
    %101 = vector.load %arg6[%c0_42, %c0_43] : memref<128x128xbf16, #tpu.memory_space<vmem>>, vector<128x128xbf16>
    %102 = arith.truncf %99 : vector<32x128xf32> to vector<32x128xbf16>
    %cst_44 = arith.constant dense<0.000000e+00> : vector<32x128xf32>
    %103 = tpu.matmul %102, %101, %cst_44 {dimension_numbers = #tpu.dot_dimension_numbers<[1], [0], [0], [1], [0, 0, 1, 1], [], []>} : vector<32x128xbf16>, vector<128x128xbf16>, vector<32x128xf32> -> vector<32x128xf32>
    %104 = vector.broadcast %100 : vector<1x128xf32> to vector<32x128xf32>
    %105 = arith.addf %103, %104 : vector<32x128xf32>
    %c7 = arith.constant 7 : index
    %c0_45 = arith.constant 0 : index
    %106 = vector.load %arg9[%c7, %c0_45] : memref<12x128xf32, #tpu.memory_space<vmem>>, vector<1x128xf32>
    %c8 = arith.constant 8 : index
    %c0_46 = arith.constant 0 : index
    %107 = vector.load %arg9[%c8, %c0_46] : memref<12x128xf32, #tpu.memory_space<vmem>>, vector<1x128xf32>
    %cst_47 = arith.constant dense<0.000000e+00> : vector<32xf32>
    %108 = vector.multi_reduction <add>, %105, %cst_47 [1] : vector<32x128xf32> to vector<32xf32>
    %109 = vector.shape_cast %108 : vector<32xf32> to vector<32x1xf32>
    %cst_48 = arith.constant 1.280000e+02 : f32
    %110 = vector.broadcast %cst_48 : f32 to vector<32x1xf32>
    %111 = arith.divf %109, %110 : vector<32x1xf32>
    %112 = arith.mulf %105, %105 : vector<32x128xf32>
    %cst_49 = arith.constant dense<0.000000e+00> : vector<32xf32>
    %113 = vector.multi_reduction <add>, %112, %cst_49 [1] : vector<32x128xf32> to vector<32xf32>
    %114 = vector.shape_cast %113 : vector<32xf32> to vector<32x1xf32>
    %cst_50 = arith.constant 1.280000e+02 : f32
    %115 = vector.broadcast %cst_50 : f32 to vector<32x1xf32>
    %116 = arith.divf %114, %115 : vector<32x1xf32>
    %117 = arith.mulf %111, %111 : vector<32x1xf32>
    %118 = arith.subf %116, %117 : vector<32x1xf32>
    %cst_51 = arith.constant 0.000000e+00 : f32
    %119 = vector.broadcast %cst_51 : f32 to vector<32x1xf32>
    %120 = arith.maximumf %118, %119 : vector<32x1xf32>
    %121 = vector.broadcast %111 : vector<32x1xf32> to vector<32x128xf32>
    %122 = arith.subf %105, %121 : vector<32x128xf32>
    %cst_52 = arith.constant 9.99999974E-6 : f32
    %123 = vector.broadcast %cst_52 : f32 to vector<32x1xf32>
    %124 = arith.addf %120, %123 : vector<32x1xf32>
    %125 = math.rsqrt %124 : vector<32x1xf32>
    %126 = vector.broadcast %125 : vector<32x1xf32> to vector<32x128xf32>
    %127 = arith.mulf %122, %126 : vector<32x128xf32>
    %128 = vector.broadcast %106 : vector<1x128xf32> to vector<32x128xf32>
    %129 = arith.mulf %127, %128 : vector<32x128xf32>
    %130 = vector.broadcast %107 : vector<1x128xf32> to vector<32x128xf32>
    %131 = arith.addf %129, %130 : vector<32x128xf32>
    %cst_53 = arith.constant 0.000000e+00 : f32
    %132 = vector.broadcast %cst_53 : f32 to vector<32x128xf32>
    %133 = arith.cmpf ogt, %131, %132 : vector<32x128xf32>
    %cst_54 = arith.constant 0.000000e+00 : f32
    %134 = vector.broadcast %cst_54 : f32 to vector<32x128xf32>
    %135 = arith.minimumf %131, %134 : vector<32x128xf32>
    %136 = math.exp %135 : vector<32x128xf32>
    %cst_55 = arith.constant 1.000000e+00 : f32
    %137 = vector.broadcast %cst_55 : f32 to vector<32x128xf32>
    %138 = arith.subf %136, %137 : vector<32x128xf32>
    %139 = arith.select %133, %131, %138 : vector<32x128xi1>, vector<32x128xf32>
    %c9 = arith.constant 9 : index
    %c0_56 = arith.constant 0 : index
    %140 = vector.load %arg9[%c9, %c0_56] : memref<12x128xf32, #tpu.memory_space<vmem>>, vector<1x128xf32>
    %c0_57 = arith.constant 0 : index
    %c0_58 = arith.constant 0 : index
    %141 = vector.load %arg7[%c0_57, %c0_58] : memref<128x128xbf16, #tpu.memory_space<vmem>>, vector<128x128xbf16>
    %142 = arith.truncf %139 : vector<32x128xf32> to vector<32x128xbf16>
    %cst_59 = arith.constant dense<0.000000e+00> : vector<32x128xf32>
    %143 = tpu.matmul %142, %141, %cst_59 {dimension_numbers = #tpu.dot_dimension_numbers<[1], [0], [0], [1], [0, 0, 1, 1], [], []>} : vector<32x128xbf16>, vector<128x128xbf16>, vector<32x128xf32> -> vector<32x128xf32>
    %144 = vector.broadcast %140 : vector<1x128xf32> to vector<32x128xf32>
    %145 = arith.addf %143, %144 : vector<32x128xf32>
    %c10 = arith.constant 10 : index
    %c0_60 = arith.constant 0 : index
    %146 = vector.load %arg9[%c10, %c0_60] : memref<12x128xf32, #tpu.memory_space<vmem>>, vector<1x128xf32>
    %c11 = arith.constant 11 : index
    %c0_61 = arith.constant 0 : index
    %147 = vector.load %arg9[%c11, %c0_61] : memref<12x128xf32, #tpu.memory_space<vmem>>, vector<1x128xf32>
    %cst_62 = arith.constant dense<0.000000e+00> : vector<32xf32>
    %148 = vector.multi_reduction <add>, %145, %cst_62 [1] : vector<32x128xf32> to vector<32xf32>
    %149 = vector.shape_cast %148 : vector<32xf32> to vector<32x1xf32>
    %cst_63 = arith.constant 1.280000e+02 : f32
    %150 = vector.broadcast %cst_63 : f32 to vector<32x1xf32>
    %151 = arith.divf %149, %150 : vector<32x1xf32>
    %152 = arith.mulf %145, %145 : vector<32x128xf32>
    %cst_64 = arith.constant dense<0.000000e+00> : vector<32xf32>
    %153 = vector.multi_reduction <add>, %152, %cst_64 [1] : vector<32x128xf32> to vector<32xf32>
    %154 = vector.shape_cast %153 : vector<32xf32> to vector<32x1xf32>
    %cst_65 = arith.constant 1.280000e+02 : f32
    %155 = vector.broadcast %cst_65 : f32 to vector<32x1xf32>
    %156 = arith.divf %154, %155 : vector<32x1xf32>
    %157 = arith.mulf %151, %151 : vector<32x1xf32>
    %158 = arith.subf %156, %157 : vector<32x1xf32>
    %cst_66 = arith.constant 0.000000e+00 : f32
    %159 = vector.broadcast %cst_66 : f32 to vector<32x1xf32>
    %160 = arith.maximumf %158, %159 : vector<32x1xf32>
    %161 = vector.broadcast %151 : vector<32x1xf32> to vector<32x128xf32>
    %162 = arith.subf %145, %161 : vector<32x128xf32>
    %cst_67 = arith.constant 9.99999974E-6 : f32
    %163 = vector.broadcast %cst_67 : f32 to vector<32x1xf32>
    %164 = arith.addf %160, %163 : vector<32x1xf32>
    %165 = math.rsqrt %164 : vector<32x1xf32>
    %166 = vector.broadcast %165 : vector<32x1xf32> to vector<32x128xf32>
    %167 = arith.mulf %162, %166 : vector<32x128xf32>
    %168 = vector.broadcast %146 : vector<1x128xf32> to vector<32x128xf32>
    %169 = arith.mulf %167, %168 : vector<32x128xf32>
    %170 = vector.broadcast %147 : vector<1x128xf32> to vector<32x128xf32>
    %171 = arith.addf %169, %170 : vector<32x128xf32>
    %cst_68 = arith.constant 0.000000e+00 : f32
    %172 = vector.broadcast %cst_68 : f32 to vector<32x128xf32>
    %173 = arith.cmpf ogt, %171, %172 : vector<32x128xf32>
    %cst_69 = arith.constant 0.000000e+00 : f32
    %174 = vector.broadcast %cst_69 : f32 to vector<32x128xf32>
    %175 = arith.minimumf %171, %174 : vector<32x128xf32>
    %176 = math.exp %175 : vector<32x128xf32>
    %cst_70 = arith.constant 1.000000e+00 : f32
    %177 = vector.broadcast %cst_70 : f32 to vector<32x128xf32>
    %178 = arith.subf %176, %177 : vector<32x128xf32>
    %179 = arith.select %173, %171, %178 : vector<32x128xi1>, vector<32x128xf32>
    %180 = arith.addf %179, %139 : vector<32x128xf32>
    %c0_71 = arith.constant 0 : index
    %c0_72 = arith.constant 0 : index
    %181 = vector.load %arg11[%c0_71, %c0_72] : memref<1x128xf32, #tpu.memory_space<vmem>>, vector<1x128xf32>
    %c0_73 = arith.constant 0 : index
    %c0_74 = arith.constant 0 : index
    %182 = vector.load %arg8[%c0_73, %c0_74] : memref<128x128xbf16, #tpu.memory_space<vmem>>, vector<128x128xbf16>
    %183 = arith.truncf %180 : vector<32x128xf32> to vector<32x128xbf16>
    %cst_75 = arith.constant dense<0.000000e+00> : vector<32x128xf32>
    %184 = tpu.matmul %183, %182, %cst_75 {dimension_numbers = #tpu.dot_dimension_numbers<[1], [0], [0], [1], [0, 0, 1, 1], [], []>} : vector<32x128xbf16>, vector<128x128xbf16>, vector<32x128xf32> -> vector<32x128xf32>
    %185 = vector.broadcast %181 : vector<1x128xf32> to vector<32x128xf32>
    %186 = arith.addf %184, %185 : vector<32x128xf32>
    %c0_76 = arith.constant 0 : index
    %c0_77 = arith.constant 0 : index
    %187 = vector.load %arg12[%c0_76, %c0_77] : memref<32x128xf32, #tpu.memory_space<vmem>>, vector<32x128xf32>
    tpu.vector_store %arg12[%c0_76, %c0_77], %186 {strides = array<i32>} : memref<32x128xf32, #tpu.memory_space<vmem>>, vector<32x128xf32>,
    %c0_78 = arith.constant 0 : index
    %c0_79 = arith.constant 0 : index
    %188 = vector.load %arg13[%c0_78, %c0_79] : memref<32x256xf32, #tpu.memory_space<vmem>>, vector<32x256xf32>
    tpu.vector_store %arg13[%c0_78, %c0_79], %86 {strides = array<i32>} : memref<32x256xf32, #tpu.memory_space<vmem>>, vector<32x256xf32>,
    return
  }
  func.func @transform_0(%arg0: i32) -> (i32, i32) {
    %c0_i32 = arith.constant 0 : i32
    %c0_i32_0 = arith.constant 0 : i32
    return %arg0, %c0_i32 : i32, i32
  }
  func.func @transform_1(%arg0: i32) -> (i32, i32) {
    %c0_i32 = arith.constant 0 : i32
    %c0_i32_0 = arith.constant 0 : i32
    return %arg0, %c0_i32 : i32, i32
  }
  func.func @transform_2(%arg0: i32) -> (i32, i32) {
    %c0_i32 = arith.constant 0 : i32
    %c0_i32_0 = arith.constant 0 : i32
    %c0_i32_1 = arith.constant 0 : i32
    return %c0_i32, %c0_i32_0 : i32, i32
  }
  func.func @transform_3(%arg0: i32) -> (i32, i32) {
    %c0_i32 = arith.constant 0 : i32
    %c0_i32_0 = arith.constant 0 : i32
    %c0_i32_1 = arith.constant 0 : i32
    return %c0_i32, %c0_i32_0 : i32, i32
  }
  func.func @transform_4(%arg0: i32) -> (i32, i32) {
    %c0_i32 = arith.constant 0 : i32
    %c0_i32_0 = arith.constant 0 : i32
    %c0_i32_1 = arith.constant 0 : i32
    return %c0_i32, %c0_i32_0 : i32, i32
  }
  func.func @transform_5(%arg0: i32) -> (i32, i32) {
    %c0_i32 = arith.constant 0 : i32
    %c0_i32_0 = arith.constant 0 : i32
    %c0_i32_1 = arith.constant 0 : i32
    return %c0_i32, %c0_i32_0 : i32, i32
  }
  func.func @transform_6(%arg0: i32) -> (i32, i32) {
    %c0_i32 = arith.constant 0 : i32
    %c0_i32_0 = arith.constant 0 : i32
    %c0_i32_1 = arith.constant 0 : i32
    return %c0_i32, %c0_i32_0 : i32, i32
  }
  func.func @transform_7(%arg0: i32) -> (i32, i32) {
    %c0_i32 = arith.constant 0 : i32
    %c0_i32_0 = arith.constant 0 : i32
    %c0_i32_1 = arith.constant 0 : i32
    return %c0_i32, %c0_i32_0 : i32, i32
  }
  func.func @transform_8(%arg0: i32) -> (i32, i32) {
    %c0_i32 = arith.constant 0 : i32
    %c0_i32_0 = arith.constant 0 : i32
    %c0_i32_1 = arith.constant 0 : i32
    return %c0_i32, %c0_i32_0 : i32, i32
  }
  func.func @transform_9(%arg0: i32) -> (i32, i32) {
    %c0_i32 = arith.constant 0 : i32
    %c0_i32_0 = arith.constant 0 : i32
    %c0_i32_1 = arith.constant 0 : i32
    return %c0_i32, %c0_i32_0 : i32, i32
  }
  func.func @transform_10(%arg0: i32) -> (i32, i32) {
    %c0_i32 = arith.constant 0 : i32
    %c0_i32_0 = arith.constant 0 : i32
    %c0_i32_1 = arith.constant 0 : i32
    return %c0_i32, %c0_i32_0 : i32, i32
  }
  func.func @transform_11(%arg0: i32) -> (i32, i32) {
    %c0_i32 = arith.constant 0 : i32
    %c0_i32_0 = arith.constant 0 : i32
    return %arg0, %c0_i32 : i32, i32
  }
  func.func @transform_12(%arg0: i32) -> (i32, i32) {
    %c0_i32 = arith.constant 0 : i32
    %c0_i32_0 = arith.constant 0 : i32
    return %arg0, %c0_i32 : i32, i32
  }
}

module attributes {stable_mosaic.version = 11 : i64} {
  func.func @vae_kernel(%arg0: i32, %arg1: memref<32x128xbf16, #tpu.memory_space<vmem>>, %arg2: memref<32x128xbf16, #tpu.memory_space<vmem>>, %arg3: memref<128x128xbf16, #tpu.memory_space<vmem>>, %arg4: memref<128x128xbf16, #tpu.memory_space<vmem>>, %arg5: memref<128x256xbf16, #tpu.memory_space<vmem>>, %arg6: memref<128x128xbf16, #tpu.memory_space<vmem>>, %arg7: memref<128x128xbf16, #tpu.memory_space<vmem>>, %arg8: memref<128x128xbf16, #tpu.memory_space<vmem>>, %arg9: memref<12x128xf32, #tpu.memory_space<vmem>>, %arg10: memref<1x256xf32, #tpu.memory_space<vmem>>, %arg11: memref<1x128xf32, #tpu.memory_space<vmem>>, %arg12: memref<32x128xf32, #tpu.memory_space<vmem>>, %arg13: memref<32x256xf32, #tpu.memory_space<vmem>>) attributes {dimension_semantics = [#tpu.dimension_semantics<parallel>], iteration_bounds = array<i64: 2>, scalar_prefetch = 0 : i64, scratch_operands = 0 : i64, tpu.core_type = #tpu.core_type<tc>, window_params = [{transform_indices = @transform_0, window_bounds = array<i64: 32, 128>}, {transform_indices = @transform_1, window_bounds = array<i64: 32, 128>}, {pipeline_mode = #tpu.pipeline_mode<synchronous>, transform_indices = @transform_2, window_bounds = array<i64: 128, 128>}, {pipeline_mode = #tpu.pipeline_mode<synchronous>, transform_indices = @transform_3, window_bounds = array<i64: 128, 128>}, {pipeline_mode = #tpu.pipeline_mode<synchronous>, transform_indices = @transform_4, window_bounds = array<i64: 128, 256>}, {pipeline_mode = #tpu.pipeline_mode<synchronous>, transform_indices = @transform_5, window_bounds = array<i64: 128, 128>}, {pipeline_mode = #tpu.pipeline_mode<synchronous>, transform_indices = @transform_6, window_bounds = array<i64: 128, 128>}, {pipeline_mode = #tpu.pipeline_mode<synchronous>, transform_indices = @transform_7, window_bounds = array<i64: 128, 128>}, {pipeline_mode = #tpu.pipeline_mode<synchronous>, transform_indices = @transform_8, window_bounds = array<i64: 12, 128>}, {pipeline_mode = #tpu.pipeline_mode<synchronous>, transform_indices = @transform_9, window_bounds = array<i64: 1, 256>}, {pipeline_mode = #tpu.pipeline_mode<synchronous>, transform_indices = @transform_10, window_bounds = array<i64: 1, 128>}, {transform_indices = @transform_11, window_bounds = array<i64: 32, 128>}, {transform_indices = @transform_12, window_bounds = array<i64: 32, 256>}]} {
    %c0 = arith.constant 0 : index
    %c0_0 = arith.constant 0 : index
    %0 = vector.load %arg1[%c0, %c0_0] : memref<32x128xbf16, #tpu.memory_space<vmem>>, vector<32x128xbf16>
    %c0_1 = arith.constant 0 : index
    %c0_2 = arith.constant 0 : index
    %1 = vector.load %arg9[%c0_1, %c0_2] : memref<12x128xf32, #tpu.memory_space<vmem>>, vector<1x128xf32>
    %c0_3 = arith.constant 0 : index
    %c0_4 = arith.constant 0 : index
    %2 = vector.load %arg3[%c0_3, %c0_4] : memref<128x128xbf16, #tpu.memory_space<vmem>>, vector<128x128xbf16>
    %cst = arith.constant dense<0.000000e+00> : vector<32x128xf32>
    %3 = tpu.matmul %0, %2, %cst {dimension_numbers = #tpu.dot_dimension_numbers<[1], [0], [0], [1], [0, 0, 1, 1], [], []>} : vector<32x128xbf16>, vector<128x128xbf16>, vector<32x128xf32> -> vector<32x128xf32>
    %4 = vector.broadcast %1 : vector<1x128xf32> to vector<32x128xf32>
    %5 = arith.addf %3, %4 : vector<32x128xf32>
    %c1 = arith.constant 1 : index
    %c0_5 = arith.constant 0 : index
    %6 = vector.load %arg9[%c1, %c0_5] : memref<12x128xf32, #tpu.memory_space<vmem>>, vector<1x128xf32>
    %c2 = arith.constant 2 : index
    %c0_6 = arith.constant 0 : index
    %7 = vector.load %arg9[%c2, %c0_6] : memref<12x128xf32, #tpu.memory_space<vmem>>, vector<1x128xf32>
    %cst_7 = arith.constant dense<0.000000e+00> : vector<32xf32>
    %8 = vector.multi_reduction <add>, %5, %cst_7 [1] : vector<32x128xf32> to vector<32xf32>
    %9 = vector.shape_cast %8 : vector<32xf32> to vector<32x1xf32>
    %cst_8 = arith.constant 1.280000e+02 : f32
    %10 = vector.broadcast %cst_8 : f32 to vector<32x1xf32>
    %11 = arith.divf %9, %10 : vector<32x1xf32>
    %12 = arith.mulf %5, %5 : vector<32x128xf32>
    %cst_9 = arith.constant dense<0.000000e+00> : vector<32xf32>
    %13 = vector.multi_reduction <add>, %12, %cst_9 [1] : vector<32x128xf32> to vector<32xf32>
    %14 = vector.shape_cast %13 : vector<32xf32> to vector<32x1xf32>
    %cst_10 = arith.constant 1.280000e+02 : f32
    %15 = vector.broadcast %cst_10 : f32 to vector<32x1xf32>
    %16 = arith.divf %14, %15 : vector<32x1xf32>
    %17 = arith.mulf %11, %11 : vector<32x1xf32>
    %18 = arith.subf %16, %17 : vector<32x1xf32>
    %cst_11 = arith.constant 0.000000e+00 : f32
    %19 = vector.broadcast %cst_11 : f32 to vector<32x1xf32>
    %20 = arith.maximumf %18, %19 : vector<32x1xf32>
    %21 = vector.broadcast %11 : vector<32x1xf32> to vector<32x128xf32>
    %22 = arith.subf %5, %21 : vector<32x128xf32>
    %cst_12 = arith.constant 9.99999974E-6 : f32
    %23 = vector.broadcast %cst_12 : f32 to vector<32x1xf32>
    %24 = arith.addf %20, %23 : vector<32x1xf32>
    %25 = math.rsqrt %24 : vector<32x1xf32>
    %26 = vector.broadcast %25 : vector<32x1xf32> to vector<32x128xf32>
    %27 = arith.mulf %22, %26 : vector<32x128xf32>
    %28 = vector.broadcast %6 : vector<1x128xf32> to vector<32x128xf32>
    %29 = arith.mulf %27, %28 : vector<32x128xf32>
    %30 = vector.broadcast %7 : vector<1x128xf32> to vector<32x128xf32>
    %31 = arith.addf %29, %30 : vector<32x128xf32>
    %cst_13 = arith.constant 0.000000e+00 : f32
    %32 = vector.broadcast %cst_13 : f32 to vector<32x128xf32>
    %33 = arith.cmpf ogt, %31, %32 : vector<32x128xf32>
    %cst_14 = arith.constant 0.000000e+00 : f32
    %34 = vector.broadcast %cst_14 : f32 to vector<32x128xf32>
    %35 = arith.minimumf %31, %34 : vector<32x128xf32>
    %36 = math.exp %35 : vector<32x128xf32>
    %cst_15 = arith.constant 1.000000e+00 : f32
    %37 = vector.broadcast %cst_15 : f32 to vector<32x128xf32>
    %38 = arith.subf %36, %37 : vector<32x128xf32>
    %39 = arith.select %33, %31, %38 : vector<32x128xi1>, vector<32x128xf32>
    %c3 = arith.constant 3 : index
    %c0_16 = arith.constant 0 : index
    %40 = vector.load %arg9[%c3, %c0_16] : memref<12x128xf32, #tpu.memory_space<vmem>>, vector<1x128xf32>
    %c0_17 = arith.constant 0 : index
    %c0_18 = arith.constant 0 : index
    %41 = vector.load %arg4[%c0_17, %c0_18] : memref<128x128xbf16, #tpu.memory_space<vmem>>, vector<128x128xbf16>
    %42 = arith.truncf %39 : vector<32x128xf32> to vector<32x128xbf16>
    %cst_19 = arith.constant dense<0.000000e+00> : vector<32x128xf32>
    %43 = tpu.matmul %42, %41, %cst_19 {dimension_numbers = #tpu.dot_dimension_numbers<[1], [0], [0], [1], [0, 0, 1, 1], [], []>} : vector<32x128xbf16>, vector<128x128xbf16>, vector<32x128xf32> -> vector<32x128xf32>
    %44 = vector.broadcast %40 : vector<1x128xf32> to vector<32x128xf32>
    %45 = arith.addf %43, %44 : vector<32x128xf32>
    %c4 = arith.constant 4 : index
    %c0_20 = arith.constant 0 : index
    %46 = vector.load %arg9[%c4, %c0_20] : memref<12x128xf32, #tpu.memory_space<vmem>>, vector<1x128xf32>
    %c5 = arith.constant 5 : index
    %c0_21 = arith.constant 0 : index
    %47 = vector.load %arg9[%c5, %c0_21] : memref<12x128xf32, #tpu.memory_space<vmem>>, vector<1x128xf32>
    %cst_22 = arith.constant dense<0.000000e+00> : vector<32xf32>
    %48 = vector.multi_reduction <add>, %45, %cst_22 [1] : vector<32x128xf32> to vector<32xf32>
    %49 = vector.shape_cast %48 : vector<32xf32> to vector<32x1xf32>
    %cst_23 = arith.constant 1.280000e+02 : f32
    %50 = vector.broadcast %cst_23 : f32 to vector<32x1xf32>
    %51 = arith.divf %49, %50 : vector<32x1xf32>
    %52 = arith.mulf %45, %45 : vector<32x128xf32>
    %cst_24 = arith.constant dense<0.000000e+00> : vector<32xf32>
    %53 = vector.multi_reduction <add>, %52, %cst_24 [1] : vector<32x128xf32> to vector<32xf32>
    %54 = vector.shape_cast %53 : vector<32xf32> to vector<32x1xf32>
    %cst_25 = arith.constant 1.280000e+02 : f32
    %55 = vector.broadcast %cst_25 : f32 to vector<32x1xf32>
    %56 = arith.divf %54, %55 : vector<32x1xf32>
    %57 = arith.mulf %51, %51 : vector<32x1xf32>
    %58 = arith.subf %56, %57 : vector<32x1xf32>
    %cst_26 = arith.constant 0.000000e+00 : f32
    %59 = vector.broadcast %cst_26 : f32 to vector<32x1xf32>
    %60 = arith.maximumf %58, %59 : vector<32x1xf32>
    %61 = vector.broadcast %51 : vector<32x1xf32> to vector<32x128xf32>
    %62 = arith.subf %45, %61 : vector<32x128xf32>
    %cst_27 = arith.constant 9.99999974E-6 : f32
    %63 = vector.broadcast %cst_27 : f32 to vector<32x1xf32>
    %64 = arith.addf %60, %63 : vector<32x1xf32>
    %65 = math.rsqrt %64 : vector<32x1xf32>
    %66 = vector.broadcast %65 : vector<32x1xf32> to vector<32x128xf32>
    %67 = arith.mulf %62, %66 : vector<32x128xf32>
    %68 = vector.broadcast %46 : vector<1x128xf32> to vector<32x128xf32>
    %69 = arith.mulf %67, %68 : vector<32x128xf32>
    %70 = vector.broadcast %47 : vector<1x128xf32> to vector<32x128xf32>
    %71 = arith.addf %69, %70 : vector<32x128xf32>
    %cst_28 = arith.constant 0.000000e+00 : f32
    %72 = vector.broadcast %cst_28 : f32 to vector<32x128xf32>
    %73 = arith.cmpf ogt, %71, %72 : vector<32x128xf32>
    %cst_29 = arith.constant 0.000000e+00 : f32
    %74 = vector.broadcast %cst_29 : f32 to vector<32x128xf32>
    %75 = arith.minimumf %71, %74 : vector<32x128xf32>
    %76 = math.exp %75 : vector<32x128xf32>
    %cst_30 = arith.constant 1.000000e+00 : f32
    %77 = vector.broadcast %cst_30 : f32 to vector<32x128xf32>
    %78 = arith.subf %76, %77 : vector<32x128xf32>
    %79 = arith.select %73, %71, %78 : vector<32x128xi1>, vector<32x128xf32>
    %80 = arith.addf %79, %39 : vector<32x128xf32>
    %c0_31 = arith.constant 0 : index
    %c0_32 = arith.constant 0 : index
    %81 = vector.load %arg10[%c0_31, %c0_32] : memref<1x256xf32, #tpu.memory_space<vmem>>, vector<1x256xf32>
    %c0_33 = arith.constant 0 : index
    %c0_34 = arith.constant 0 : index
    %82 = vector.load %arg5[%c0_33, %c0_34] : memref<128x256xbf16, #tpu.memory_space<vmem>>, vector<128x256xbf16>
    %83 = arith.truncf %80 : vector<32x128xf32> to vector<32x128xbf16>
    %cst_35 = arith.constant dense<0.000000e+00> : vector<32x256xf32>
    %84 = tpu.matmul %83, %82, %cst_35 {dimension_numbers = #tpu.dot_dimension_numbers<[1], [0], [0], [1], [0, 0, 1, 1], [], []>} : vector<32x128xbf16>, vector<128x256xbf16>, vector<32x256xf32> -> vector<32x256xf32>
    %85 = vector.broadcast %81 : vector<1x256xf32> to vector<32x256xf32>
    %86 = arith.addf %84, %85 : vector<32x256xf32>
    %87 = vector.extract_strided_slice %86 {offsets = [0, 0], sizes = [32, 128], strides = [1, 1]} : vector<32x256xf32> to vector<32x128xf32>
    %88 = vector.extract_strided_slice %86 {offsets = [0, 128], sizes = [32, 128], strides = [1, 1]} : vector<32x256xf32> to vector<32x128xf32>
    %cst_36 = arith.constant -2.000000e+01 : f32
    %cst_37 = arith.constant 2.000000e+00 : f32
    %89 = vector.broadcast %cst_36 : f32 to vector<32x128xf32>
    %90 = arith.maximumf %89, %88 : vector<32x128xf32>
    %91 = vector.broadcast %cst_37 : f32 to vector<32x128xf32>
    %92 = arith.minimumf %91, %90 : vector<32x128xf32>
    %cst_38 = arith.constant 5.000000e-01 : f32
    %93 = vector.broadcast %cst_38 : f32 to vector<32x128xf32>
    %94 = arith.mulf %93, %92 : vector<32x128xf32>
    %95 = math.exp %94 : vector<32x128xf32>
    %c0_39 = arith.constant 0 : index
    %c0_40 = arith.constant 0 : index
    %96 = vector.load %arg2[%c0_39, %c0_40] : memref<32x128xbf16, #tpu.memory_space<vmem>>, vector<32x128xbf16>
    %97 = arith.extf %96 : vector<32x128xbf16> to vector<32x128xf32>
    %98 = arith.mulf %97, %95 : vector<32x128xf32>
    %99 = arith.addf %87, %98 : vector<32x128xf32>
    %c6 = arith.constant 6 : index
    %c0_41 = arith.constant 0 : index
    %100 = vector.load %arg9[%c6, %c0_41] : memref<12x128xf32, #tpu.memory_space<vmem>>, vector<1x128xf32>
    %c0_42 = arith.constant 0 : index
    %c0_43 = arith.constant 0 : index
    %101 = vector.load %arg6[%c0_42, %c0_43] : memref<128x128xbf16, #tpu.memory_space<vmem>>, vector<128x128xbf16>
    %102 = arith.truncf %99 : vector<32x128xf32> to vector<32x128xbf16>
    %cst_44 = arith.constant dense<0.000000e+00> : vector<32x128xf32>
    %103 = tpu.matmul %102, %101, %cst_44 {dimension_numbers = #tpu.dot_dimension_numbers<[1], [0], [0], [1], [0, 0, 1, 1], [], []>} : vector<32x128xbf16>, vector<128x128xbf16>, vector<32x128xf32> -> vector<32x128xf32>
    %104 = vector.broadcast %100 : vector<1x128xf32> to vector<32x128xf32>
    %105 = arith.addf %103, %104 : vector<32x128xf32>
    %c7 = arith.constant 7 : index
    %c0_45 = arith.constant 0 : index
    %106 = vector.load %arg9[%c7, %c0_45] : memref<12x128xf32, #tpu.memory_space<vmem>>, vector<1x128xf32>
    %c8 = arith.constant 8 : index
    %c0_46 = arith.constant 0 : index
    %107 = vector.load %arg9[%c8, %c0_46] : memref<12x128xf32, #tpu.memory_space<vmem>>, vector<1x128xf32>
    %cst_47 = arith.constant dense<0.000000e+00> : vector<32xf32>
    %108 = vector.multi_reduction <add>, %105, %cst_47 [1] : vector<32x128xf32> to vector<32xf32>
    %109 = vector.shape_cast %108 : vector<32xf32> to vector<32x1xf32>
    %cst_48 = arith.constant 1.280000e+02 : f32
    %110 = vector.broadcast %cst_48 : f32 to vector<32x1xf32>
    %111 = arith.divf %109, %110 : vector<32x1xf32>
    %112 = arith.mulf %105, %105 : vector<32x128xf32>
    %cst_49 = arith.constant dense<0.000000e+00> : vector<32xf32>
    %113 = vector.multi_reduction <add>, %112, %cst_49 [1] : vector<32x128xf32> to vector<32xf32>
    %114 = vector.shape_cast %113 : vector<32xf32> to vector<32x1xf32>
    %cst_50 = arith.constant 1.280000e+02 : f32
    %115 = vector.broadcast %cst_50 : f32 to vector<32x1xf32>
    %116 = arith.divf %114, %115 : vector<32x1xf32>
    %117 = arith.mulf %111, %111 : vector<32x1xf32>
    %118 = arith.subf %116, %117 : vector<32x1xf32>
    %cst_51 = arith.constant 0.000000e+00 : f32
    %119 = vector.broadcast %cst_51 : f32 to vector<32x1xf32>
    %120 = arith.maximumf %118, %119 : vector<32x1xf32>
    %121 = vector.broadcast %111 : vector<32x1xf32> to vector<32x128xf32>
    %122 = arith.subf %105, %121 : vector<32x128xf32>
    %cst_52 = arith.constant 9.99999974E-6 : f32
    %123 = vector.broadcast %cst_52 : f32 to vector<32x1xf32>
    %124 = arith.addf %120, %123 : vector<32x1xf32>
    %125 = math.rsqrt %124 : vector<32x1xf32>
    %126 = vector.broadcast %125 : vector<32x1xf32> to vector<32x128xf32>
    %127 = arith.mulf %122, %126 : vector<32x128xf32>
    %128 = vector.broadcast %106 : vector<1x128xf32> to vector<32x128xf32>
    %129 = arith.mulf %127, %128 : vector<32x128xf32>
    %130 = vector.broadcast %107 : vector<1x128xf32> to vector<32x128xf32>
    %131 = arith.addf %129, %130 : vector<32x128xf32>
    %cst_53 = arith.constant 0.000000e+00 : f32
    %132 = vector.broadcast %cst_53 : f32 to vector<32x128xf32>
    %133 = arith.cmpf ogt, %131, %132 : vector<32x128xf32>
    %cst_54 = arith.constant 0.000000e+00 : f32
    %134 = vector.broadcast %cst_54 : f32 to vector<32x128xf32>
    %135 = arith.minimumf %131, %134 : vector<32x128xf32>
    %136 = math.exp %135 : vector<32x128xf32>
    %cst_55 = arith.constant 1.000000e+00 : f32
    %137 = vector.broadcast %cst_55 : f32 to vector<32x128xf32>
    %138 = arith.subf %136, %137 : vector<32x128xf32>
    %139 = arith.select %133, %131, %138 : vector<32x128xi1>, vector<32x128xf32>
    %c9 = arith.constant 9 : index
    %c0_56 = arith.constant 0 : index
    %140 = vector.load %arg9[%c9, %c0_56] : memref<12x128xf32, #tpu.memory_space<vmem>>, vector<1x128xf32>
    %c0_57 = arith.constant 0 : index
    %c0_58 = arith.constant 0 : index
    %141 = vector.load %arg7[%c0_57, %c0_58] : memref<128x128xbf16, #tpu.memory_space<vmem>>, vector<128x128xbf16>
    %142 = arith.truncf %139 : vector<32x128xf32> to vector<32x128xbf16>
    %cst_59 = arith.constant dense<0.000000e+00> : vector<32x128xf32>
    %143 = tpu.matmul %142, %141, %cst_59 {dimension_numbers = #tpu.dot_dimension_numbers<[1], [0], [0], [1], [0, 0, 1, 1], [], []>} : vector<32x128xbf16>, vector<128x128xbf16>, vector<32x128xf32> -> vector<32x128xf32>
    %144 = vector.broadcast %140 : vector<1x128xf32> to vector<32x128xf32>
    %145 = arith.addf %143, %144 : vector<32x128xf32>
    %c10 = arith.constant 10 : index
    %c0_60 = arith.constant 0 : index
    %146 = vector.load %arg9[%c10, %c0_60] : memref<12x128xf32, #tpu.memory_space<vmem>>, vector<1x128xf32>
    %c11 = arith.constant 11 : index
    %c0_61 = arith.constant 0 : index
    %147 = vector.load %arg9[%c11, %c0_61] : memref<12x128xf32, #tpu.memory_space<vmem>>, vector<1x128xf32>
    %cst_62 = arith.constant dense<0.000000e+00> : vector<32xf32>
    %148 = vector.multi_reduction <add>, %145, %cst_62 [1] : vector<32x128xf32> to vector<32xf32>
    %149 = vector.shape_cast %148 : vector<32xf32> to vector<32x1xf32>
    %cst_63 = arith.constant 1.280000e+02 : f32
    %150 = vector.broadcast %cst_63 : f32 to vector<32x1xf32>
    %151 = arith.divf %149, %150 : vector<32x1xf32>
    %152 = arith.mulf %145, %145 : vector<32x128xf32>
    %cst_64 = arith.constant dense<0.000000e+00> : vector<32xf32>
    %153 = vector.multi_reduction <add>, %152, %cst_64 [1] : vector<32x128xf32> to vector<32xf32>
    %154 = vector.shape_cast %153 : vector<32xf32> to vector<32x1xf32>
    %cst_65 = arith.constant 1.280000e+02 : f32
    %155 = vector.broadcast %cst_65 : f32 to vector<32x1xf32>
    %156 = arith.divf %154, %155 : vector<32x1xf32>
    %157 = arith.mulf %151, %151 : vector<32x1xf32>
    %158 = arith.subf %156, %157 : vector<32x1xf32>
    %cst_66 = arith.constant 0.000000e+00 : f32
    %159 = vector.broadcast %cst_66 : f32 to vector<32x1xf32>
    %160 = arith.maximumf %158, %159 : vector<32x1xf32>
    %161 = vector.broadcast %151 : vector<32x1xf32> to vector<32x128xf32>
    %162 = arith.subf %145, %161 : vector<32x128xf32>
    %cst_67 = arith.constant 9.99999974E-6 : f32
    %163 = vector.broadcast %cst_67 : f32 to vector<32x1xf32>
    %164 = arith.addf %160, %163 : vector<32x1xf32>
    %165 = math.rsqrt %164 : vector<32x1xf32>
    %166 = vector.broadcast %165 : vector<32x1xf32> to vector<32x128xf32>
    %167 = arith.mulf %162, %166 : vector<32x128xf32>
    %168 = vector.broadcast %146 : vector<1x128xf32> to vector<32x128xf32>
    %169 = arith.mulf %167, %168 : vector<32x128xf32>
    %170 = vector.broadcast %147 : vector<1x128xf32> to vector<32x128xf32>
    %171 = arith.addf %169, %170 : vector<32x128xf32>
    %cst_68 = arith.constant 0.000000e+00 : f32
    %172 = vector.broadcast %cst_68 : f32 to vector<32x128xf32>
    %173 = arith.cmpf ogt, %171, %172 : vector<32x128xf32>
    %cst_69 = arith.constant 0.000000e+00 : f32
    %174 = vector.broadcast %cst_69 : f32 to vector<32x128xf32>
    %175 = arith.minimumf %171, %174 : vector<32x128xf32>
    %176 = math.exp %175 : vector<32x128xf32>
    %cst_70 = arith.constant 1.000000e+00 : f32
    %177 = vector.broadcast %cst_70 : f32 to vector<32x128xf32>
    %178 = arith.subf %176, %177 : vector<32x128xf32>
    %179 = arith.select %173, %171, %178 : vector<32x128xi1>, vector<32x128xf32>
    %180 = arith.addf %179, %139 : vector<32x128xf32>
    %c0_71 = arith.constant 0 : index
    %c0_72 = arith.constant 0 : index
    %181 = vector.load %arg11[%c0_71, %c0_72] : memref<1x128xf32, #tpu.memory_space<vmem>>, vector<1x128xf32>
    %c0_73 = arith.constant 0 : index
    %c0_74 = arith.constant 0 : index
    %182 = vector.load %arg8[%c0_73, %c0_74] : memref<128x128xbf16, #tpu.memory_space<vmem>>, vector<128x128xbf16>
    %183 = arith.truncf %180 : vector<32x128xf32> to vector<32x128xbf16>
    %cst_75 = arith.constant dense<0.000000e+00> : vector<32x128xf32>
    %184 = tpu.matmul %183, %182, %cst_75 {dimension_numbers = #tpu.dot_dimension_numbers<[1], [0], [0], [1], [0, 0, 1, 1], [], []>} : vector<32x128xbf16>, vector<128x128xbf16>, vector<32x128xf32> -> vector<32x128xf32>
    %185 = vector.broadcast %181 : vector<1x128xf32> to vector<32x128xf32>
    %186 = arith.addf %184, %185 : vector<32x128xf32>
    %c0_76 = arith.constant 0 : index
    %c0_77 = arith.constant 0 : index
    %187 = vector.load %arg12[%c0_76, %c0_77] : memref<32x128xf32, #tpu.memory_space<vmem>>, vector<32x128xf32>
    tpu.vector_store %arg12[%c0_76, %c0_77], %186 {strides = array<i32>} : memref<32x128xf32, #tpu.memory_space<vmem>>, vector<32x128xf32>,
    %c0_78 = arith.constant 0 : index
    %c0_79 = arith.constant 0 : index
    %188 = vector.load %arg13[%c0_78, %c0_79] : memref<32x256xf32, #tpu.memory_space<vmem>>, vector<32x256xf32>
    tpu.vector_store %arg13[%c0_78, %c0_79], %86 {strides = array<i32>} : memref<32x256xf32, #tpu.memory_space<vmem>>, vector<32x256xf32>,
    return
  }
  func.func @transform_0(%arg0: i32) -> (i32, i32) {
    %c0_i32 = arith.constant 0 : i32
    %c0_i32_0 = arith.constant 0 : i32
    return %arg0, %c0_i32 : i32, i32
  }
  func.func @transform_1(%arg0: i32) -> (i32, i32) {
    %c0_i32 = arith.constant 0 : i32
    %c0_i32_0 = arith.constant 0 : i32
    return %arg0, %c0_i32 : i32, i32
  }
  func.func @transform_2(%arg0: i32) -> (i32, i32) {
    %c0_i32 = arith.constant 0 : i32
    %c0_i32_0 = arith.constant 0 : i32
    %c0_i32_1 = arith.constant 0 : i32
    return %c0_i32, %c0_i32_0 : i32, i32
  }
  func.func @transform_3(%arg0: i32) -> (i32, i32) {
    %c0_i32 = arith.constant 0 : i32
    %c0_i32_0 = arith.constant 0 : i32
    %c0_i32_1 = arith.constant 0 : i32
    return %c0_i32, %c0_i32_0 : i32, i32
  }
  func.func @transform_4(%arg0: i32) -> (i32, i32) {
    %c0_i32 = arith.constant 0 : i32
    %c0_i32_0 = arith.constant 0 : i32
    %c0_i32_1 = arith.constant 0 : i32
    return %c0_i32, %c0_i32_0 : i32, i32
  }
  func.func @transform_5(%arg0: i32) -> (i32, i32) {
    %c0_i32 = arith.constant 0 : i32
    %c0_i32_0 = arith.constant 0 : i32
    %c0_i32_1 = arith.constant 0 : i32
    return %c0_i32, %c0_i32_0 : i32, i32
  }
  func.func @transform_6(%arg0: i32) -> (i32, i32) {
    %c0_i32 = arith.constant 0 : i32
    %c0_i32_0 = arith.constant 0 : i32
    %c0_i32_1 = arith.constant 0 : i32
    return %c0_i32, %c0_i32_0 : i32, i32
  }
  func.func @transform_7(%arg0: i32) -> (i32, i32) {
    %c0_i32 = arith.constant 0 : i32
    %c0_i32_0 = arith.constant 0 : i32
    %c0_i32_1 = arith.constant 0 : i32
    return %c0_i32, %c0_i32_0 : i32, i32
  }
  func.func @transform_8(%arg0: i32) -> (i32, i32) {
    %c0_i32 = arith.constant 0 : i32
    %c0_i32_0 = arith.constant 0 : i32
    %c0_i32_1 = arith.constant 0 : i32
    return %c0_i32, %c0_i32_0 : i32, i32
  }
  func.func @transform_9(%arg0: i32) -> (i32, i32) {
    %c0_i32 = arith.constant 0 : i32
    %c0_i32_0 = arith.constant 0 : i32
    %c0_i32_1 = arith.constant 0 : i32
    return %c0_i32, %c0_i32_0 : i32, i32
  }
  func.func @transform_10(%arg0: i32) -> (i32, i32) {
    %c0_i32 = arith.constant 0 : i32
    %c0_i32_0 = arith.constant 0 : i32
    %c0_i32_1 = arith.constant 0 : i32
    return %c0_i32, %c0_i32_0 : i32, i32
  }
  func.func @transform_11(%arg0: i32) -> (i32, i32) {
    %c0_i32 = arith.constant 0 : i32
    %c0_i32_0 = arith.constant 0 : i32
    return %arg0, %c0_i32 : i32, i32
  }
  func.func @transform_12(%arg0: i32) -> (i32, i32) {
    %c0_i32 = arith.constant 0 : i32
    %c0_i32_0 = arith.constant 0 : i32
    return %arg0, %c0_i32 : i32, i32
  }
}

</mosaic_0001>

<bundles_post_ra>
// kernel: tpu_custom_call.1
= control target key start
LH: loop header
LB: loop body
LE: loop exit
PB: predicated region body
PF: predicated region fallthrough
CT: control target
= control target key end

     0   :  { %s3630_s0 = inlined_call_operand.hbm [shape: bf16[64,128], index: 0, kind: input, shape index: {}]   ;;  %s3631_s1 = inlined_call_operand.hbm [shape: bf16[64,128], index: 1, kind: input, shape index: {}]   ;;  %s3632_s2 = inlined_call_operand.hbm [shape: bf16[128,128], index: 2, kind: input, shape index: {}]   ;;  %s3633_s3 = inlined_call_operand.hbm [shape: bf16[128,128], index: 3, kind: input, shape index: {}]   ;;  %s3634_s4 = inlined_call_operand.hbm [shape: bf16[128,256], index: 4, kind: input, shape index: {}]   ;;  %s3635_s5 = inlined_call_operand.hbm [shape: bf16[128,128], index: 5, kind: input, shape index: {}]   ;;  %s3636_s6 = inlined_call_operand.hbm [shape: bf16[128,128], index: 6, kind: input, shape index: {}]   ;;  %s3637_s7 = inlined_call_operand.hbm [shape: bf16[128,128], index: 7, kind: input, shape index: {}]   ;;  %s3638_s8 = inlined_call_operand.vmem [shape: f32[12,128], index: 8, kind: input, shape index: {}]   ;;  %s3639_s9 = inlined_call_operand.vmem [shape: f32[1,256], index: 9, kind: input, shape index: {}]   ;;  %s3640_s10 = inlined_call_operand.vmem [shape: f32[1,128], index: 10, kind: input, shape index: {}]   ;;  %s3641_s11 = inlined_call_operand.hbm [shape: f32[64,128], index: 11, kind: output, shape index: {0}]   ;;  %s3642_s12 = inlined_call_operand.hbm [shape: f32[64,256], index: 12, kind: output, shape index: {1}]  }
   0x1   :  { %3652 = sst [smem:[#allocation27_spill]] %s3632_s2 }
   0x2   :  { %3653 = sst [smem:[#allocation28_spill]] %s3633_s3 }
   0x3   :  { %3654 = sst [smem:[#allocation29_spill]] %s3634_s4 }
   0x4   :  { %3655 = sst [smem:[#allocation30_spill]] %s3635_s5 }
   0x5   :  { %3656 = sst [smem:[#allocation31_spill]] %s3636_s6 }
   0x6   :  { %3657 = sst [smem:[#allocation32_spill]] %s3637_s7 }
   0x7   :  { %3658 = sst [smem:[#allocation33_spill]] %s3639_s9 }
   0x8   :  { %3659 = sst [smem:[#allocation34_spill]] %s3640_s10 }
   0x9   :  { %3660 = sst [smem:[#allocation35_spill]] %s3641_s11 }
   0xa   :  { %3661 = sst [smem:[#allocation36_spill]] %s3642_s12 }
   0xb   :  { %18 = vsyncpa [#allocation3], 0 }
   0xc   :  { %20 = vsyncpa [#allocation3 + $0x1], 0 }
   0xd   :  { %21 = vsyncpa [#allocation6], 0 }
   0xe   :  { %23 = vsyncpa [#allocation6 + $0x1], 0 }
   0xf   :  { %24 = vsyncpa [#allocation9], 0 }
  0x10   :  { %25 = vsyncpa [#allocation12], 0 }
  0x11   :  { %26 = vsyncpa [#allocation15], 0 }
  0x12   :  { %27 = vsyncpa [#allocation4], 0 }
  0x13   :  { %29 = vsyncpa [#allocation4 + $0x1], 0 }
  0x14   :  { %30 = vsyncpa [#allocation18], 0 }
  0x15   :  { %32 = vsyncpa [#allocation18 + $0x1], 0  ;;  %s3006_s21 = smov 0   ;;  %s3008_s22 = smov 0  }
  0x16   :  { %s3010_s23 = smov 0   ;;  %s3012_s24 = smov 0  }
  0x17 LB: > { %s2922_s25 = smov [#allocation7]   ;;  %s3027_s27 = sadd.s32 4294967295, %s2920_s24   ;;  %s2920_s24 = sphi %s3012_s24, %s3698_s24   ;;  %s2916_s23 = sphi %s3010_s23, %s3697_s23   ;;  %s2912_s22 = sphi %s3008_s22, %s3696_s22   ;;  %s2908_s21 = sphi %s3006_s21, %s3695_s21  }
  0x18   : > { %s348_s26 = sshll.u32 %s2922_s25, 4  ;;  %p2025_p0 = scmp.ge.s32.totalorder %s2920_s24, 1  ;;  %s3032_s26 = int_to_ptr.vmem [resolvable:$true] %s348_s26 }
  0x19   : > { %p3645_p1 = scmp.eq.s32.totalorder %s3027_s27, 0  ;;  %p336_p2 = scmp.lt.s32.totalorder %s2920_s24, 3 }
  0x1a   : > { %s2923_s29 = smov [#allocation8]   ;;  %s2924_s14 = smov [#allocation11]  }
  0x1b   : > { %p3034_p3 = pnand %p2025_p0, %p336_p2  ;;  %s361_s30 = sshll.u32 %s2923_s29, 4  ;;  %s3047_s30 = int_to_ptr.vmem [resolvable:$true] %s361_s30 }
  0x1c   : > { %s387_s15 = sshll.u32 %s2924_s14, 4  ;;  %s3664_s2 = sld [smem:[#allocation27_spill]]  ;;  %s3049_s15 = int_to_ptr.vmem [resolvable:$true] %s387_s15 }
  0x1d   : > { %s3662_s28 = scalar_select %p3034_p3, 1, 0 }
  0x1e   : > { %p2342_p5 = pneg %p3034_p3 }
  0x20   : > { %p3043_p6 = pnand %p2342_p5, %p3645_p1 }
  0x22   : > { %s2574_s18 = scalar_lea.hbm %s3664_s2, 1024  ;;  %p3059_p8 = pneg %p3043_p6 }
  0x23   : > { %p2575_p7 = scmp.ne.s32.totalorder %s3664_s2, %s2574_s18  ;;  %p2581_p11 = scmp.lt.u32.totalorder %s2574_s18, %s3664_s2 }
  0x25   : > { %p2577_p9 = pnand %p3059_p8, %p2575_p7 }
  0x27   : > { %p2578_p10 = pneg %p2577_p9 }
  0x29   : > { %p2583_p12 = pnand %p2581_p11, %p2578_p10 }
  0x2b   : > { %2586 = shalt.err (!%p2583_p12)
}
  0x2c   : > { %s2587_s16 = scalar_lea.vmem %s3032_s26, 1024  ;;  %p2595_p5 = scmp.lt.s32.totalorder %s3032_s26, %s3032_s26 }
  0x2d   : > { %p2588_p13 = scmp.ne.s32.totalorder %s3032_s26, %s2587_s16  ;;  %p2596_p4 = scmp.lt.s32.totalorder %s2587_s16, %s2587_s16 }
  0x2f   : > { %p2590_p0 = pnand %p2588_p13, %p3059_p8  ;;  %p2597_p7 = por %p2596_p4, %p2595_p5 }
  0x31   : > { %p2591_p2 = pneg %p2590_p0 }
  0x33   : > { %p2598_p9 = pnand %p2597_p7, %p2591_p2 }
  0x35   : > { %2601 = shalt.err (!%p2598_p9)
}
  0x36   : > { %s3647_s17 = smov 64   ;;  %s3649_s18 = smov 4  }
  0x37   : > { %2345 = dma.hbm_to_vmem [thread:$0]  (!%p3043_p6), %s3664_s2, 1024, %s3032_s26, [#allocation6], %s3647_s17, %s3647_s17, %s3649_s18  }
  0x38   : > { %s3666_s3 = sld [smem:[#allocation28_spill]] }
  0x3e   : > { %s2602_s16 = scalar_lea.hbm %s3666_s3, 1024 }
  0x3f   : > { %p2603_p4 = scmp.ne.s32.totalorder %s3666_s3, %s2602_s16  ;;  %p2609_p12 = scmp.lt.u32.totalorder %s2602_s16, %s3666_s3 }
  0x41   : > { %p2605_p10 = pnand %p2603_p4, %p3059_p8 }
  0x43   : > { %p2606_p11 = pneg %p2605_p10 }
  0x45   : > { %p2611_p13 = pnand %p2609_p12, %p2606_p11 }
  0x47   : > { %2614 = shalt.err (!%p2611_p13)
}
  0x48   : > { %s2615_s26 = scalar_lea.vmem %s3047_s30, 1024  ;;  %p2623_p7 = scmp.lt.s32.totalorder %s3047_s30, %s3047_s30 }
  0x49   : > { %p2616_p0 = scmp.ne.s32.totalorder %s3047_s30, %s2615_s26  ;;  %p2624_p9 = scmp.lt.s32.totalorder %s2615_s26, %s2615_s26 }
  0x4b   : > { %p2618_p2 = pnand %p2616_p0, %p3059_p8  ;;  %p2625_p4 = por %p2624_p9, %p2623_p7 }
  0x4d   : > { %p2619_p5 = pneg %p2618_p2 }
  0x4f   : > { %p2626_p10 = pnand %p2625_p4, %p2619_p5 }
  0x51   : > { %2629 = shalt.err (!%p2626_p10)
}
  0x52   : > { %2348 = dma.hbm_to_vmem [thread:$0]  (!%p3043_p6), %s3666_s3, 1024, %s3047_s30, [#allocation9], %s3647_s17, %s3647_s17, %s3649_s18  }
  0x53   : > { %s3667_s5 = sld [smem:[#allocation30_spill]] }
  0x59   : > { %s2630_s19 = scalar_lea.hbm %s3667_s5, 1024 }
  0x5a   : > { %p2631_p11 = scmp.ne.s32.totalorder %s3667_s5, %s2630_s19  ;;  %p2637_p0 = scmp.lt.u32.totalorder %s2630_s19, %s3667_s5 }
  0x5c   : > { %p2633_p12 = pnand %p2631_p11, %p3059_p8 }
  0x5e   : > { %p2634_p13 = pneg %p2633_p12 }
  0x60   : > { %p2639_p2 = pnand %p2637_p0, %p2634_p13 }
  0x62   : > { %2642 = shalt.err (!%p2639_p2)
}
  0x63   : > { %s2643_s30 = scalar_lea.vmem %s3049_s15, 1024  ;;  %p2651_p4 = scmp.lt.s32.totalorder %s3049_s15, %s3049_s15 }
  0x64   : > { %p2644_p5 = scmp.ne.s32.totalorder %s3049_s15, %s2643_s30  ;;  %p2652_p10 = scmp.lt.s32.totalorder %s2643_s30, %s2643_s30 }
  0x66   : > { %p2646_p7 = pnand %p2644_p5, %p3059_p8  ;;  %p2653_p11 = por %p2652_p10, %p2651_p4 }
  0x68   : > { %p2647_p9 = pneg %p2646_p7 }
  0x6a   : > { %p2654_p12 = pnand %p2653_p11, %p2647_p9 }
  0x6c   : > { %2657 = shalt.err (!%p2654_p12)
}
  0x6d   : > { %2354 = dma.hbm_to_vmem [thread:$0]  (!%p3043_p6), %s3667_s5, 1024, %s3049_s15, [#allocation12], %s3647_s17, %s3647_s17, %s3649_s18  }
  0x6e   : > { %s2927_s10 = smov [#allocation10]   ;;  %s3668_s4 = sld [smem:[#allocation29_spill]] }
  0x6f   : > { %s374_s11 = sshll.u32 %s2927_s10, 4  ;;  %s375_s11 = int_to_ptr.vmem [resolvable:$true] %s374_s11 }
  0x74   : > { %s2658_s20 = scalar_lea.hbm %s3668_s4, 2048 }
  0x75   : > { %p2659_p13 = scmp.ne.s32.totalorder %s3668_s4, %s2658_s20  ;;  %p2665_p5 = scmp.lt.u32.totalorder %s2658_s20, %s3668_s4 }
  0x77   : > { %p2661_p0 = pnand %p2659_p13, %p3059_p8 }
  0x79   : > { %p2662_p2 = pneg %p2661_p0 }
  0x7b   : > { %p2667_p7 = pnand %p2665_p5, %p2662_p2 }
  0x7d   : > { %2670 = shalt.err (!%p2667_p7)
}
  0x7e   : > { %s2671_s15 = scalar_lea.vmem %s375_s11, 2048  ;;  %p2679_p11 = scmp.lt.s32.totalorder %s375_s11, %s375_s11 }
  0x7f   : > { %p2672_p9 = scmp.ne.s32.totalorder %s375_s11, %s2671_s15  ;;  %p2680_p12 = scmp.lt.s32.totalorder %s2671_s15, %s2671_s15 }
  0x81   : > { %p2674_p4 = pnand %p2672_p9, %p3059_p8  ;;  %p2681_p1 = por %p2680_p12, %p2679_p11 }
  0x83   : > { %p2675_p10 = pneg %p2674_p4 }
  0x85   : > { %p2682_p3 = pnand %p2681_p1, %p2675_p10 }
  0x87   : > { %2685 = shalt.err (!%p2682_p3)
}
  0x88   : > { %s2928_s26 = smov 128   ;;  %s2929_s9 = smov 8  }
  0x89   : > { %2351 = dma.hbm_to_vmem [thread:$0]  (!%p3043_p6), %s3668_s4, 2048, %s375_s11, [#allocation9], %s2928_s26, %s2928_s26, %s2929_s9  }
  0x8a   : > { %s2930_s19 = smov [#allocation13]   ;;  %s2931_s29 = smov [#allocation14]  }
  0x8b   : > { %s400_s20 = sshll.u32 %s2930_s19, 4  ;;  %s413_s14 = sshll.u32 %s2931_s29, 4  ;;  %s401_s20 = int_to_ptr.vmem [resolvable:$true] %s400_s20  ;;  %s3153_s14 = int_to_ptr.vmem [resolvable:$true] %s413_s14 }
  0x8c   : > { %s3669_s6 = sld [smem:[#allocation31_spill]] }
  0x92   : > { %s2686_s15 = scalar_lea.hbm %s3669_s6, 1024 }
  0x93   : > { %p2687_p1 = scmp.ne.s32.totalorder %s3669_s6, %s2686_s15  ;;  %p2693_p0 = scmp.lt.u32.totalorder %s2686_s15, %s3669_s6 }
  0x95   : > { %p2689_p3 = pnand %p2687_p1, %p3059_p8 }
  0x97   : > { %p2690_p13 = pneg %p2689_p3 }
  0x99   : > { %p2695_p2 = pnand %p2693_p0, %p2690_p13 }
  0x9b   : > { %2698 = shalt.err (!%p2695_p2)
}
  0x9c   : > { %s2699_s26 = scalar_lea.vmem %s401_s20, 1024  ;;  %p2707_p4 = scmp.lt.s32.totalorder %s401_s20, %s401_s20 }
  0x9d   : > { %p2700_p5 = scmp.ne.s32.totalorder %s401_s20, %s2699_s26  ;;  %p2708_p10 = scmp.lt.s32.totalorder %s2699_s26, %s2699_s26 }
  0x9f   : > { %p2702_p7 = pnand %p2700_p5, %p3059_p8  ;;  %p2709_p11 = por %p2708_p10, %p2707_p4 }
  0xa1   : > { %p2703_p9 = pneg %p2702_p7 }
  0xa3   : > { %p2710_p12 = pnand %p2709_p11, %p2703_p9 }
  0xa5   : > { %2713 = shalt.err (!%p2710_p12)
}
  0xa6   : > { %s3670_s17 = smov 4   ;;  %s3671_s18 = smov 64  }
  0xa7   : > { %2357 = dma.hbm_to_vmem [thread:$0]  (!%p3043_p6), %s3669_s6, 1024, %s401_s20, [#allocation12], %s3671_s18, %s3671_s18, %s3670_s17  }
  0xa8   : > { %s3672_s7 = sld [smem:[#allocation32_spill]] }
  0xae   : > { %s2714_s16 = scalar_lea.hbm %s3672_s7, 1024 }
  0xaf   : > { %p2715_p1 = scmp.ne.s32.totalorder %s3672_s7, %s2714_s16  ;;  %p2721_p0 = scmp.lt.u32.totalorder %s2714_s16, %s3672_s7 }
  0xb1   : > { %p2717_p3 = pnand %p2715_p1, %p3059_p8 }
  0xb3   : > { %p2718_p13 = pneg %p2717_p3 }
  0xb5   : > { %p2723_p2 = pnand %p2721_p0, %p2718_p13 }
  0xb7   : > { %2726 = shalt.err (!%p2723_p2)
}
  0xb8   : > { %s2727_s20 = scalar_lea.vmem %s3153_s14, 1024  ;;  %p2735_p4 = scmp.lt.s32.totalorder %s3153_s14, %s3153_s14 }
  0xb9   : > { %p2728_p5 = scmp.ne.s32.totalorder %s3153_s14, %s2727_s20  ;;  %p2736_p10 = scmp.lt.s32.totalorder %s2727_s20, %s2727_s20 }
  0xbb   : > { %p2730_p7 = pnand %p2728_p5, %p3059_p8  ;;  %p2737_p11 = por %p2736_p10, %p2735_p4 }
  0xbd   : > { %p2731_p9 = pneg %p2730_p7 }
  0xbf   : > { %p2738_p12 = pnand %p2737_p11, %p2731_p9 }
  0xc1   : > { %2741 = shalt.err (!%p2738_p12)
}
  0xc2   : > { %2360 = dma.hbm_to_vmem [thread:$0]  (!%p3043_p6), %s3672_s7, 1024, %s3153_s14, [#allocation15], %s3671_s18, %s3671_s18, %s3670_s17  }
  0xc3   : > { %s2024_s13 = sadd.s32 4294967294, %s2920_s24   ;;  %s3204_s25 = sadd.s32 1, %s2920_s24  }
  0xc4   : > { %s42_s12 = ssub.s32 %s2920_s24, %s3204_s25  ;;  %s45_s19 = sadd.s32 1, %s2916_s23 }
  0xc5   : > { %p43_p8 = scmp.eq.s32.totalorder %s42_s12, 0  ;;  %p52_p1 = scmp.ne.s32.totalorder %s2916_s23, %s2912_s22 }
  0xc6   : > { %p53_p3 = scmp.eq.s32.totalorder %s2920_s24, 0  ;;  %p58_p13 = scmp.ne.s32.totalorder %s2912_s22, %s2908_s21 }
  0xc7   : > { %s3215_s29 = scalar_select %p43_p8, %s2916_s23, %s45_s19  }
  0xc8   : > { %p3217_p0 = por %p53_p3, %p52_p1  ;;  %p3674_p2 = scmp.eq.s32.totalorder %s3027_s27, 0 }
  0xc9   : > { %p297_p5 = scmp.eq.s32.totalorder %s3027_s27, 1  ;;  %p303_p7 = scmp.eq.s32.totalorder %s2024_s13, 1 }
  0xca   : > { %p3223_p6 = por %p3674_p2, %p58_p13  ;;  %p2381_p9 = scmp.lt.s32.totalorder %s2920_s24, 2 }
  0xcb   : > { %s436_s30 = sand.u32 1, %s2916_s23   ;;  %p3230_p4 = por %p297_p5, %p52_p1 }
  0xcc   : > { %p3234_p10 = por %p303_p7, %p58_p13  ;;  %s2033_s11 = sshll.u32 %s436_s30, 4 }
  0xcd   : > { %s3676_s15 = scalar_select %p3230_p4, 1, 0 }
  0xce   : > { %s3677_s10 = scalar_select %p3234_p10, 1, 0 }
  0xcf   : > { %s2146_s20 = sshll.u32 %s2920_s24, 8  ;;  %s440_s13 = scalar_lea.vmem [#allocation2], %s2033_s11 }
  0xd0   : > { %s3242_s12 = scalar_lea.hbm %s3630_s0, %s2146_s20  ;;  %s447_s19 = sshll.u32 %s440_s13, 4  ;;  %s3244_s19 = int_to_ptr.vmem [resolvable:$true] %s447_s19 }
  0xd1   : > { %p3248_p11 = pnand %p2381_p9, %p3217_p0  ;;  %s3255_s26 = scalar_lea.hbm %s3631_s1, %s2146_s20 }
  0xd2   : > { %s461_s9 = scalar_lea.vmem [#allocation5], %s2033_s11  ;;  %s3259_s6 = scalar_lea.sflag [#allocation3], %s436_s30 }
  0xd3   : > { %s3257_s5 = sshll.u32 %s461_s9, 4  ;;  %s2742_s13 = scalar_lea.hbm %s3242_s12, 256  ;;  %s3291_s5 = int_to_ptr.vmem [resolvable:$true] %s3257_s5 }
  0xd4   : > { %p2743_p12 = scmp.ne.s32.totalorder %s3242_s12, %s2742_s13  ;;  %p2744_p8 = pneg %p3248_p11 }
  0xd5   : > { %s2747_s3 = scalar_lea.hbm %s3630_s0, 512  ;;  %p2748_p13 = scmp.lt.u32.totalorder %s3242_s12, %s3630_s0 }
  0xd6   : > { %p2745_p1 = pnand %p2744_p8, %p2743_p12  ;;  %p2749_p0 = scmp.lt.u32.totalorder %s2747_s3, %s2742_s13 }
  0xd7   : > { %p2751_p5 = scmp.lt.u32.totalorder %s2742_s13, %s3242_s12 }
  0xd8   : > { %p2746_p3 = pneg %p2745_p1  ;;  %p2750_p2 = por %p2749_p0, %p2748_p13 }
  0xda   : > { %p2752_p7 = por %p2751_p5, %p2750_p2 }
  0xdc   : > { %p2753_p9 = pnand %p2752_p7, %p2746_p3 }
  0xde   : > { %2756 = shalt.err (!%p2753_p9)
}
  0xdf   : > { %s2757_s30 = scalar_lea.vmem %s3244_s19, 256  ;;  %s2932_s7 = smov [#allocation2]  }
  0xe0   : > { %p2758_p12 = scmp.ne.s32.totalorder %s3244_s19, %s2757_s30  ;;  %s2762_s11 = sshll.u32 %s2932_s7, 4  ;;  %s2763_s11 = int_to_ptr.vmem [resolvable:$false] %s2762_s11 }
  0xe1   : > { %s2764_s9 = scalar_lea.vmem %s2763_s11, 512  ;;  %p2765_p4 = scmp.lt.s32.totalorder %s3244_s19, %s2763_s11 }
  0xe2   : > { %p2760_p1 = pnand %p2758_p12, %p2744_p8  ;;  %p2766_p13 = scmp.lt.s32.totalorder %s2764_s9, %s2757_s30 }
  0xe4   : > { %p2761_p10 = pneg %p2760_p1  ;;  %p2767_p0 = por %p2766_p13, %p2765_p4 }
  0xe6   : > { %p2768_p2 = pnand %p2767_p0, %p2761_p10 }
  0xe8   : > { %2771 = shalt.err (!%p2768_p2)
}
  0xe9   : > { %2364 = dma.hbm_to_vmem [thread:$0]  (!%p3248_p11), %s3242_s12, 256, %s3244_s19, %s3259_s6, %s3671_s18, %s3671_s18, %s3670_s17  }
  0xea   : > { %s457_s13 = sand.u32 1, %s2920_s24   ;;  %s2772_s3 = scalar_lea.hbm %s3255_s26, 256 }
  0xeb   : > { %s3294_s16 = scalar_lea.sflag [#allocation6], %s457_s13  ;;  %p2773_p4 = scmp.ne.s32.totalorder %s3255_s26, %s2772_s3 }
  0xec   : > { %s2777_s30 = scalar_lea.hbm %s3631_s1, 512  ;;  %p2778_p5 = scmp.lt.u32.totalorder %s3255_s26, %s3631_s1 }
  0xed   : > { %p2775_p10 = pnand %p2773_p4, %p2744_p8  ;;  %p2779_p7 = scmp.lt.u32.totalorder %s2777_s30, %s2772_s3 }
  0xee   : > { %p2781_p12 = scmp.lt.u32.totalorder %s2772_s3, %s3255_s26 }
  0xef   : > { %p2776_p3 = pneg %p2775_p10  ;;  %p2780_p9 = por %p2779_p7, %p2778_p5 }
  0xf1   : > { %p2782_p1 = por %p2781_p12, %p2780_p9 }
  0xf3   : > { %p2783_p13 = pnand %p2782_p1, %p2776_p3 }
  0xf5   : > { %2786 = shalt.err (!%p2783_p13)
}
  0xf6   : > { %s2787_s6 = scalar_lea.vmem %s3291_s5, 256  ;;  %s2933_s12 = smov [#allocation5]  }
  0xf7   : > { %p2788_p0 = scmp.ne.s32.totalorder %s3291_s5, %s2787_s6  ;;  %s2792_s19 = sshll.u32 %s2933_s12, 4  ;;  %s2793_s19 = int_to_ptr.vmem [resolvable:$false] %s2792_s19 }
  0xf8   : > { %s2794_s9 = scalar_lea.vmem %s2793_s19, 512  ;;  %p2795_p10 = scmp.lt.s32.totalorder %s3291_s5, %s2793_s19 }
  0xf9   : > { %p2790_p2 = pnand %p2788_p0, %p2744_p8  ;;  %p2796_p5 = scmp.lt.s32.totalorder %s2794_s9, %s2787_s6 }
  0xfb   : > { %p2791_p4 = pneg %p2790_p2  ;;  %p2797_p7 = por %p2796_p5, %p2795_p10 }
  0xfd   : > { %p2798_p9 = pnand %p2797_p7, %p2791_p4 }
  0xff   : > { %2801 = shalt.err (!%p2798_p9)
}
 0x100   : > { %2367 = dma.hbm_to_vmem [thread:$0]  (!%p3248_p11), %s3255_s26, 256, %s3291_s5, %s3294_s16, %s3671_s18, %s3671_s18, %s3670_s17  }
 0x101   : > { %p3679_p8 = scmp.ne.s32.totalorder %s3662_s28, 0 }
 0x102   : > { %s3326_s13 = sand.u32 (!%p3679_p8), 1, %s2912_s22  }
 0x103   : > { %480 = sbr.rel (%p3679_p8) target bundleno = 2454 (0x996), region = 64  ;;  %s2040_s3 = sshll.u32 (!%p3679_p8), %s3326_s13, 4 }
 0x104   : > { %s483_s4 = scalar_lea.sflag (!%p3679_p8), [#allocation3], %s3326_s13  ;;  %s3330_s20 = scalar_lea.vmem (!%p3679_p8), [#allocation2], %s2040_s3 }
 0x10a   : > { %2875 = dma.done.wait (%p3223_p6), %s483_s4, 256  }
 0x10b   : > { %2877 = vsyncadd (%p3223_p6), %s483_s4, 4294967040  ;;  %s491_s2 = sand.u32 1, %s3027_s27   ;;  %s3337_s28 = scalar_lea.vmem [#allocation5], %s2040_s3 }
 0x10c   : > { %s492_s5 = scalar_lea.sflag [#allocation6], %s491_s2 }
 0x10d   : > { %2879 = dma.done.wait (%p3223_p6), %s492_s5, 256  }
 0x10e   : > { %2881 = vsyncadd (%p3223_p6), %s492_s5, 4294967040  ;;  %p3680_p11 = scmp.eq.s32.totalorder %s3027_s27, 0 }
 0x110   : > { %2883 = dma.done.wait (%p3680_p11), [#allocation6], 1024   ;;  %p3681_p3 = pmov %p3680_p11 }
 0x112   : > { %2885 = vsyncadd (%p3681_p3), [#allocation6], 4294966272  ;;  %p3682_p12 = pmov %p3681_p3 }
 0x113   : > { %p3683_p1 = pmov %p3681_p3 }
 0x114   : > { %2887 = dma.done.wait (%p3682_p12), [#allocation9], 3072  }
 0x115   : > { %2889 = vsyncadd (%p3683_p1), [#allocation9], 4294964224  ;;  %p3684_p13 = pmov %p3683_p1 }
 0x116   : > { %p3685_p0 = pmov %p3683_p1 }
 0x117   : > { %2891 = dma.done.wait (%p3684_p13), [#allocation12], 2048  }
 0x118   : > { %2893 = vsyncadd (%p3685_p0), [#allocation12], 4294965248  ;;  %p3686_p6 = pmov %p3685_p0 }
 0x119   : > { %p3687_p2 = pmov %p3685_p0 }
 0x11a   : > { %2895 = dma.done.wait (%p3686_p6), [#allocation15], 1024  }
 0x11b   : > { %2897 = vsyncadd (%p3687_p2), [#allocation15], 4294966272  ;;  %v2436_v0 = vld [vmem:[#allocation7] sm:$0xff]   ;;  %v2437_v1 = vld [vmem:[#allocation7 + $0x8] sm:$0xff]   ;;  %s2049_s2 = sshll.u32 %s3326_s13, 6  ;;  %s2150_s3 = sshll.u32 %s3027_s27, 10 }
 0x11c   : > { %2210 = vmatprep.subr.bf16.mxu0 %v2436_v0  ;;  %v2438_v2 = vld [vmem:[#allocation7 + $0x10] sm:$0xff]   ;;  %v2439_v3 = vld [vmem:[#allocation7 + $0x18] sm:$0xff]   ;;  %v2440_v5 = vld [vmem:[#allocation7 + $0x20] sm:$0xff]   ;;  %s3449_s5 = scalar_lea.vmem [#allocation17], %s2049_s2  ;;  %s3689_s2 = sld [smem:[#allocation36_spill]] }
 0x11d   : > { %2211 = vmatpush3.bf16.msra.mxu0 %v2436_v0  ;;  %v2444_v4 = vld [vmem:[%s3330_s20] sm:$0xff]   ;;  %v2441_v6 = vld [vmem:[#allocation7 + $0x28] sm:$0xff]   ;;  %v2443_v8 = vld [vmem:[#allocation7 + $0x38] sm:$0xff]   ;;  %s1839_s9 = sshll.u32 %s3449_s5, 4  ;;  %s1809_s18 = scalar_lea.sflag [#allocation18], %s3326_s13  ;;  %s3544_s9 = int_to_ptr.vmem [resolvable:$true] %s1839_s9 }
 0x11e   : > { %2212 = vmatprep.subr.bf16.mxu0 %v2437_v1  ;;  %2226 = vmatprep.mubr.bf16.mxu0 %v2444_v4  ;;  %v2442_v7 = vld [vmem:[#allocation7 + $0x30] sm:$0xff]   ;;  %v2445_v9 = vld [vmem:[%s3330_s20 + $0x8] sm:$0xff]   ;;  %v2050_v10 = vld [vmem:[%s3638_s8] ss:$0 sm:$0xff]  ;;  %s3688_s20 = sld [smem:[#allocation33_spill]]  ;;  %p3690_p10 = scmp.ne.s32.totalorder %s3676_s15, 0 }
 0x11f   : > { %v2446_v23 = vld [vmem:[#allocation8] sm:$0xff]   ;;  %v2447_v24 = vld [vmem:[#allocation8 + $0x8] sm:$0xff]   ;;  %v2448_v25 = vld [vmem:[#allocation8 + $0x10] sm:$0xff]   ;;  %s2935_s14 = smov [#allocation17]  }
 0x120   : > { %2230 = vmatprep.subr.bf16.mxu1 %v2446_v23  ;;  %v2449_v26 = vld [vmem:[#allocation8 + $0x18] sm:$0xff]   ;;  %v2450_v27 = vld [vmem:[#allocation8 + $0x20] sm:$0xff]   ;;  %v2451_v28 = vld [vmem:[#allocation8 + $0x28] sm:$0xff]   ;;  %s2806_s26 = sshll.u32 %s2935_s14, 4  ;;  %s2807_s26 = int_to_ptr.vmem [resolvable:$false] %s2806_s26 }
 0x121   : > { %2213 = vmatpush3.bf16.msra.mxu0 %v2437_v1  ;;  %2231 = vmatpush3.bf16.msra.mxu1 %v2446_v23  ;;  %v2452_v29 = vld [vmem:[#allocation8 + $0x30] sm:$0xff]   ;;  %v2453_v30 = vld [vmem:[#allocation8 + $0x38] sm:$0xff]   ;;  %p2809_p9 = scmp.lt.s32.totalorder %s3544_s9, %s2807_s26 }
 0x122   : > { %2214 = vmatprep.subr.bf16.mxu0 %v2438_v2  ;;  %2232 = vmatprep.subr.bf16.mxu1 %v2447_v24  ;;  %s3550_s17 = scalar_lea.hbm %s3689_s2, %s2150_s3 }
 0x125   : > { %2215 = vmatpush3.bf16.msra.mxu0 %v2438_v2  ;;  %2233 = vmatpush3.bf16.msra.mxu1 %v2447_v24  ;;  %v2061_v2 = vld [vmem:[%s3638_s8 + $0x1] ss:$0 sm:$0xff] }
 0x126   : > { %2216 = vmatprep.subr.bf16.mxu0 %v2439_v3  ;;  %2234 = vmatprep.subr.bf16.mxu1 %v2448_v25 }
 0x129   : > { %2217 = vmatpush3.bf16.msra.mxu0 %v2439_v3  ;;  %2235 = vmatpush3.bf16.msra.mxu1 %v2448_v25 }
 0x12a   : > { %2218 = vmatprep.subr.bf16.mxu0 %v2440_v5  ;;  %2236 = vmatprep.subr.bf16.mxu1 %v2449_v26 }
 0x12d   : > { %2219 = vmatpush3.bf16.msra.mxu0 %v2440_v5  ;;  %2237 = vmatpush3.bf16.msra.mxu1 %v2449_v26  ;;  %v2062_v5 = vld [vmem:[%s3638_s8 + $0x2] ss:$0 sm:$0xff] }
 0x12e   : > { %2220 = vmatprep.subr.bf16.mxu0 %v2441_v6  ;;  %2238 = vmatprep.subr.bf16.mxu1 %v2450_v27 }
 0x131   : > { %2221 = vmatpush3.bf16.msra.mxu0 %v2441_v6  ;;  %2239 = vmatpush3.bf16.msra.mxu1 %v2450_v27 }
 0x132   : > { %2222 = vmatprep.subr.bf16.mxu0 %v2442_v7  ;;  %2240 = vmatprep.subr.bf16.mxu1 %v2451_v28 }
 0x135   : > { %2223 = vmatpush3.bf16.msra.mxu0 %v2442_v7  ;;  %2241 = vmatpush3.bf16.msra.mxu1 %v2451_v28 }
 0x136   : > { %2224 = vmatprep.subr.bf16.mxu0 %v2443_v8  ;;  %2242 = vmatprep.subr.bf16.mxu1 %v2452_v29 }
 0x139   : > { %2225 = vmatpush3.bf16.msra.mxu0 %v2443_v8  ;;  %2243 = vmatpush3.bf16.msra.mxu1 %v2452_v29 }
 0x13a   : > { %2244 = vmatprep.subr.bf16.mxu1 %v2453_v30 }
 0x13c   : > { %2227 = vmatmul.mubr.bf16.vlgmr.msra.gmra.mrb[0].mxu0 %v2445_v9 }
 0x13d   : > { %2245 = vmatpush3.bf16.msra.mxu1 %v2453_v30 }
 0x20f   : > { %v2228_v11 = vpop.f32.mrb[0].mxu0 }
 0x210   : > { %v3364_v12 = vadd.f32 %v2228_v11, %v2050_v10  ;;  %v694_v13 = vpop.f32.mrb[1].mxu0 }
 0x211   : > { %v3366_v14 = vadd.f32 %v2050_v10, %v694_v13  ;;  %v2229_v15 = vpop.f32.mrb[2].mxu0 }
 0x212   : > { %715 = vadd.xlane.f32.xlu1 %v3364_v12  ;;  %v697_v16 = vpop.f32.mrb[3].mxu0  ;;  %v3370_v17 = vadd.f32 %v2229_v15, %v2050_v10  ;;  %v726_v22 = vmul.f32 %v3364_v12, %v3364_v12 }
 0x213   : > { %711 = vadd.xlane.f32.xlu0 %v3366_v14  ;;  %v3372_v18 = vadd.f32 %v2050_v10, %v697_v16  ;;  %v724_v20 = vmul.f32 %v3366_v14, %v3366_v14 }
 0x214   : > { %v727_v21 = vmul.f32 %v3370_v17, %v3370_v17 }
 0x215   : > { %v725_v19 = vmul.f32 %v3372_v18, %v3372_v18 }
 0x216   : > { %717 = vadd.xlane.f32.xlu1 %v3370_v17 }
 0x217   : > { %713 = vadd.xlane.f32.xlu0 %v3372_v18 }
 0x21a   : > { %730 = vadd.xlane.f32.xlu1 %v725_v19 }
 0x21b   : > { %728 = vadd.xlane.f32.xlu0 %v724_v20 }
 0x21e   : > { %734 = vadd.xlane.f32.xlu1 %v727_v21 }
 0x21f   : > { %732 = vadd.xlane.f32.xlu0 %v726_v22 }
 0x29f   : > { %v716_v31 = vpop.xlane.xlu1 %715 }
 0x2a0   : > { %v712_v32 = vpop.xlane.xlu0 %711  ;;  %v722_v42 = vmul.f32 0.0078125, %v716_v31 }
 0x2a1   : > { %v720_v35 = vmul.f32 0.0078125, %v712_v32 }
 0x2a2   : > { %v742_v52 = vmul.f32 %v722_v42, %v722_v42  ;;  %v754_v10 = vsub.f32 %v3364_v12, %v722_v42 }
 0x2a3   : > { %v718_v33 = vpop.xlane.xlu1 %717  ;;  %v740_v43 = vmul.f32 %v720_v35, %v720_v35  ;;  %v752_v1 = vsub.f32 %v3366_v14, %v720_v35 }
 0x2a4   : > { %v714_v34 = vpop.xlane.xlu0 %713  ;;  %v723_v39 = vmul.f32 0.0078125, %v718_v33 }
 0x2a5   : > { %v721_v36 = vmul.f32 0.0078125, %v714_v34 }
 0x2a6   : > { %v743_v48 = vmul.f32 %v723_v39, %v723_v39  ;;  %v755_v7 = vsub.f32 %v3370_v17, %v723_v39 }
 0x2a7   : > { %v741_v37 = vmul.f32 %v721_v36, %v721_v36  ;;  %v731_v38 = vpop.xlane.xlu1 %730  ;;  %v753_v63 = vsub.f32 %v3372_v18, %v721_v36 }
 0x2a8   : > { %v737_v40 = vmul.f32 0.0078125, %v731_v38  ;;  %v729_v41 = vpop.xlane.xlu0 %728 }
 0x2a9   : > { %v736_v44 = vmul.f32 0.0078125, %v729_v41 }
 0x2aa   : > { %v745_v45 = vsub.f32 %v737_v40, %v741_v37 }
 0x2ab   : > { %v744_v46 = vsub.f32 %v736_v44, %v740_v43  ;;  %v735_v47 = vpop.xlane.xlu1 %734  ;;  %v2067_v43 = vld [vmem:[%s3638_s8 + $0x3] ss:$0 sm:$0xff] }
 0x2ac   : > { %v749_v49 = vmax.f32 %v745_v45, 0.0  ;;  %v739_v50 = vmul.f32 0.0078125, %v735_v47  ;;  %v733_v51 = vpop.xlane.xlu0 %732 }
 0x2ad   : > { %v748_v53 = vmax.f32 %v744_v46, 0.0  ;;  %v738_v54 = vmul.f32 0.0078125, %v733_v51 }
 0x2ae   : > { %v757_v55 = vadd.f32 1e-05, %v749_v49  ;;  %v747_v56 = vsub.f32 %v739_v50, %v743_v48 }
 0x2af   : > { %v756_v57 = vadd.f32 1e-05, %v748_v53  ;;  %v746_v58 = vsub.f32 %v738_v54, %v742_v52 }
 0x2b0   : > { %2502 = vrsqrt.f32 %v757_v55  ;;  %v751_v59 = vmax.f32 %v747_v56, 0.0  ;;  %v2456_v56 = vld [vmem:[#allocation10 + $0x4] ss:$8 sps:$4 sm:$0xff]  }
 0x2b1   : > { %2504 = vrsqrt.f32 %v756_v57  ;;  %v750_v60 = vmax.f32 %v746_v58, 0.0  ;;  %v2454_v57 = vld [vmem:[#allocation10] ss:$8 sps:$4 sm:$0xff]   ;;  %1140 = vmatprep.subr.bf16.mxu0 %v2456_v56  ;;  %v2459_v58 = vld [vmem:[#allocation10 + $0x14] ss:$8 sps:$4 sm:$0xff]  }
 0x2b2   : > { %v759_v61 = vadd.f32 1e-05, %v751_v59  ;;  %1141 = vmatpush1.bf16.msra.mxu0 %v2454_v57  ;;  %v2457_v59 = vld [vmem:[#allocation10 + $0x10] ss:$8 sps:$4 sm:$0xff]  }
 0x2b3   : > { %v758_v62 = vadd.f32 1e-05, %v750_v60  ;;  %1142 = vmatprep.subr.bf16.mxu0 %v2459_v58  ;;  %v2462_v60 = vld [vmem:[#allocation10 + $0x24] ss:$8 sps:$4 sm:$0xff]  }
 0x2b4   : > { %2506 = vrsqrt.f32 %v759_v61  ;;  %v2460_v61 = vld [vmem:[#allocation10 + $0x20] ss:$8 sps:$4 sm:$0xff]  }
 0x2b5   : > { %2508 = vrsqrt.f32 %v758_v62  ;;  %v2465_v62 = vld [vmem:[#allocation10 + $0x34] ss:$8 sps:$4 sm:$0xff]  }
 0x2b6   : > { %1143 = vmatpush1.bf16.msra.mxu0 %v2457_v59 }
 0x2b7   : > { %1144 = vmatprep.subr.bf16.mxu0 %v2462_v60 }
 0x2ba   : > { %v2503_v0 = vpop.eup %2502  ;;  %1145 = vmatpush1.bf16.msra.mxu0 %v2460_v61 }
 0x2bb   : > { %v2505_v3 = vpop.eup %2504  ;;  %v765_v4 = vmul.f32 %v2503_v0, %v753_v63  ;;  %v2463_v63 = vld [vmem:[#allocation10 + $0x30] ss:$8 sps:$4 sm:$0xff]   ;;  %v2468_v0 = vld [vmem:[#allocation10 + $0x44] ss:$8 sps:$4 sm:$0xff]   ;;  %1146 = vmatprep.subr.bf16.mxu0 %v2465_v62 }
 0x2bc   : > { %v764_v6 = vmul.f32 %v2505_v3, %v752_v1  ;;  %v2466_v1 = vld [vmem:[#allocation10 + $0x40] ss:$8 sps:$4 sm:$0xff]   ;;  %v2934_v3 = vmov 0  }
 0x2bd   : > { %v773_v8 = vmul.f32 %v2061_v2, %v765_v4  ;;  %1172 = vmatprep.mubr.bf16.mxu0 %v2934_v3  ;;  %v2469_v4 = vld [vmem:[#allocation10 + $0x50] ss:$8 sps:$4 sm:$0xff]  }
 0x2be   : > { %v2507_v9 = vpop.eup %2506  ;;  %v772_v11 = vmul.f32 %v2061_v2, %v764_v6  ;;  %1147 = vmatpush1.bf16.msra.mxu0 %v2463_v63  ;;  %v2472_v6 = vld [vmem:[#allocation10 + $0x60] ss:$8 sps:$4 sm:$0xff]  }
 0x2bf   : > { %v2509_v13 = vpop.eup %2508  ;;  %v781_v14 = vadd.f32 %v2062_v5, %v773_v8  ;;  %v767_v15 = vmul.f32 %v2507_v9, %v755_v7  ;;  %1148 = vmatprep.subr.bf16.mxu0 %v2468_v0  ;;  %v2477_v7 = vld [vmem:[#allocation10 + $0x74] ss:$8 sps:$4 sm:$0xff]   ;;  %v2475_v8 = vld [vmem:[#allocation10 + $0x70] ss:$8 sps:$4 sm:$0xff]  }
 0x2c0   : > { %v780_v16 = vadd.f32 %v2062_v5, %v772_v11  ;;  %v766_v18 = vmul.f32 %v2509_v13, %v754_v10 }
 0x2c1   : > { %v789_v19 = vmin.f32 %v781_v14, 0.0  ;;  %v775_v20 = vmul.f32 %v2061_v2, %v767_v15  ;;  %vm785_vm0 = vcmp.gt.f32.partialorder %v781_v14, 0.0 }
 0x2c2   : > { %v788_v21 = vmin.f32 %v780_v16, 0.0  ;;  %v774_v22 = vmul.f32 %v2061_v2, %v766_v18  ;;  %vm784_vm1 = vcmp.gt.f32.partialorder %v780_v16, 0.0  ;;  %v2471_v2 = vld [vmem:[#allocation10 + $0x54] ss:$8 sps:$4 sm:$0xff]   ;;  %1149 = vmatpush1.bf16.msra.mxu0 %v2466_v1 }
 0x2c3   : > { %v794_v23 = vmul.f32 1.442695, %v789_v19  ;;  %v783_v24 = vadd.f32 %v2062_v5, %v775_v20  ;;  %1150 = vmatprep.subr.bf16.mxu0 %v2471_v2 }
 0x2c4   : > { %v792_v25 = vmul.f32 1.442695, %v788_v21  ;;  %v782_v26 = vadd.f32 %v2062_v5, %v774_v22  ;;  %v2474_v5 = vld [vmem:[#allocation10 + $0x64] ss:$8 sps:$4 sm:$0xff]  }
 0x2c5   : > { %2510 = vpow2.f32 %v794_v23  ;;  %v791_v17 = vmin.f32 %v783_v24, 0.0  ;;  %vm787_vm2 = vcmp.gt.f32.partialorder %v783_v24, 0.0 }
 0x2c6   : > { %2512 = vpow2.f32 %v792_v25  ;;  %v790_v27 = vmin.f32 %v782_v26, 0.0  ;;  %vm786_vm3 = vcmp.gt.f32.partialorder %v782_v26, 0.0  ;;  %1151 = vmatpush1.bf16.msra.mxu0 %v2469_v4 }
 0x2c7   : > { %v798_v28 = vmul.f32 1.442695, %v791_v17  ;;  %1152 = vmatprep.subr.bf16.mxu0 %v2474_v5 }
 0x2c8   : > { %v796_v12 = vmul.f32 1.442695, %v790_v27 }
 0x2c9   : > { %2514 = vpow2.f32 %v798_v28 }
 0x2ca   : > { %2516 = vpow2.f32 %v796_v12  ;;  %1153 = vmatpush1.bf16.msra.mxu0 %v2472_v6 }
 0x2cb   : > { %1154 = vmatprep.subr.bf16.mxu0 %v2477_v7 }
 0x2ce   : > { %1155 = vmatpush1.bf16.msra.mxu0 %v2475_v8 }
 0x2cf   : > { %v2511_v29 = vpop.eup %2510 }
 0x2d0   : > { %v2513_v30 = vpop.eup %2512  ;;  %v2064_v31 = vadd.f32 -1.0, %v2511_v29 }
 0x2d1   : > { %v2063_v32 = vadd.f32 -1.0, %v2513_v30 }
 0x2d2   : > { %v3394_v33 = vsel %vm785_vm0, %v781_v14, %v2064_v31 }
 0x2d3   : > { %v2515_v34 = vpop.eup %2514  ;;  %v3396_v35 = vsel %vm784_vm1, %v780_v16, %v2063_v32 }
 0x2d4   : > { %v2517_v36 = vpop.eup %2516  ;;  %v825_v37 = vpack.c.bf16 %v3394_v33, %v3396_v35  ;;  %v2066_v38 = vadd.f32 -1.0, %v2515_v34 }
 0x2d5   : > { %v2065_v39 = vadd.f32 -1.0, %v2517_v36 }
 0x2d6   : > { %2246 = vmatprep.mubr.bf16.mxu1 %v825_v37  ;;  %v3400_v40 = vsel %vm787_vm2, %v783_v24, %v2066_v38 }
 0x2d7   : > { %v3402_v41 = vsel %vm786_vm3, %v782_v26, %v2065_v39 }
 0x2d8   : > { %v826_v42 = vpack.c.bf16 %v3400_v40, %v3402_v41 }
 0x2da   : > { %2247 = vmatmul.mubr.bf16.vlgmr.msra.gmra.mrb[0].mxu1 %v826_v42 }
 0x3ad   : > { %v2248_v44 = vpop.f32.mrb[0].mxu1 }
 0x3ae   : > { %v913_v45 = vpop.f32.mrb[1].mxu1  ;;  %v3419_v52 = vadd.f32 %v2248_v44, %v2067_v43 }
 0x3af   : > { %v3409_v46 = vadd.f32 %v2067_v43, %v913_v45  ;;  %v2249_v47 = vpop.f32.mrb[2].mxu1 }
 0x3b0   : > { %v916_v48 = vpop.f32.mrb[3].mxu1  ;;  %v3421_v53 = vadd.f32 %v2249_v47, %v2067_v43  ;;  %v944_v54 = vmul.f32 %v3419_v52, %v3419_v52 }
 0x3b1   : > { %v3411_v49 = vadd.f32 %v2067_v43, %v916_v48  ;;  %930 = vadd.xlane.f32.xlu0 %v3409_v46  ;;  %v942_v50 = vmul.f32 %v3409_v46, %v3409_v46  ;;  %v2076_v48 = vld [vmem:[%s3638_s8 + $0x4] ss:$0 sm:$0xff] }
 0x3b2   : > { %v945_v55 = vmul.f32 %v3421_v53, %v3421_v53 }
 0x3b3   : > { %932 = vadd.xlane.f32.xlu1 %v3411_v49  ;;  %v943_v51 = vmul.f32 %v3411_v49, %v3411_v49 }
 0x3b5   : > { %946 = vadd.xlane.f32.xlu0 %v942_v50 }
 0x3b7   : > { %948 = vadd.xlane.f32.xlu1 %v943_v51 }
 0x3b9   : > { %934 = vadd.xlane.f32.xlu0 %v3419_v52 }
 0x3bb   : > { %936 = vadd.xlane.f32.xlu1 %v3421_v53 }
 0x3bd   : > { %950 = vadd.xlane.f32.xlu0 %v944_v54 }
 0x3bf   : > { %952 = vadd.xlane.f32.xlu1 %v945_v55  ;;  %v2077_v55 = vld [vmem:[%s3638_s8 + $0x5] ss:$0 sm:$0xff] }
 0x43e   : > { %v931_v9 = vpop.xlane.xlu0 %930 }
 0x43f   : > { %v938_v10 = vmul.f32 0.0078125, %v931_v9 }
 0x440   : > { %v933_v11 = vpop.xlane.xlu1 %932 }
 0x441   : > { %v939_v13 = vmul.f32 0.0078125, %v933_v11  ;;  %v958_v15 = vmul.f32 %v938_v10, %v938_v10  ;;  %v970_v45 = vsub.f32 %v3409_v46, %v938_v10 }
 0x442   : > { %v947_v14 = vpop.xlane.xlu0 %946 }
 0x443   : > { %v954_v16 = vmul.f32 0.0078125, %v947_v14  ;;  %v959_v19 = vmul.f32 %v939_v13, %v939_v13  ;;  %v971_v50 = vsub.f32 %v3411_v49, %v939_v13 }
 0x444   : > { %v949_v18 = vpop.xlane.xlu1 %948 }
 0x445   : > { %v962_v20 = vsub.f32 %v954_v16, %v958_v15  ;;  %v955_v21 = vmul.f32 0.0078125, %v949_v18 }
 0x446   : > { %v935_v22 = vpop.xlane.xlu0 %934 }
 0x447   : > { %v966_v23 = vmax.f32 %v962_v20, 0.0  ;;  %v963_v24 = vsub.f32 %v955_v21, %v959_v19  ;;  %v940_v25 = vmul.f32 0.0078125, %v935_v22 }
 0x448   : > { %v937_v26 = vpop.xlane.xlu1 %936 }
 0x449   : > { %v974_v17 = vadd.f32 1e-05, %v966_v23  ;;  %v967_v27 = vmax.f32 %v963_v24, 0.0  ;;  %v941_v28 = vmul.f32 0.0078125, %v937_v26  ;;  %v960_v30 = vmul.f32 %v940_v25, %v940_v25 }
 0x44a   : > { %v951_v12 = vpop.xlane.xlu0 %950  ;;  %v972_v46 = vsub.f32 %v3419_v52, %v940_v25 }
 0x44b   : > { %2518 = vrsqrt.f32 %v974_v17  ;;  %v975_v29 = vadd.f32 1e-05, %v967_v27  ;;  %v956_v31 = vmul.f32 0.0078125, %v951_v12  ;;  %v961_v34 = vmul.f32 %v941_v28, %v941_v28 }
 0x44c   : > { %v953_v32 = vpop.xlane.xlu1 %952  ;;  %v973_v63 = vsub.f32 %v3421_v53, %v941_v28 }
 0x44d   : > { %2520 = vrsqrt.f32 %v975_v29  ;;  %v964_v36 = vsub.f32 %v956_v31, %v960_v30  ;;  %v957_v37 = vmul.f32 0.0078125, %v953_v32  ;;  %v2480_v30 = vld [vmem:[#allocation11 + $0x10] sm:$0xff]   ;;  %v2482_v31 = vld [vmem:[#allocation11 + $0x20] sm:$0xff]   ;;  %v2483_v32 = vld [vmem:[#allocation11 + $0x28] sm:$0xff]  }
 0x44f   : > { %v968_v38 = vmax.f32 %v964_v36, 0.0  ;;  %v965_v39 = vsub.f32 %v957_v37, %v961_v34  ;;  %v1050_v34 = vlaneseq }
 0x451   : > { %v976_v42 = vadd.f32 1e-05, %v968_v38  ;;  %v969_v43 = vmax.f32 %v965_v39, 0.0  ;;  %v1051_v36 = vshrl.u32 %v1050_v34, 7  ;;  %v1030_v38 = vld [vmem:[%s3688_s20] sm:$0x3] }
 0x453   : > { %2522 = vrsqrt.f32 %v976_v42  ;;  %v977_v44 = vadd.f32 1e-05, %v969_v43  ;;  %v1052_v37 = vsub.s32 0, %v1051_v36  ;;  %v1056_v39 = vsub.s32 1, %v1051_v36 }
 0x455   : > { %v2519_v47 = vpop.eup %2518  ;;  %2524 = vrsqrt.f32 %v977_v44  ;;  %v1053_v42 = vrot.slane %v1030_v38, %v1052_v37  ;;  %v1057_v43 = vrot.slane %v1030_v38, %v1056_v39 }
 0x456   : > { %v982_v51 = vmul.f32 %v2519_v47, %v970_v45 }
 0x457   : > { %v2521_v54 = vpop.eup %2520 }
 0x458   : > { %v983_v56 = vmul.f32 %v2521_v54, %v971_v50  ;;  %v990_v57 = vmul.f32 %v2076_v48, %v982_v51 }
 0x45a   : > { %v991_v58 = vmul.f32 %v2076_v48, %v983_v56  ;;  %v998_v59 = vadd.f32 %v2077_v55, %v990_v57 }
 0x45c   : > { %v999_v60 = vadd.f32 %v2077_v55, %v991_v58  ;;  %v1006_v61 = vmin.f32 %v998_v59, 0.0  ;;  %vm1002_vm4 = vcmp.gt.f32.partialorder %v998_v59, 0.0 }
 0x45d   : > { %v2523_v62 = vpop.eup %2522 }
 0x45e   : > { %v984_v0 = vmul.f32 %v2523_v62, %v972_v46  ;;  %v1007_v1 = vmin.f32 %v999_v60, 0.0  ;;  %v1010_v49 = vmul.f32 1.442695, %v1006_v61  ;;  %vm1003_vm5 = vcmp.gt.f32.partialorder %v999_v60, 0.0 }
 0x45f   : > { %v2525_v2 = vpop.eup %2524 }
 0x460   : > { %v985_v4 = vmul.f32 %v2525_v2, %v973_v63  ;;  %2526 = vpow2.f32 %v1010_v49  ;;  %v1012_v5 = vmul.f32 1.442695, %v1007_v1  ;;  %v992_v6 = vmul.f32 %v2076_v48, %v984_v0 }
 0x462   : > { %2528 = vpow2.f32 %v1012_v5  ;;  %v993_v7 = vmul.f32 %v2076_v48, %v985_v4  ;;  %v1000_v8 = vadd.f32 %v2077_v55, %v992_v6 }
 0x464   : > { %v1001_v9 = vadd.f32 %v2077_v55, %v993_v7  ;;  %v1008_v10 = vmin.f32 %v1000_v8, 0.0  ;;  %vm1004_vm6 = vcmp.gt.f32.partialorder %v1000_v8, 0.0 }
 0x466   : > { %v1009_v11 = vmin.f32 %v1001_v9, 0.0  ;;  %v1014_v52 = vmul.f32 1.442695, %v1008_v10  ;;  %vm1005_vm7 = vcmp.gt.f32.partialorder %v1001_v9, 0.0 }
 0x468   : > { %2530 = vpow2.f32 %v1014_v52  ;;  %v1016_v13 = vmul.f32 1.442695, %v1009_v11  ;;  %v2152_v52 = vld [vmem:[%s3337_s28] sm:$0xff]  }
 0x46a   : > { %v2527_v14 = vpop.eup %2526  ;;  %2532 = vpow2.f32 %v1016_v13 }
 0x46b   : > { %v2078_v53 = vadd.f32 -1.0, %v2527_v14 }
 0x46c   : > { %v2529_v15 = vpop.eup %2528 }
 0x46d   : > { %v2079_v16 = vadd.f32 -1.0, %v2529_v15  ;;  %v1022_v18 = vsel %vm1002_vm4, %v998_v59, %v2078_v53  ;;  %v2153_v53 = vunpack.c.l.bf16 %v2152_v52 }
 0x46e   : > { %v1026_v20 = vadd.f32 %v1022_v18, %v3396_v35  ;;  %v2478_v35 = vld [vmem:[#allocation11] sm:$0xff]  }
 0x46f   : > { %v1023_v19 = vsel %vm1003_vm5, %v999_v60, %v2079_v16  ;;  %2250 = vmatprep.subr.bf16.mxu1 %v2478_v35  ;;  %v2154_v16 = vunpack.c.h.bf16 %v2152_v52 }
 0x470   : > { %v1027_v21 = vadd.f32 %v1023_v19, %v3394_v33  ;;  %2251 = vmatpush3.bf16.msra.mxu1 %v2478_v35  ;;  %v2479_v33 = vld [vmem:[#allocation11 + $0x8] sm:$0xff]  }
 0x471   : > { %2252 = vmatprep.subr.bf16.mxu1 %v2479_v33 }
 0x472   : > { %v2531_v22 = vpop.eup %2530  ;;  %v1047_v23 = vpack.c.bf16 %v1027_v21, %v1026_v20  ;;  %v2159_v21 = vld [vmem:[%s3337_s28 + $0x8] sm:$0xff]   ;;  %s2802_s28 = scalar_lea.vmem %s3544_s9, 1024 }
 0x473   : > { %v2080_v24 = vadd.f32 -1.0, %v2531_v22  ;;  %p2803_p4 = scmp.ne.s32.totalorder %s3544_s9, %s2802_s28 }
 0x474   : > { %v2533_v25 = vpop.eup %2532  ;;  %1173 = vmatmul.mubr.bf16.vlgmr.msra.gmra.mrb[4].mxu0 %v1047_v23  ;;  %2253 = vmatpush3.bf16.msra.mxu1 %v2479_v33 }
 0x475   : > { %1182 = vmatprep.mubr.bf16.mxu0 %v2934_v3  ;;  %v2081_v26 = vadd.f32 -1.0, %v2533_v25  ;;  %v1024_v17 = vsel %vm1004_vm6, %v1000_v8, %v2080_v24  ;;  %2254 = vmatprep.subr.bf16.mxu1 %v2480_v30  ;;  %v2481_v3 = vld [vmem:[#allocation11 + $0x18] sm:$0xff]   ;;  %v2157_v25 = vunpack.c.l.bf16 %v2159_v21  ;;  %p2804_p5 = pnand %p2803_p4, %p3690_p10 }
 0x476   : > { %v1028_v28 = vadd.f32 %v1024_v17, %v3402_v41  ;;  %v2485_v41 = vld [vmem:[#allocation11 + $0x38] sm:$0xff]   ;;  %v2158_v17 = vunpack.c.h.bf16 %v2159_v21 }
 0x477   : > { %v1025_v27 = vsel %vm1005_vm7, %v1001_v9, %v2081_v26  ;;  %p2805_p7 = pneg %p2804_p5 }
 0x478   : > { %v1029_v12 = vadd.f32 %v1025_v27, %v3400_v40  ;;  %2255 = vmatpush3.bf16.msra.mxu1 %v2480_v30  ;;  %v2484_v40 = vld [vmem:[#allocation11 + $0x30] sm:$0xff]  }
 0x479   : > { %2256 = vmatprep.subr.bf16.mxu1 %v2481_v3 }
 0x47a   : > { %v1048_v29 = vpack.c.bf16 %v1029_v12, %v1028_v28 }
 0x47c   : > { %1183 = vmatmul.mubr.bf16.gmra.mrb[8].mxu0 %v1048_v29  ;;  %2257 = vmatpush3.bf16.msra.mxu1 %v2481_v3  ;;  %v2098_v3 = vld [vmem:[%s3638_s8 + $0x6] ss:$0 sm:$0xff] }
 0x47d   : > { %2258 = vmatprep.subr.bf16.mxu1 %v2482_v31 }
 0x480   : > { %2259 = vmatpush3.bf16.msra.mxu1 %v2482_v31 }
 0x481   : > { %2260 = vmatprep.subr.bf16.mxu1 %v2483_v32 }
 0x484   : > { %2261 = vmatpush3.bf16.msra.mxu1 %v2483_v32 }
 0x485   : > { %2262 = vmatprep.subr.bf16.mxu1 %v2484_v40 }
 0x488   : > { %2263 = vmatpush3.bf16.msra.mxu1 %v2484_v40 }
 0x489   : > { %2264 = vmatprep.subr.bf16.mxu1 %v2485_v41 }
 0x48c   : > { %2265 = vmatpush3.bf16.msra.mxu1 %v2485_v41 }
 0x547   : > { %v1174_v44 = vpop.f32.mrb[4].mxu0 }
 0x548   : > { %v1175_v45 = vadd.f32 %v1174_v44, %v1053_v42  ;;  %v1176_v47 = vpop.f32.mrb[5].mxu0 }
 0x549   : > { %v1177_v48 = vadd.f32 %v1176_v47, %v1057_v43  ;;  %v1178_v50 = vpop.f32.mrb[6].mxu0  ;;  %v2487_v47 = vld [vmem:[#allocation13 + $0x8] sm:$0xff]  }
 0x54a   : > { %1795 = vst [vmem:[%s3449_s5] sm:$0xff] %v1175_v45  ;;  %v1179_v51 = vadd.f32 %v1178_v50, %v1053_v42  ;;  %v1180_v54 = vpop.f32.mrb[7].mxu0  ;;  %v2489_v50 = vld [vmem:[#allocation13 + $0x18] sm:$0xff]  }
 0x54b   : > { %v1193_v55 = vmax.f32 %v1177_v48, -20.0  ;;  %1796 = vst [vmem:[%s3449_s5 + $0x8] sm:$0xff] %v1177_v48  ;;  %v1181_v56 = vadd.f32 %v1180_v54, %v1057_v43  ;;  %v2488_v48 = vld [vmem:[#allocation13 + $0x10] sm:$0xff]   ;;  %v2491_v54 = vld [vmem:[#allocation13 + $0x28] sm:$0xff]  }
 0x54c   : > { %1797 = vst [vmem:[%s3449_s5 + $0x10] sm:$0xff] %v1179_v51 }
 0x54d   : > { %v1197_v57 = vmin.f32 %v1193_v55, 2.0  ;;  %v1194_v58 = vmax.f32 %v1181_v56, -20.0  ;;  %1798 = vst [vmem:[%s3449_s5 + $0x18] sm:$0xff] %v1181_v56  ;;  %v2492_v55 = vld [vmem:[#allocation13 + $0x30] sm:$0xff]   ;;  %v2493_v56 = vld [vmem:[#allocation13 + $0x38] sm:$0xff]  }
 0x54f   : > { %v1201_v59 = vmul.f32 0.5, %v1197_v57  ;;  %v1198_v46 = vmin.f32 %v1194_v58, 2.0  ;;  %v1184_v60 = vpop.f32.mrb[8].mxu0 }
 0x550   : > { %v1185_v61 = vadd.f32 %v1184_v60, %v1053_v42  ;;  %v1186_v62 = vpop.f32.mrb[9].mxu0 }
 0x551   : > { %v1205_v63 = vmul.f32 1.442695, %v1201_v59  ;;  %v1202_v0 = vmul.f32 0.5, %v1198_v46  ;;  %v1187_v1 = vadd.f32 %v1186_v62, %v1057_v43  ;;  %v1188_v49 = vpop.f32.mrb[10].mxu0 }
 0x552   : > { %1799 = vst [vmem:[%s3449_s5 + $0x20] sm:$0xff] %v1185_v61  ;;  %v1189_v2 = vadd.f32 %v1188_v49, %v1053_v42  ;;  %v1190_v4 = vpop.f32.mrb[11].mxu0 }
 0x553   : > { %2534 = vpow2.f32 %v1205_v63  ;;  %v1207_v5 = vmul.f32 1.442695, %v1202_v0  ;;  %v1195_v6 = vmax.f32 %v1187_v1, -20.0  ;;  %1800 = vst [vmem:[%s3449_s5 + $0x28] sm:$0xff] %v1187_v1  ;;  %v1191_v7 = vadd.f32 %v1190_v4, %v1057_v43 }
 0x554   : > { %1801 = vst [vmem:[%s3449_s5 + $0x30] sm:$0xff] %v1189_v2 }
 0x555   : > { %2536 = vpow2.f32 %v1207_v5  ;;  %v1199_v8 = vmin.f32 %v1195_v6, 2.0  ;;  %v1196_v9 = vmax.f32 %v1191_v7, -20.0  ;;  %1802 = vst [vmem:[%s3449_s5 + $0x38] sm:$0xff] %v1191_v7  ;;  %s2808_s5 = scalar_lea.vmem %s2807_s26, 2048 }
 0x556   : > { %p2810_p8 = scmp.lt.s32.totalorder %s2808_s5, %s2802_s28 }
 0x557   : > { %v1203_v10 = vmul.f32 0.5, %v1199_v8  ;;  %v1200_v11 = vmin.f32 %v1196_v9, 2.0 }
 0x558   : > { %p2811_p11 = por %p2810_p8, %p2809_p9 }
 0x559   : > { %v1209_v13 = vmul.f32 1.442695, %v1203_v10  ;;  %v1204_v14 = vmul.f32 0.5, %v1200_v11 }
 0x55a   : > { %p2812_p3 = pnand %p2811_p11, %p2805_p7 }
 0x55b   : > { %2538 = vpow2.f32 %v1209_v13  ;;  %v1211_v15 = vmul.f32 1.442695, %v1204_v14 }
 0x55d   : > { %v2535_v18 = vpop.eup %2534  ;;  %2540 = vpow2.f32 %v1211_v15 }
 0x55e   : > { %v1221_v19 = vmul.f32 %v2535_v18, %v2153_v53 }
 0x55f   : > { %v2537_v20 = vpop.eup %2536 }
 0x560   : > { %v1222_v22 = vmul.f32 %v2537_v20, %v2154_v16  ;;  %v1225_v23 = vadd.f32 %v1221_v19, %v1175_v45  ;;  %v2486_v45 = vld [vmem:[#allocation13] sm:$0xff]  }
 0x561   : > { %2270 = vmatprep.subr.bf16.mxu0 %v2486_v45 }
 0x562   : > { %v1226_v24 = vadd.f32 %v1222_v22, %v1179_v51  ;;  %2271 = vmatpush3.bf16.msra.mxu0 %v2486_v45  ;;  %v2490_v51 = vld [vmem:[#allocation13 + $0x20] sm:$0xff]  }
 0x563   : > { %2272 = vmatprep.subr.bf16.mxu0 %v2487_v47 }
 0x564   : > { %v1246_v26 = vpack.c.bf16 %v1226_v24, %v1225_v23 }
 0x565   : > { %v2539_v27 = vpop.eup %2538 }
 0x566   : > { %2266 = vmatprep.mubr.bf16.mxu1 %v1246_v26  ;;  %v1223_v28 = vmul.f32 %v2539_v27, %v2157_v25  ;;  %2273 = vmatpush3.bf16.msra.mxu0 %v2487_v47  ;;  %v2107_v26 = vld [vmem:[%s3638_s8 + $0x7] ss:$0 sm:$0xff] }
 0x567   : > { %v2541_v12 = vpop.eup %2540  ;;  %2274 = vmatprep.subr.bf16.mxu0 %v2488_v48 }
 0x568   : > { %v1224_v29 = vmul.f32 %v2541_v12, %v2158_v17  ;;  %v1227_v35 = vadd.f32 %v1223_v28, %v1185_v61  ;;  %v2108_v12 = vld [vmem:[%s3638_s8 + $0x8] ss:$0 sm:$0xff] }
 0x56a   : > { %v1228_v33 = vadd.f32 %v1224_v29, %v1189_v2  ;;  %2275 = vmatpush3.bf16.msra.mxu0 %v2488_v48 }
 0x56b   : > { %2276 = vmatprep.subr.bf16.mxu0 %v2489_v50 }
 0x56c   : > { %v1247_v30 = vpack.c.bf16 %v1228_v33, %v1227_v35 }
 0x56e   : > { %2267 = vmatmul.mubr.bf16.vlgmr.msra.gmra.mrb[4].mxu1 %v1247_v30  ;;  %2277 = vmatpush3.bf16.msra.mxu0 %v2489_v50 }
 0x56f   : > { %2278 = vmatprep.subr.bf16.mxu0 %v2490_v51 }
 0x572   : > { %2279 = vmatpush3.bf16.msra.mxu0 %v2490_v51 }
 0x573   : > { %2280 = vmatprep.subr.bf16.mxu0 %v2491_v54 }
 0x576   : > { %2281 = vmatpush3.bf16.msra.mxu0 %v2491_v54 }
 0x577   : > { %2282 = vmatprep.subr.bf16.mxu0 %v2492_v55 }
 0x57a   : > { %2283 = vmatpush3.bf16.msra.mxu0 %v2492_v55 }
 0x57b   : > { %2284 = vmatprep.subr.bf16.mxu0 %v2493_v56 }
 0x57e   : > { %2285 = vmatpush3.bf16.msra.mxu0 %v2493_v56 }
 0x641   : > { %v2268_v31 = vpop.f32.mrb[4].mxu1 }
 0x642   : > { %v3464_v32 = vadd.f32 %v2268_v31, %v2098_v3  ;;  %v1334_v40 = vpop.f32.mrb[5].mxu1 }
 0x643   : > { %v2269_v41 = vpop.f32.mrb[6].mxu1  ;;  %v3469_v37 = vadd.f32 %v2098_v3, %v1334_v40 }
 0x644   : > { %v3466_v34 = vadd.f32 %v2269_v41, %v2098_v3  ;;  %1355 = vadd.xlane.f32.xlu0 %v3464_v32  ;;  %v1337_v36 = vpop.f32.mrb[7].mxu1  ;;  %v1365_v43 = vmul.f32 %v3464_v32, %v3464_v32 }
 0x645   : > { %v3472_v38 = vadd.f32 %v2098_v3, %v1337_v36  ;;  %v1363_v39 = vmul.f32 %v3469_v37, %v3469_v37 }
 0x646   : > { %1357 = vadd.xlane.f32.xlu1 %v3466_v34  ;;  %v1366_v44 = vmul.f32 %v3466_v34, %v3466_v34 }
 0x647   : > { %v1364_v42 = vmul.f32 %v3472_v38, %v3472_v38 }
 0x648   : > { %1351 = vadd.xlane.f32.xlu0 %v3469_v37 }
 0x64a   : > { %1353 = vadd.xlane.f32.xlu1 %v3472_v38 }
 0x64c   : > { %1367 = vadd.xlane.f32.xlu0 %v1363_v39 }
 0x64e   : > { %1369 = vadd.xlane.f32.xlu1 %v1364_v42 }
 0x650   : > { %1371 = vadd.xlane.f32.xlu0 %v1365_v43 }
 0x652   : > { %1373 = vadd.xlane.f32.xlu1 %v1366_v44 }
 0x6d1   : > { %v1356_v57 = vpop.xlane.xlu0 %1355 }
 0x6d2   : > { %v1361_v63 = vmul.f32 0.0078125, %v1356_v57 }
 0x6d3   : > { %v1358_v58 = vpop.xlane.xlu1 %1357 }
 0x6d4   : > { %v1362_v49 = vmul.f32 0.0078125, %v1358_v58  ;;  %v1381_v8 = vmul.f32 %v1361_v63, %v1361_v63  ;;  %v1393_v29 = vsub.f32 %v3464_v32, %v1361_v63 }
 0x6d5   : > { %v1352_v59 = vpop.xlane.xlu0 %1351 }
 0x6d6   : > { %v1359_v46 = vmul.f32 0.0078125, %v1352_v59  ;;  %v1382_v52 = vmul.f32 %v1362_v49, %v1362_v49  ;;  %v1394_v3 = vsub.f32 %v3466_v34, %v1362_v49 }
 0x6d7   : > { %v1354_v60 = vpop.xlane.xlu1 %1353 }
 0x6d8   : > { %v1360_v61 = vmul.f32 0.0078125, %v1354_v60  ;;  %v1379_v0 = vmul.f32 %v1359_v46, %v1359_v46  ;;  %v1391_v24 = vsub.f32 %v3469_v37, %v1359_v46 }
 0x6d9   : > { %v1368_v62 = vpop.xlane.xlu0 %1367 }
 0x6da   : > { %v1375_v1 = vmul.f32 0.0078125, %v1368_v62  ;;  %v1380_v4 = vmul.f32 %v1360_v61, %v1360_v61  ;;  %v1392_v17 = vsub.f32 %v3472_v38, %v1360_v61 }
 0x6db   : > { %v1370_v2 = vpop.xlane.xlu1 %1369 }
 0x6dc   : > { %v1383_v5 = vsub.f32 %v1375_v1, %v1379_v0  ;;  %v1376_v6 = vmul.f32 0.0078125, %v1370_v2 }
 0x6dd   : > { %v1372_v7 = vpop.xlane.xlu0 %1371 }
 0x6de   : > { %v1387_v9 = vmax.f32 %v1383_v5, 0.0  ;;  %v1384_v10 = vsub.f32 %v1376_v6, %v1380_v4  ;;  %v1377_v11 = vmul.f32 0.0078125, %v1372_v7  ;;  %v2113_v4 = vld [vmem:[%s3638_s8 + $0x9] ss:$0 sm:$0xff] }
 0x6df   : > { %v1374_v13 = vpop.xlane.xlu1 %1373 }
 0x6e0   : > { %v1395_v14 = vadd.f32 1e-05, %v1387_v9  ;;  %v1388_v53 = vmax.f32 %v1384_v10, 0.0  ;;  %v1385_v15 = vsub.f32 %v1377_v11, %v1381_v8  ;;  %v1378_v16 = vmul.f32 0.0078125, %v1374_v13 }
 0x6e2   : > { %2542 = vrsqrt.f32 %v1395_v14  ;;  %v1396_v18 = vadd.f32 1e-05, %v1388_v53  ;;  %v1389_v19 = vmax.f32 %v1385_v15, 0.0  ;;  %v1386_v20 = vsub.f32 %v1378_v16, %v1382_v52  ;;  %v2494_v16 = vld [vmem:[#allocation14] sm:$0xff]  }
 0x6e3   : > { %2290 = vmatprep.subr.bf16.mxu1 %v2494_v16 }
 0x6e4   : > { %2544 = vrsqrt.f32 %v1396_v18  ;;  %v1397_v21 = vadd.f32 1e-05, %v1389_v19  ;;  %v1390_v22 = vmax.f32 %v1386_v20, 0.0  ;;  %2291 = vmatpush3.bf16.msra.mxu1 %v2494_v16  ;;  %v2495_v18 = vld [vmem:[#allocation14 + $0x8] sm:$0xff]   ;;  %v2496_v19 = vld [vmem:[#allocation14 + $0x10] sm:$0xff]   ;;  %v2497_v20 = vld [vmem:[#allocation14 + $0x18] sm:$0xff]  }
 0x6e5   : > { %2292 = vmatprep.subr.bf16.mxu1 %v2495_v18 }
 0x6e6   : > { %2546 = vrsqrt.f32 %v1397_v21  ;;  %v1398_v23 = vadd.f32 1e-05, %v1390_v22  ;;  %v2498_v21 = vld [vmem:[#allocation14 + $0x20] sm:$0xff]   ;;  %v2499_v22 = vld [vmem:[#allocation14 + $0x28] sm:$0xff]  }
 0x6e8   : > { %2548 = vrsqrt.f32 %v1398_v23  ;;  %2293 = vmatpush3.bf16.msra.mxu1 %v2495_v18  ;;  %v2500_v23 = vld [vmem:[#allocation14 + $0x30] sm:$0xff]  }
 0x6e9   : > { %2294 = vmatprep.subr.bf16.mxu1 %v2496_v19 }
 0x6ec   : > { %v2543_v25 = vpop.eup %2542  ;;  %2295 = vmatpush3.bf16.msra.mxu1 %v2496_v19 }
 0x6ed   : > { %v1403_v27 = vmul.f32 %v2543_v25, %v1391_v24  ;;  %2296 = vmatprep.subr.bf16.mxu1 %v2497_v20  ;;  %v2501_v24 = vld [vmem:[#allocation14 + $0x38] sm:$0xff]  }
 0x6ee   : > { %v2545_v28 = vpop.eup %2544 }
 0x6ef   : > { %v1404_v35 = vmul.f32 %v2545_v28, %v1392_v17  ;;  %v1411_v33 = vmul.f32 %v2107_v26, %v1403_v27 }
 0x6f0   : > { %v2547_v30 = vpop.eup %2546  ;;  %2297 = vmatpush3.bf16.msra.mxu1 %v2497_v20 }
 0x6f1   : > { %v1405_v31 = vmul.f32 %v2547_v30, %v1393_v29  ;;  %v1412_v40 = vmul.f32 %v2107_v26, %v1404_v35  ;;  %v1419_v41 = vadd.f32 %v2108_v12, %v1411_v33  ;;  %2298 = vmatprep.subr.bf16.mxu1 %v2498_v21 }
 0x6f2   : > { %v2549_v36 = vpop.eup %2548 }
 0x6f3   : > { %v1406_v37 = vmul.f32 %v2549_v36, %v1394_v3  ;;  %v1420_v39 = vadd.f32 %v2108_v12, %v1412_v40  ;;  %v1427_v38 = vmin.f32 %v1419_v41, 0.0  ;;  %v1413_v42 = vmul.f32 %v2107_v26, %v1405_v31 }
 0x6f4   : > { %vm1423_vm8 = vcmp.gt.f32.partialorder %v1419_v41, 0.0  ;;  %2299 = vmatpush3.bf16.msra.mxu1 %v2498_v21 }
 0x6f5   : > { %v1428_v43 = vmin.f32 %v1420_v39, 0.0  ;;  %v1431_v44 = vmul.f32 1.442695, %v1427_v38  ;;  %v1414_v45 = vmul.f32 %v2107_v26, %v1406_v37  ;;  %v1421_v47 = vadd.f32 %v2108_v12, %v1413_v42  ;;  %2300 = vmatprep.subr.bf16.mxu1 %v2499_v22 }
 0x6f6   : > { %vm1424_vm9 = vcmp.gt.f32.partialorder %v1420_v39, 0.0 }
 0x6f7   : > { %2550 = vpow2.f32 %v1431_v44  ;;  %v1433_v48 = vmul.f32 1.442695, %v1428_v43  ;;  %v1422_v32 = vadd.f32 %v2108_v12, %v1414_v45  ;;  %v1429_v50 = vmin.f32 %v1421_v47, 0.0 }
 0x6f8   : > { %vm1425_vm10 = vcmp.gt.f32.partialorder %v1421_v47, 0.0  ;;  %2301 = vmatpush3.bf16.msra.mxu1 %v2499_v22 }
 0x6f9   : > { %2552 = vpow2.f32 %v1433_v48  ;;  %v1430_v51 = vmin.f32 %v1422_v32, 0.0  ;;  %v1435_v54 = vmul.f32 1.442695, %v1429_v50  ;;  %vm1426_vm11 = vcmp.gt.f32.partialorder %v1422_v32, 0.0  ;;  %2302 = vmatprep.subr.bf16.mxu1 %v2500_v23 }
 0x6fb   : > { %v1437_v34 = vmul.f32 1.442695, %v1430_v51  ;;  %2554 = vpow2.f32 %v1435_v54 }
 0x6fc   : > { %2303 = vmatpush3.bf16.msra.mxu1 %v2500_v23 }
 0x6fd   : > { %2556 = vpow2.f32 %v1437_v34  ;;  %2304 = vmatprep.subr.bf16.mxu1 %v2501_v24 }
 0x700   : > { %2305 = vmatpush3.bf16.msra.mxu1 %v2501_v24 }
 0x701   : > { %v2551_v55 = vpop.eup %2550 }
 0x702   : > { %v2109_v56 = vadd.f32 -1.0, %v2551_v55 }
 0x703   : > { %v2553_v57 = vpop.eup %2552 }
 0x704   : > { %v2110_v58 = vadd.f32 -1.0, %v2553_v57  ;;  %v3494_v46 = vsel %vm1423_vm8, %v1419_v41, %v2109_v56 }
 0x705   : > { %v2555_v59 = vpop.eup %2554 }
 0x706   : > { %v3496_v60 = vsel %vm1424_vm9, %v1420_v39, %v2110_v58  ;;  %v2111_v63 = vadd.f32 -1.0, %v2555_v59 }
 0x707   : > { %v2557_v61 = vpop.eup %2556  ;;  %v1464_v62 = vpack.c.bf16 %v3496_v60, %v3494_v46 }
 0x708   : > { %v2112_v0 = vadd.f32 -1.0, %v2557_v61  ;;  %v3500_v1 = vsel %vm1425_vm10, %v1421_v47, %v2111_v63  ;;  %v2122_v61 = vld [vmem:[%s3638_s8 + $0xa] ss:$0 sm:$0xff] }
 0x709   : > { %2286 = vmatprep.mubr.bf16.mxu0 %v1464_v62 }
 0x70a   : > { %v3502_v49 = vsel %vm1426_vm11, %v1422_v32, %v2112_v0 }
 0x70b   : > { %v1465_v2 = vpack.c.bf16 %v3502_v49, %v3500_v1 }
 0x70d   : > { %2287 = vmatmul.mubr.bf16.vlgmr.msra.gmra.mrb[12].mxu0 %v1465_v2  ;;  %v2123_v2 = vld [vmem:[%s3638_s8 + $0xb] ss:$0 sm:$0xff] }
 0x7e0   : > { %v2288_v5 = vpop.f32.mrb[12].mxu0 }
 0x7e1   : > { %v3509_v6 = vadd.f32 %v2288_v5, %v2113_v4  ;;  %v1552_v7 = vpop.f32.mrb[13].mxu0 }
 0x7e2   : > { %v2289_v8 = vpop.f32.mrb[14].mxu0  ;;  %v3514_v11 = vadd.f32 %v2113_v4, %v1552_v7 }
 0x7e3   : > { %v3511_v9 = vadd.f32 %v2289_v8, %v2113_v4  ;;  %1573 = vadd.xlane.f32.xlu0 %v3509_v6  ;;  %v1555_v10 = vpop.f32.mrb[15].mxu0  ;;  %v1583_v53 = vmul.f32 %v3509_v6, %v3509_v6 }
 0x7e4   : > { %v3517_v52 = vadd.f32 %v2113_v4, %v1555_v10  ;;  %v1581_v13 = vmul.f32 %v3514_v11, %v3514_v11 }
 0x7e5   : > { %1575 = vadd.xlane.f32.xlu1 %v3511_v9  ;;  %v1584_v15 = vmul.f32 %v3511_v9, %v3511_v9 }
 0x7e6   : > { %v1582_v14 = vmul.f32 %v3517_v52, %v3517_v52 }
 0x7e7   : > { %1569 = vadd.xlane.f32.xlu0 %v3514_v11 }
 0x7e9   : > { %1571 = vadd.xlane.f32.xlu1 %v3517_v52 }
 0x7eb   : > { %1585 = vadd.xlane.f32.xlu0 %v1581_v13 }
 0x7ed   : > { %1587 = vadd.xlane.f32.xlu1 %v1582_v14 }
 0x7ef   : > { %1589 = vadd.xlane.f32.xlu0 %v1583_v53 }
 0x7f1   : > { %1591 = vadd.xlane.f32.xlu1 %v1584_v15 }
 0x870   : > { %v1574_v25 = vpop.xlane.xlu0 %1573 }
 0x871   : > { %v1579_v35 = vmul.f32 0.0078125, %v1574_v25 }
 0x872   : > { %v1576_v26 = vpop.xlane.xlu1 %1575 }
 0x873   : > { %v1580_v3 = vmul.f32 0.0078125, %v1576_v26  ;;  %v1599_v39 = vmul.f32 %v1579_v35, %v1579_v35  ;;  %v1611_v4 = vsub.f32 %v3509_v6, %v1579_v35 }
 0x874   : > { %v1570_v17 = vpop.xlane.xlu0 %1569 }
 0x875   : > { %v1577_v27 = vmul.f32 0.0078125, %v1570_v17  ;;  %v1600_v44 = vmul.f32 %v1580_v3, %v1580_v3  ;;  %v1612_v10 = vsub.f32 %v3511_v9, %v1580_v3 }
 0x876   : > { %v1572_v28 = vpop.xlane.xlu1 %1571 }
 0x877   : > { %v1578_v12 = vmul.f32 0.0078125, %v1572_v28  ;;  %v1597_v33 = vmul.f32 %v1577_v27, %v1577_v27  ;;  %v1609_v58 = vsub.f32 %v3514_v11, %v1577_v27 }
 0x878   : > { %v1586_v29 = vpop.xlane.xlu0 %1585 }
 0x879   : > { %v1593_v30 = vmul.f32 0.0078125, %v1586_v29  ;;  %v1598_v40 = vmul.f32 %v1578_v12, %v1578_v12  ;;  %v1610_v62 = vsub.f32 %v3517_v52, %v1578_v12 }
 0x87a   : > { %v1588_v31 = vpop.xlane.xlu1 %1587 }
 0x87b   : > { %v1601_v41 = vsub.f32 %v1593_v30, %v1597_v33  ;;  %v1594_v36 = vmul.f32 0.0078125, %v1588_v31 }
 0x87c   : > { %v1590_v37 = vpop.xlane.xlu0 %1589 }
 0x87d   : > { %v1605_v38 = vmax.f32 %v1601_v41, 0.0  ;;  %v1602_v42 = vsub.f32 %v1594_v36, %v1598_v40  ;;  %v1595_v43 = vmul.f32 0.0078125, %v1590_v37 }
 0x87e   : > { %v1592_v45 = vpop.xlane.xlu1 %1591 }
 0x87f   : > { %v1613_v47 = vadd.f32 1e-05, %v1605_v38  ;;  %v1606_v48 = vmax.f32 %v1602_v42, 0.0  ;;  %v1603_v32 = vsub.f32 %v1595_v43, %v1599_v39  ;;  %v1596_v50 = vmul.f32 0.0078125, %v1592_v45 }
 0x881   : > { %2558 = vrsqrt.f32 %v1613_v47  ;;  %v1614_v51 = vadd.f32 1e-05, %v1606_v48  ;;  %v1607_v54 = vmax.f32 %v1603_v32, 0.0  ;;  %v1604_v34 = vsub.f32 %v1596_v50, %v1600_v44 }
 0x883   : > { %2560 = vrsqrt.f32 %v1614_v51  ;;  %v1615_v55 = vadd.f32 1e-05, %v1607_v54  ;;  %v1608_v56 = vmax.f32 %v1604_v34, 0.0 }
 0x885   : > { %2562 = vrsqrt.f32 %v1615_v55  ;;  %v1616_v57 = vadd.f32 1e-05, %v1608_v56 }
 0x887   : > { %2564 = vrsqrt.f32 %v1616_v57 }
 0x88b   : > { %v2559_v59 = vpop.eup %2558 }
 0x88c   : > { %v1621_v63 = vmul.f32 %v2559_v59, %v1609_v58 }
 0x88d   : > { %v2561_v0 = vpop.eup %2560 }
 0x88e   : > { %v1622_v5 = vmul.f32 %v2561_v0, %v1610_v62  ;;  %v1629_v7 = vmul.f32 %v2122_v61, %v1621_v63 }
 0x88f   : > { %v2563_v8 = vpop.eup %2562 }
 0x890   : > { %v1623_v11 = vmul.f32 %v2563_v8, %v1611_v4  ;;  %v1630_v13 = vmul.f32 %v2122_v61, %v1622_v5  ;;  %v1637_v14 = vadd.f32 %v2123_v2, %v1629_v7 }
 0x891   : > { %v2565_v53 = vpop.eup %2564 }
 0x892   : > { %v1631_v15 = vmul.f32 %v2122_v61, %v1623_v11  ;;  %v1624_v16 = vmul.f32 %v2565_v53, %v1612_v10  ;;  %v1638_v52 = vadd.f32 %v2123_v2, %v1630_v13  ;;  %v1645_v18 = vmin.f32 %v1637_v14, 0.0 }
 0x893   : > { %vm1641_vm12 = vcmp.gt.f32.partialorder %v1637_v14, 0.0 }
 0x894   : > { %v1632_v19 = vmul.f32 %v2122_v61, %v1624_v16  ;;  %v1646_v20 = vmin.f32 %v1638_v52, 0.0  ;;  %v1639_v21 = vadd.f32 %v2123_v2, %v1631_v15  ;;  %v1649_v22 = vmul.f32 1.442695, %v1645_v18 }
 0x895   : > { %vm1642_vm13 = vcmp.gt.f32.partialorder %v1638_v52, 0.0 }
 0x896   : > { %v1651_v23 = vmul.f32 1.442695, %v1646_v20  ;;  %v1640_v24 = vadd.f32 %v2123_v2, %v1632_v19  ;;  %v1647_v6 = vmin.f32 %v1639_v21, 0.0  ;;  %2566 = vpow2.f32 %v1649_v22 }
 0x897   : > { %vm1643_vm14 = vcmp.gt.f32.partialorder %v1639_v21, 0.0 }
 0x898   : > { %2568 = vpow2.f32 %v1651_v23  ;;  %v1648_v25 = vmin.f32 %v1640_v24, 0.0  ;;  %v1653_v26 = vmul.f32 1.442695, %v1647_v6  ;;  %vm1644_vm15 = vcmp.gt.f32.partialorder %v1640_v24, 0.0 }
 0x89a   : > { %2570 = vpow2.f32 %v1653_v26  ;;  %v1655_v9 = vmul.f32 1.442695, %v1648_v25 }
 0x89c   : > { %2572 = vpow2.f32 %v1655_v9 }
 0x8a0   : > { %v2567_v17 = vpop.eup %2566 }
 0x8a1   : > { %v2124_v28 = vadd.f32 -1.0, %v2567_v17 }
 0x8a2   : > { %v2569_v27 = vpop.eup %2568 }
 0x8a3   : > { %v2125_v12 = vadd.f32 -1.0, %v2569_v27  ;;  %v1661_v35 = vsel %vm1641_vm12, %v1637_v14, %v2124_v28 }
 0x8a4   : > { %v2571_v29 = vpop.eup %2570  ;;  %v1665_v31 = vadd.f32 %v1661_v35, %v3494_v46 }
 0x8a5   : > { %v1662_v33 = vsel %vm1642_vm13, %v1638_v52, %v2125_v12  ;;  %v2126_v30 = vadd.f32 -1.0, %v2571_v29 }
 0x8a6   : > { %v2573_v3 = vpop.eup %2572  ;;  %v1666_v40 = vadd.f32 %v1662_v33, %v3496_v60 }
 0x8a7   : > { %v2127_v41 = vadd.f32 -1.0, %v2573_v3  ;;  %v1663_v36 = vsel %vm1643_vm14, %v1639_v21, %v2126_v30 }
 0x8a8   : > { %v1686_v37 = vpack.c.bf16 %v1666_v40, %v1665_v31  ;;  %v1667_v38 = vadd.f32 %v1663_v36, %v3500_v1 }
 0x8a9   : > { %v1664_v39 = vsel %vm1644_vm15, %v1640_v24, %v2127_v41 }
 0x8aa   : > { %2306 = vmatprep.mubr.bf16.mxu1 %v1686_v37  ;;  %v1668_v42 = vadd.f32 %v1664_v39, %v3502_v49 }
 0x8ac   : > { %v1687_v43 = vpack.c.bf16 %v1668_v42, %v1667_v38 }
 0x8ae   : > { %2307 = vmatmul.mubr.bf16.vlgmr.msra.gmra.mrb[8].mxu1 %v1687_v43 }
 0x8af   : > { %2815 = shalt.err (!%p2812_p3)
}
 0x8b0   : > { %s2816_s16 = scalar_lea.hbm %s3550_s17, 1024  ;;  %s2820_s11 = scalar_lea.hbm %s3689_s2, 2048 }
 0x8b1   : > { %p2817_p12 = scmp.ne.s32.totalorder %s3550_s17, %s2816_s16  ;;  %p2821_p0 = scmp.lt.u32.totalorder %s3550_s17, %s3689_s2 }
 0x8b2   : > { %p2822_p6 = scmp.lt.u32.totalorder %s2820_s11, %s2816_s16  ;;  %p2824_p4 = scmp.lt.u32.totalorder %s2816_s16, %s3550_s17 }
 0x8b3   : > { %p2818_p1 = pnand %p2817_p12, %p3690_p10 }
 0x8b4   : > { %p2823_p2 = por %p2822_p6, %p2821_p0 }
 0x8b5   : > { %p2819_p13 = pneg %p2818_p1 }
 0x8b6   : > { %p2825_p5 = por %p2824_p4, %p2823_p2 }
 0x8b8   : > { %p2826_p7 = pnand %p2825_p5, %p2819_p13 }
 0x8ba   : > { %2829 = shalt.err (!%p2826_p7)
}
 0x8bb   : > { %s2936_s19 = smov 256   ;;  %s2937_s3 = smov 16  }
 0x8bc   : > { %2339 = dma.vmem_to_hbm [thread:$0]  (%p3690_p10), %s3544_s9, 1024, %s3550_s17, %s1809_s18, %s2936_s19, %s2936_s19, %s2937_s3  }
 0x8bd   : > { %s2048_s4 = sshll.u32 %s3326_s13, 5  ;;  %s3691_s14 = sld [smem:[#allocation34_spill]] }
 0x8be   : > { %s562_s26 = scalar_lea.vmem [#allocation16], %s2048_s4  ;;  %s2148_s16 = sshll.u32 %s3027_s27, 9 }
 0x8bf   : > { %s1822_s5 = sshll.u32 %s562_s26, 4  ;;  %s3692_s18 = sld [smem:[#allocation35_spill]]  ;;  %s3581_s5 = int_to_ptr.vmem [resolvable:$true] %s1822_s5 }
 0x8c0   : > { %s1804_s27 = scalar_lea.sflag [#allocation4], %s3326_s13  ;;  %s2830_s7 = scalar_lea.vmem %s3581_s5, 512 }
 0x8c1   : > { %p2831_p9 = scmp.ne.s32.totalorder %s3581_s5, %s2830_s7  ;;  %s2938_s11 = smov [#allocation16]  }
 0x8c2   : > { %s2834_s6 = sshll.u32 %s2938_s11, 4  ;;  %s2835_s6 = int_to_ptr.vmem [resolvable:$false] %s2834_s6 }
 0x8c3   : > { %v2128_v46 = vld [vmem:[%s3691_s14] ss:$0 sm:$0xff]  ;;  %p2832_p8 = pnand %p2831_p9, %p3690_p10  ;;  %s2836_s12 = scalar_lea.vmem %s2835_s6, 1024 }
 0x8c4   : > { %p2837_p3 = scmp.lt.s32.totalorder %s3581_s5, %s2835_s6  ;;  %p2838_p12 = scmp.lt.s32.totalorder %s2836_s12, %s2830_s7 }
 0x8c5   : > { %s3586_s30 = scalar_lea.hbm %s3692_s18, %s2148_s16  ;;  %p2833_p11 = pneg %p2832_p8 }
 0x8c6   : > { %p2839_p1 = por %p2838_p12, %p2837_p3 }
 0x8c8   : > { %p2840_p13 = pnand %p2839_p1, %p2833_p11 }
 0x981   : > { %v2308_v60 = vpop.f32.mrb[8].mxu1 }
 0x982   : > { %v1785_v1 = vadd.f32 %v2308_v60, %v2128_v46  ;;  %v1776_v49 = vpop.f32.mrb[9].mxu1 }
 0x983   : > { %v1777_v44 = vadd.f32 %v2128_v46, %v1776_v49  ;;  %v2309_v45 = vpop.f32.mrb[10].mxu1 }
 0x984   : > { %1793 = vst [vmem:[%s562_s26 + $0x10] sm:$0xff] %v1785_v1  ;;  %v1788_v47 = vadd.f32 %v2309_v45, %v2128_v46  ;;  %v1779_v48 = vpop.f32.mrb[11].mxu1 }
 0x985   : > { %1791 = vst [vmem:[%s562_s26] sm:$0xff] %v1777_v44  ;;  %v1780_v32 = vadd.f32 %v2128_v46, %v1779_v48 }
 0x986   : > { %1794 = vst [vmem:[%s562_s26 + $0x18] sm:$0xff] %v1788_v47 }
 0x987   : > { %1792 = vst [vmem:[%s562_s26 + $0x8] sm:$0xff] %v1780_v32 }
 0x988   : > { %2843 = shalt.err (!%p2840_p13)
}
 0x989   : > { %s2844_s19 = scalar_lea.hbm %s3586_s30, 512  ;;  %s2848_s20 = scalar_lea.hbm %s3692_s18, 1024 }
 0x98a   : > { %p2845_p0 = scmp.ne.s32.totalorder %s3586_s30, %s2844_s19  ;;  %p2849_p4 = scmp.lt.u32.totalorder %s3586_s30, %s3692_s18 }
 0x98b   : > { %p2850_p5 = scmp.lt.u32.totalorder %s2848_s20, %s2844_s19  ;;  %p2852_p9 = scmp.lt.u32.totalorder %s2844_s19, %s3586_s30 }
 0x98c   : > { %p2846_p6 = pnand %p2845_p0, %p3690_p10 }
 0x98d   : > { %p2851_p7 = por %p2850_p5, %p2849_p4 }
 0x98e   : > { %p2847_p2 = pneg %p2846_p6 }
 0x98f   : > { %p2853_p8 = por %p2852_p9, %p2851_p7 }
 0x991   : > { %p2854_p11 = pnand %p2853_p8, %p2847_p2 }
 0x993   : > { %2857 = shalt.err (!%p2854_p11)
}
 0x994   : > { %s2939_s26 = smov 128   ;;  %s2940_s16 = smov 8  }
 0x995   : > { %2338 = dma.vmem_to_hbm [thread:$0]  (%p3690_p10), %s3581_s5, 512, %s3586_s30, %s1804_s27, %s2939_s26, %s2939_s26, %s2940_s16  }
 0x996 PF: > { %s1854_s9 = sand.u32 1, %s2908_s21   ;;  %p3693_p3 = scmp.ne.s32.totalorder %s3677_s10, 0 }
 0x997   : > { %p3694_p12 = scmp.ge.s32.totalorder %s2920_s24, 2  ;;  %s1855_s17 = scalar_lea.sflag [#allocation4], %s1854_s9 }
 0x999   : > { %p2369_p1 = pnand %p3694_p12, %p3693_p3 }
 0x99b   : > { %2899 = dma.done.wait (!%p2369_p1), %s1855_s17, 512  }
 0x99c   : > { %2901 = vsyncadd (!%p2369_p1), %s1855_s17, 4294966784  ;;  %s1864_s7 = scalar_lea.sflag [#allocation18], %s1854_s9 }
 0x99d   : > { %2903 = dma.done.wait (!%p2369_p1), %s1864_s7, 1024  }
 0x99e   : > { %2905 = vsyncadd (!%p2369_p1), %s1864_s7, 4294966272  ;;  %p35_p10 = scmp.ge.s32.totalorder %s3204_s25, 4   ;;  %s3695_s21 = smov %s2912_s22 }
 0x99f   : > { %s3696_s22 = smov %s2916_s23  ;;  %s3697_s23 = smov %s3215_s29 }
 0x9a0   : > { %s3698_s24 = smov %s3204_s25  ;;  %37 = sbr.rel (!%p35_p10) target bundleno = 23 (0x17), region = 163 }
 0x9a7   :  { %1869 = vsyncpa [#allocation3], 1 }
 0x9a8   :  { %1871 = vsyncpa [#allocation3 + $0x1], 1 }
 0x9a9   :  { %1872 = vsyncpa [#allocation6], 1 }
 0x9aa   :  { %1874 = vsyncpa [#allocation6 + $0x1], 1 }
 0x9ab   :  { %1875 = vsyncpa [#allocation9], 1 }
 0x9ac   :  { %1876 = vsyncpa [#allocation12], 1 }
 0x9ad   :  { %1877 = vsyncpa [#allocation15], 1 }
 0x9ae   :  { %1878 = vsyncpa [#allocation4], 1 }
 0x9af   :  { %1880 = vsyncpa [#allocation4 + $0x1], 1 }
 0x9b0   :  { %1881 = vsyncpa [#allocation18], 1 }
 0x9b1   :  { %1883 = vsyncpa [#allocation18 + $0x1], 1 }

// kernel: tpu_custom_call.1
= control target key start
LH: loop header
LB: loop body
LE: loop exit
PB: predicated region body
PF: predicated region fallthrough
CT: control target
= control target key end

     0   :  { %s3630_s0 = inlined_call_operand.hbm [shape: bf16[64,128], index: 0, kind: input, shape index: {}]   ;;  %s3631_s1 = inlined_call_operand.hbm [shape: bf16[64,128], index: 1, kind: input, shape index: {}]   ;;  %s3632_s2 = inlined_call_operand.hbm [shape: bf16[128,128], index: 2, kind: input, shape index: {}]   ;;  %s3633_s3 = inlined_call_operand.hbm [shape: bf16[128,128], index: 3, kind: input, shape index: {}]   ;;  %s3634_s4 = inlined_call_operand.hbm [shape: bf16[128,256], index: 4, kind: input, shape index: {}]   ;;  %s3635_s5 = inlined_call_operand.hbm [shape: bf16[128,128], index: 5, kind: input, shape index: {}]   ;;  %s3636_s6 = inlined_call_operand.hbm [shape: bf16[128,128], index: 6, kind: input, shape index: {}]   ;;  %s3637_s7 = inlined_call_operand.hbm [shape: bf16[128,128], index: 7, kind: input, shape index: {}]   ;;  %s3638_s8 = inlined_call_operand.vmem [shape: f32[12,128], index: 8, kind: input, shape index: {}]   ;;  %s3639_s9 = inlined_call_operand.vmem [shape: f32[1,256], index: 9, kind: input, shape index: {}]   ;;  %s3640_s10 = inlined_call_operand.vmem [shape: f32[1,128], index: 10, kind: input, shape index: {}]   ;;  %s3641_s11 = inlined_call_operand.hbm [shape: f32[64,128], index: 11, kind: output, shape index: {0}]   ;;  %s3642_s12 = inlined_call_operand.hbm [shape: f32[64,256], index: 12, kind: output, shape index: {1}]  }
   0x1   :  { %3652 = sst [smem:[#allocation27_spill]] %s3632_s2 }
   0x2   :  { %3653 = sst [smem:[#allocation28_spill]] %s3633_s3 }
   0x3   :  { %3654 = sst [smem:[#allocation29_spill]] %s3634_s4 }
   0x4   :  { %3655 = sst [smem:[#allocation30_spill]] %s3635_s5 }
   0x5   :  { %3656 = sst [smem:[#allocation31_spill]] %s3636_s6 }
   0x6   :  { %3657 = sst [smem:[#allocation32_spill]] %s3637_s7 }
   0x7   :  { %3658 = sst [smem:[#allocation33_spill]] %s3639_s9 }
   0x8   :  { %3659 = sst [smem:[#allocation34_spill]] %s3640_s10 }
   0x9   :  { %3660 = sst [smem:[#allocation35_spill]] %s3641_s11 }
   0xa   :  { %3661 = sst [smem:[#allocation36_spill]] %s3642_s12 }
   0xb   :  { %18 = vsyncpa [#allocation3], 0 }
   0xc   :  { %20 = vsyncpa [#allocation3 + $0x1], 0 }
   0xd   :  { %21 = vsyncpa [#allocation6], 0 }
   0xe   :  { %23 = vsyncpa [#allocation6 + $0x1], 0 }
   0xf   :  { %24 = vsyncpa [#allocation9], 0 }
  0x10   :  { %25 = vsyncpa [#allocation12], 0 }
  0x11   :  { %26 = vsyncpa [#allocation15], 0 }
  0x12   :  { %27 = vsyncpa [#allocation4], 0 }
  0x13   :  { %29 = vsyncpa [#allocation4 + $0x1], 0 }
  0x14   :  { %30 = vsyncpa [#allocation18], 0 }
  0x15   :  { %32 = vsyncpa [#allocation18 + $0x1], 0  ;;  %s3006_s21 = smov 0   ;;  %s3008_s22 = smov 0  }
  0x16   :  { %s3010_s23 = smov 0   ;;  %s3012_s24 = smov 0  }
  0x17 LB: > { %s2922_s25 = smov [#allocation7]   ;;  %s3027_s27 = sadd.s32 4294967295, %s2920_s24   ;;  %s2920_s24 = sphi %s3012_s24, %s3698_s24   ;;  %s2916_s23 = sphi %s3010_s23, %s3697_s23   ;;  %s2912_s22 = sphi %s3008_s22, %s3696_s22   ;;  %s2908_s21 = sphi %s3006_s21, %s3695_s21  }
  0x18   : > { %s348_s26 = sshll.u32 %s2922_s25, 4  ;;  %p2025_p0 = scmp.ge.s32.totalorder %s2920_s24, 1  ;;  %s3032_s26 = int_to_ptr.vmem [resolvable:$true] %s348_s26 }
  0x19   : > { %p3645_p1 = scmp.eq.s32.totalorder %s3027_s27, 0  ;;  %p336_p2 = scmp.lt.s32.totalorder %s2920_s24, 3 }
  0x1a   : > { %s2923_s29 = smov [#allocation8]   ;;  %s2924_s14 = smov [#allocation11]  }
  0x1b   : > { %p3034_p3 = pnand %p2025_p0, %p336_p2  ;;  %s361_s30 = sshll.u32 %s2923_s29, 4  ;;  %s3047_s30 = int_to_ptr.vmem [resolvable:$true] %s361_s30 }
  0x1c   : > { %s387_s15 = sshll.u32 %s2924_s14, 4  ;;  %s3664_s2 = sld [smem:[#allocation27_spill]]  ;;  %s3049_s15 = int_to_ptr.vmem [resolvable:$true] %s387_s15 }
  0x1d   : > { %s3662_s28 = scalar_select %p3034_p3, 1, 0 }
  0x1e   : > { %p2342_p5 = pneg %p3034_p3 }
  0x20   : > { %p3043_p6 = pnand %p2342_p5, %p3645_p1 }
  0x22   : > { %s2574_s18 = scalar_lea.hbm %s3664_s2, 1024  ;;  %p3059_p8 = pneg %p3043_p6 }
  0x23   : > { %p2575_p7 = scmp.ne.s32.totalorder %s3664_s2, %s2574_s18  ;;  %p2581_p11 = scmp.lt.u32.totalorder %s2574_s18, %s3664_s2 }
  0x25   : > { %p2577_p9 = pnand %p3059_p8, %p2575_p7 }
  0x27   : > { %p2578_p10 = pneg %p2577_p9 }
  0x29   : > { %p2583_p12 = pnand %p2581_p11, %p2578_p10 }
  0x2b   : > { %2586 = shalt.err (!%p2583_p12)
}
  0x2c   : > { %s2587_s16 = scalar_lea.vmem %s3032_s26, 1024  ;;  %p2595_p5 = scmp.lt.s32.totalorder %s3032_s26, %s3032_s26 }
  0x2d   : > { %p2588_p13 = scmp.ne.s32.totalorder %s3032_s26, %s2587_s16  ;;  %p2596_p4 = scmp.lt.s32.totalorder %s2587_s16, %s2587_s16 }
  0x2f   : > { %p2590_p0 = pnand %p2588_p13, %p3059_p8  ;;  %p2597_p7 = por %p2596_p4, %p2595_p5 }
  0x31   : > { %p2591_p2 = pneg %p2590_p0 }
  0x33   : > { %p2598_p9 = pnand %p2597_p7, %p2591_p2 }
  0x35   : > { %2601 = shalt.err (!%p2598_p9)
}
  0x36   : > { %s3647_s17 = smov 64   ;;  %s3649_s18 = smov 4  }
  0x37   : > { %2345 = dma.hbm_to_vmem [thread:$0]  (!%p3043_p6), %s3664_s2, 1024, %s3032_s26, [#allocation6], %s3647_s17, %s3647_s17, %s3649_s18  }
  0x38   : > { %s3666_s3 = sld [smem:[#allocation28_spill]] }
  0x3e   : > { %s2602_s16 = scalar_lea.hbm %s3666_s3, 1024 }
  0x3f   : > { %p2603_p4 = scmp.ne.s32.totalorder %s3666_s3, %s2602_s16  ;;  %p2609_p12 = scmp.lt.u32.totalorder %s2602_s16, %s3666_s3 }
  0x41   : > { %p2605_p10 = pnand %p2603_p4, %p3059_p8 }
  0x43   : > { %p2606_p11 = pneg %p2605_p10 }
  0x45   : > { %p2611_p13 = pnand %p2609_p12, %p2606_p11 }
  0x47   : > { %2614 = shalt.err (!%p2611_p13)
}
  0x48   : > { %s2615_s26 = scalar_lea.vmem %s3047_s30, 1024  ;;  %p2623_p7 = scmp.lt.s32.totalorder %s3047_s30, %s3047_s30 }
  0x49   : > { %p2616_p0 = scmp.ne.s32.totalorder %s3047_s30, %s2615_s26  ;;  %p2624_p9 = scmp.lt.s32.totalorder %s2615_s26, %s2615_s26 }
  0x4b   : > { %p2618_p2 = pnand %p2616_p0, %p3059_p8  ;;  %p2625_p4 = por %p2624_p9, %p2623_p7 }
  0x4d   : > { %p2619_p5 = pneg %p2618_p2 }
  0x4f   : > { %p2626_p10 = pnand %p2625_p4, %p2619_p5 }
  0x51   : > { %2629 = shalt.err (!%p2626_p10)
}
  0x52   : > { %2348 = dma.hbm_to_vmem [thread:$0]  (!%p3043_p6), %s3666_s3, 1024, %s3047_s30, [#allocation9], %s3647_s17, %s3647_s17, %s3649_s18  }
  0x53   : > { %s3667_s5 = sld [smem:[#allocation30_spill]] }
  0x59   : > { %s2630_s19 = scalar_lea.hbm %s3667_s5, 1024 }
  0x5a   : > { %p2631_p11 = scmp.ne.s32.totalorder %s3667_s5, %s2630_s19  ;;  %p2637_p0 = scmp.lt.u32.totalorder %s2630_s19, %s3667_s5 }
  0x5c   : > { %p2633_p12 = pnand %p2631_p11, %p3059_p8 }
  0x5e   : > { %p2634_p13 = pneg %p2633_p12 }
  0x60   : > { %p2639_p2 = pnand %p2637_p0, %p2634_p13 }
  0x62   : > { %2642 = shalt.err (!%p2639_p2)
}
  0x63   : > { %s2643_s30 = scalar_lea.vmem %s3049_s15, 1024  ;;  %p2651_p4 = scmp.lt.s32.totalorder %s3049_s15, %s3049_s15 }
  0x64   : > { %p2644_p5 = scmp.ne.s32.totalorder %s3049_s15, %s2643_s30  ;;  %p2652_p10 = scmp.lt.s32.totalorder %s2643_s30, %s2643_s30 }
  0x66   : > { %p2646_p7 = pnand %p2644_p5, %p3059_p8  ;;  %p2653_p11 = por %p2652_p10, %p2651_p4 }
  0x68   : > { %p2647_p9 = pneg %p2646_p7 }
  0x6a   : > { %p2654_p12 = pnand %p2653_p11, %p2647_p9 }
  0x6c   : > { %2657 = shalt.err (!%p2654_p12)
}
  0x6d   : > { %2354 = dma.hbm_to_vmem [thread:$0]  (!%p3043_p6), %s3667_s5, 1024, %s3049_s15, [#allocation12], %s3647_s17, %s3647_s17, %s3649_s18  }
  0x6e   : > { %s2927_s10 = smov [#allocation10]   ;;  %s3668_s4 = sld [smem:[#allocation29_spill]] }
  0x6f   : > { %s374_s11 = sshll.u32 %s2927_s10, 4  ;;  %s375_s11 = int_to_ptr.vmem [resolvable:$true] %s374_s11 }
  0x74   : > { %s2658_s20 = scalar_lea.hbm %s3668_s4, 2048 }
  0x75   : > { %p2659_p13 = scmp.ne.s32.totalorder %s3668_s4, %s2658_s20  ;;  %p2665_p5 = scmp.lt.u32.totalorder %s2658_s20, %s3668_s4 }
  0x77   : > { %p2661_p0 = pnand %p2659_p13, %p3059_p8 }
  0x79   : > { %p2662_p2 = pneg %p2661_p0 }
  0x7b   : > { %p2667_p7 = pnand %p2665_p5, %p2662_p2 }
  0x7d   : > { %2670 = shalt.err (!%p2667_p7)
}
  0x7e   : > { %s2671_s15 = scalar_lea.vmem %s375_s11, 2048  ;;  %p2679_p11 = scmp.lt.s32.totalorder %s375_s11, %s375_s11 }
  0x7f   : > { %p2672_p9 = scmp.ne.s32.totalorder %s375_s11, %s2671_s15  ;;  %p2680_p12 = scmp.lt.s32.totalorder %s2671_s15, %s2671_s15 }
  0x81   : > { %p2674_p4 = pnand %p2672_p9, %p3059_p8  ;;  %p2681_p1 = por %p2680_p12, %p2679_p11 }
  0x83   : > { %p2675_p10 = pneg %p2674_p4 }
  0x85   : > { %p2682_p3 = pnand %p2681_p1, %p2675_p10 }
  0x87   : > { %2685 = shalt.err (!%p2682_p3)
}
  0x88   : > { %s2928_s26 = smov 128   ;;  %s2929_s9 = smov 8  }
  0x89   : > { %2351 = dma.hbm_to_vmem [thread:$0]  (!%p3043_p6), %s3668_s4, 2048, %s375_s11, [#allocation9], %s2928_s26, %s2928_s26, %s2929_s9  }
  0x8a   : > { %s2930_s19 = smov [#allocation13]   ;;  %s2931_s29 = smov [#allocation14]  }
  0x8b   : > { %s400_s20 = sshll.u32 %s2930_s19, 4  ;;  %s413_s14 = sshll.u32 %s2931_s29, 4  ;;  %s401_s20 = int_to_ptr.vmem [resolvable:$true] %s400_s20  ;;  %s3153_s14 = int_to_ptr.vmem [resolvable:$true] %s413_s14 }
  0x8c   : > { %s3669_s6 = sld [smem:[#allocation31_spill]] }
  0x92   : > { %s2686_s15 = scalar_lea.hbm %s3669_s6, 1024 }
  0x93   : > { %p2687_p1 = scmp.ne.s32.totalorder %s3669_s6, %s2686_s15  ;;  %p2693_p0 = scmp.lt.u32.totalorder %s2686_s15, %s3669_s6 }
  0x95   : > { %p2689_p3 = pnand %p2687_p1, %p3059_p8 }
  0x97   : > { %p2690_p13 = pneg %p2689_p3 }
  0x99   : > { %p2695_p2 = pnand %p2693_p0, %p2690_p13 }
  0x9b   : > { %2698 = shalt.err (!%p2695_p2)
}
  0x9c   : > { %s2699_s26 = scalar_lea.vmem %s401_s20, 1024  ;;  %p2707_p4 = scmp.lt.s32.totalorder %s401_s20, %s401_s20 }
  0x9d   : > { %p2700_p5 = scmp.ne.s32.totalorder %s401_s20, %s2699_s26  ;;  %p2708_p10 = scmp.lt.s32.totalorder %s2699_s26, %s2699_s26 }
  0x9f   : > { %p2702_p7 = pnand %p2700_p5, %p3059_p8  ;;  %p2709_p11 = por %p2708_p10, %p2707_p4 }
  0xa1   : > { %p2703_p9 = pneg %p2702_p7 }
  0xa3   : > { %p2710_p12 = pnand %p2709_p11, %p2703_p9 }
  0xa5   : > { %2713 = shalt.err (!%p2710_p12)
}
  0xa6   : > { %s3670_s17 = smov 4   ;;  %s3671_s18 = smov 64  }
  0xa7   : > { %2357 = dma.hbm_to_vmem [thread:$0]  (!%p3043_p6), %s3669_s6, 1024, %s401_s20, [#allocation12], %s3671_s18, %s3671_s18, %s3670_s17  }
  0xa8   : > { %s3672_s7 = sld [smem:[#allocation32_spill]] }
  0xae   : > { %s2714_s16 = scalar_lea.hbm %s3672_s7, 1024 }
  0xaf   : > { %p2715_p1 = scmp.ne.s32.totalorder %s3672_s7, %s2714_s16  ;;  %p2721_p0 = scmp.lt.u32.totalorder %s2714_s16, %s3672_s7 }
  0xb1   : > { %p2717_p3 = pnand %p2715_p1, %p3059_p8 }
  0xb3   : > { %p2718_p13 = pneg %p2717_p3 }
  0xb5   : > { %p2723_p2 = pnand %p2721_p0, %p2718_p13 }
  0xb7   : > { %2726 = shalt.err (!%p2723_p2)
}
  0xb8   : > { %s2727_s20 = scalar_lea.vmem %s3153_s14, 1024  ;;  %p2735_p4 = scmp.lt.s32.totalorder %s3153_s14, %s3153_s14 }
  0xb9   : > { %p2728_p5 = scmp.ne.s32.totalorder %s3153_s14, %s2727_s20  ;;  %p2736_p10 = scmp.lt.s32.totalorder %s2727_s20, %s2727_s20 }
  0xbb   : > { %p2730_p7 = pnand %p2728_p5, %p3059_p8  ;;  %p2737_p11 = por %p2736_p10, %p2735_p4 }
  0xbd   : > { %p2731_p9 = pneg %p2730_p7 }
  0xbf   : > { %p2738_p12 = pnand %p2737_p11, %p2731_p9 }
  0xc1   : > { %2741 = shalt.err (!%p2738_p12)
}
  0xc2   : > { %2360 = dma.hbm_to_vmem [thread:$0]  (!%p3043_p6), %s3672_s7, 1024, %s3153_s14, [#allocation15], %s3671_s18, %s3671_s18, %s3670_s17  }
  0xc3   : > { %s2024_s13 = sadd.s32 4294967294, %s2920_s24   ;;  %s3204_s25 = sadd.s32 1, %s2920_s24  }
  0xc4   : > { %s42_s12 = ssub.s32 %s2920_s24, %s3204_s25  ;;  %s45_s19 = sadd.s32 1, %s2916_s23 }
  0xc5   : > { %p43_p8 = scmp.eq.s32.totalorder %s42_s12, 0  ;;  %p52_p1 = scmp.ne.s32.totalorder %s2916_s23, %s2912_s22 }
  0xc6   : > { %p53_p3 = scmp.eq.s32.totalorder %s2920_s24, 0  ;;  %p58_p13 = scmp.ne.s32.totalorder %s2912_s22, %s2908_s21 }
  0xc7   : > { %s3215_s29 = scalar_select %p43_p8, %s2916_s23, %s45_s19  }
  0xc8   : > { %p3217_p0 = por %p53_p3, %p52_p1  ;;  %p3674_p2 = scmp.eq.s32.totalorder %s3027_s27, 0 }
  0xc9   : > { %p297_p5 = scmp.eq.s32.totalorder %s3027_s27, 1  ;;  %p303_p7 = scmp.eq.s32.totalorder %s2024_s13, 1 }
  0xca   : > { %p3223_p6 = por %p3674_p2, %p58_p13  ;;  %p2381_p9 = scmp.lt.s32.totalorder %s2920_s24, 2 }
  0xcb   : > { %s436_s30 = sand.u32 1, %s2916_s23   ;;  %p3230_p4 = por %p297_p5, %p52_p1 }
  0xcc   : > { %p3234_p10 = por %p303_p7, %p58_p13  ;;  %s2033_s11 = sshll.u32 %s436_s30, 4 }
  0xcd   : > { %s3676_s15 = scalar_select %p3230_p4, 1, 0 }
  0xce   : > { %s3677_s10 = scalar_select %p3234_p10, 1, 0 }
  0xcf   : > { %s2146_s20 = sshll.u32 %s2920_s24, 8  ;;  %s440_s13 = scalar_lea.vmem [#allocation2], %s2033_s11 }
  0xd0   : > { %s3242_s12 = scalar_lea.hbm %s3630_s0, %s2146_s20  ;;  %s447_s19 = sshll.u32 %s440_s13, 4  ;;  %s3244_s19 = int_to_ptr.vmem [resolvable:$true] %s447_s19 }
  0xd1   : > { %p3248_p11 = pnand %p2381_p9, %p3217_p0  ;;  %s3255_s26 = scalar_lea.hbm %s3631_s1, %s2146_s20 }
  0xd2   : > { %s461_s9 = scalar_lea.vmem [#allocation5], %s2033_s11  ;;  %s3259_s6 = scalar_lea.sflag [#allocation3], %s436_s30 }
  0xd3   : > { %s3257_s5 = sshll.u32 %s461_s9, 4  ;;  %s2742_s13 = scalar_lea.hbm %s3242_s12, 256  ;;  %s3291_s5 = int_to_ptr.vmem [resolvable:$true] %s3257_s5 }
  0xd4   : > { %p2743_p12 = scmp.ne.s32.totalorder %s3242_s12, %s2742_s13  ;;  %p2744_p8 = pneg %p3248_p11 }
  0xd5   : > { %s2747_s3 = scalar_lea.hbm %s3630_s0, 512  ;;  %p2748_p13 = scmp.lt.u32.totalorder %s3242_s12, %s3630_s0 }
  0xd6   : > { %p2745_p1 = pnand %p2744_p8, %p2743_p12  ;;  %p2749_p0 = scmp.lt.u32.totalorder %s2747_s3, %s2742_s13 }
  0xd7   : > { %p2751_p5 = scmp.lt.u32.totalorder %s2742_s13, %s3242_s12 }
  0xd8   : > { %p2746_p3 = pneg %p2745_p1  ;;  %p2750_p2 = por %p2749_p0, %p2748_p13 }
  0xda   : > { %p2752_p7 = por %p2751_p5, %p2750_p2 }
  0xdc   : > { %p2753_p9 = pnand %p2752_p7, %p2746_p3 }
  0xde   : > { %2756 = shalt.err (!%p2753_p9)
}
  0xdf   : > { %s2757_s30 = scalar_lea.vmem %s3244_s19, 256  ;;  %s2932_s7 = smov [#allocation2]  }
  0xe0   : > { %p2758_p12 = scmp.ne.s32.totalorder %s3244_s19, %s2757_s30  ;;  %s2762_s11 = sshll.u32 %s2932_s7, 4  ;;  %s2763_s11 = int_to_ptr.vmem [resolvable:$false] %s2762_s11 }
  0xe1   : > { %s2764_s9 = scalar_lea.vmem %s2763_s11, 512  ;;  %p2765_p4 = scmp.lt.s32.totalorder %s3244_s19, %s2763_s11 }
  0xe2   : > { %p2760_p1 = pnand %p2758_p12, %p2744_p8  ;;  %p2766_p13 = scmp.lt.s32.totalorder %s2764_s9, %s2757_s30 }
  0xe4   : > { %p2761_p10 = pneg %p2760_p1  ;;  %p2767_p0 = por %p2766_p13, %p2765_p4 }
  0xe6   : > { %p2768_p2 = pnand %p2767_p0, %p2761_p10 }
  0xe8   : > { %2771 = shalt.err (!%p2768_p2)
}
  0xe9   : > { %2364 = dma.hbm_to_vmem [thread:$0]  (!%p3248_p11), %s3242_s12, 256, %s3244_s19, %s3259_s6, %s3671_s18, %s3671_s18, %s3670_s17  }
  0xea   : > { %s457_s13 = sand.u32 1, %s2920_s24   ;;  %s2772_s3 = scalar_lea.hbm %s3255_s26, 256 }
  0xeb   : > { %s3294_s16 = scalar_lea.sflag [#allocation6], %s457_s13  ;;  %p2773_p4 = scmp.ne.s32.totalorder %s3255_s26, %s2772_s3 }
  0xec   : > { %s2777_s30 = scalar_lea.hbm %s3631_s1, 512  ;;  %p2778_p5 = scmp.lt.u32.totalorder %s3255_s26, %s3631_s1 }
  0xed   : > { %p2775_p10 = pnand %p2773_p4, %p2744_p8  ;;  %p2779_p7 = scmp.lt.u32.totalorder %s2777_s30, %s2772_s3 }
  0xee   : > { %p2781_p12 = scmp.lt.u32.totalorder %s2772_s3, %s3255_s26 }
  0xef   : > { %p2776_p3 = pneg %p2775_p10  ;;  %p2780_p9 = por %p2779_p7, %p2778_p5 }
  0xf1   : > { %p2782_p1 = por %p2781_p12, %p2780_p9 }
  0xf3   : > { %p2783_p13 = pnand %p2782_p1, %p2776_p3 }
  0xf5   : > { %2786 = shalt.err (!%p2783_p13)
}
  0xf6   : > { %s2787_s6 = scalar_lea.vmem %s3291_s5, 256  ;;  %s2933_s12 = smov [#allocation5]  }
  0xf7   : > { %p2788_p0 = scmp.ne.s32.totalorder %s3291_s5, %s2787_s6  ;;  %s2792_s19 = sshll.u32 %s2933_s12, 4  ;;  %s2793_s19 = int_to_ptr.vmem [resolvable:$false] %s2792_s19 }
  0xf8   : > { %s2794_s9 = scalar_lea.vmem %s2793_s19, 512  ;;  %p2795_p10 = scmp.lt.s32.totalorder %s3291_s5, %s2793_s19 }
  0xf9   : > { %p2790_p2 = pnand %p2788_p0, %p2744_p8  ;;  %p2796_p5 = scmp.lt.s32.totalorder %s2794_s9, %s2787_s6 }
  0xfb   : > { %p2791_p4 = pneg %p2790_p2  ;;  %p2797_p7 = por %p2796_p5, %p2795_p10 }
  0xfd   : > { %p2798_p9 = pnand %p2797_p7, %p2791_p4 }
  0xff   : > { %2801 = shalt.err (!%p2798_p9)
}
 0x100   : > { %2367 = dma.hbm_to_vmem [thread:$0]  (!%p3248_p11), %s3255_s26, 256, %s3291_s5, %s3294_s16, %s3671_s18, %s3671_s18, %s3670_s17  }
 0x101   : > { %p3679_p8 = scmp.ne.s32.totalorder %s3662_s28, 0 }
 0x102   : > { %s3326_s13 = sand.u32 (!%p3679_p8), 1, %s2912_s22  }
 0x103   : > { %480 = sbr.rel (%p3679_p8) target bundleno = 2454 (0x996), region = 64  ;;  %s2040_s3 = sshll.u32 (!%p3679_p8), %s3326_s13, 4 }
 0x104   : > { %s483_s4 = scalar_lea.sflag (!%p3679_p8), [#allocation3], %s3326_s13  ;;  %s3330_s20 = scalar_lea.vmem (!%p3679_p8), [#allocation2], %s2040_s3 }
 0x10a   : > { %2875 = dma.done.wait (%p3223_p6), %s483_s4, 256  }
 0x10b   : > { %2877 = vsyncadd (%p3223_p6), %s483_s4, 4294967040  ;;  %s491_s2 = sand.u32 1, %s3027_s27   ;;  %s3337_s28 = scalar_lea.vmem [#allocation5], %s2040_s3 }
 0x10c   : > { %s492_s5 = scalar_lea.sflag [#allocation6], %s491_s2 }
 0x10d   : > { %2879 = dma.done.wait (%p3223_p6), %s492_s5, 256  }
 0x10e   : > { %2881 = vsyncadd (%p3223_p6), %s492_s5, 4294967040  ;;  %p3680_p11 = scmp.eq.s32.totalorder %s3027_s27, 0 }
 0x110   : > { %2883 = dma.done.wait (%p3680_p11), [#allocation6], 1024   ;;  %p3681_p3 = pmov %p3680_p11 }
 0x112   : > { %2885 = vsyncadd (%p3681_p3), [#allocation6], 4294966272  ;;  %p3682_p12 = pmov %p3681_p3 }
 0x113   : > { %p3683_p1 = pmov %p3681_p3 }
 0x114   : > { %2887 = dma.done.wait (%p3682_p12), [#allocation9], 3072  }
 0x115   : > { %2889 = vsyncadd (%p3683_p1), [#allocation9], 4294964224  ;;  %p3684_p13 = pmov %p3683_p1 }
 0x116   : > { %p3685_p0 = pmov %p3683_p1 }
 0x117   : > { %2891 = dma.done.wait (%p3684_p13), [#allocation12], 2048  }
 0x118   : > { %2893 = vsyncadd (%p3685_p0), [#allocation12], 4294965248  ;;  %p3686_p6 = pmov %p3685_p0 }
 0x119   : > { %p3687_p2 = pmov %p3685_p0 }
 0x11a   : > { %2895 = dma.done.wait (%p3686_p6), [#allocation15], 1024  }
 0x11b   : > { %2897 = vsyncadd (%p3687_p2), [#allocation15], 4294966272  ;;  %v2436_v0 = vld [vmem:[#allocation7] sm:$0xff]   ;;  %v2437_v1 = vld [vmem:[#allocation7 + $0x8] sm:$0xff]   ;;  %s2049_s2 = sshll.u32 %s3326_s13, 6  ;;  %s2150_s3 = sshll.u32 %s3027_s27, 10 }
 0x11c   : > { %2210 = vmatprep.subr.bf16.mxu0 %v2436_v0  ;;  %v2438_v2 = vld [vmem:[#allocation7 + $0x10] sm:$0xff]   ;;  %v2439_v3 = vld [vmem:[#allocation7 + $0x18] sm:$0xff]   ;;  %v2440_v5 = vld [vmem:[#allocation7 + $0x20] sm:$0xff]   ;;  %s3449_s5 = scalar_lea.vmem [#allocation17], %s2049_s2  ;;  %s3689_s2 = sld [smem:[#allocation36_spill]] }
 0x11d   : > { %2211 = vmatpush3.bf16.msra.mxu0 %v2436_v0  ;;  %v2444_v4 = vld [vmem:[%s3330_s20] sm:$0xff]   ;;  %v2441_v6 = vld [vmem:[#allocation7 + $0x28] sm:$0xff]   ;;  %v2443_v8 = vld [vmem:[#allocation7 + $0x38] sm:$0xff]   ;;  %s1839_s9 = sshll.u32 %s3449_s5, 4  ;;  %s1809_s18 = scalar_lea.sflag [#allocation18], %s3326_s13  ;;  %s3544_s9 = int_to_ptr.vmem [resolvable:$true] %s1839_s9 }
 0x11e   : > { %2212 = vmatprep.subr.bf16.mxu0 %v2437_v1  ;;  %2226 = vmatprep.mubr.bf16.mxu0 %v2444_v4  ;;  %v2442_v7 = vld [vmem:[#allocation7 + $0x30] sm:$0xff]   ;;  %v2445_v9 = vld [vmem:[%s3330_s20 + $0x8] sm:$0xff]   ;;  %v2050_v10 = vld [vmem:[%s3638_s8] ss:$0 sm:$0xff]  ;;  %s3688_s20 = sld [smem:[#allocation33_spill]]  ;;  %p3690_p10 = scmp.ne.s32.totalorder %s3676_s15, 0 }
 0x11f   : > { %v2446_v23 = vld [vmem:[#allocation8] sm:$0xff]   ;;  %v2447_v24 = vld [vmem:[#allocation8 + $0x8] sm:$0xff]   ;;  %v2448_v25 = vld [vmem:[#allocation8 + $0x10] sm:$0xff]   ;;  %s2935_s14 = smov [#allocation17]  }
 0x120   : > { %2230 = vmatprep.subr.bf16.mxu1 %v2446_v23  ;;  %v2449_v26 = vld [vmem:[#allocation8 + $0x18] sm:$0xff]   ;;  %v2450_v27 = vld [vmem:[#allocation8 + $0x20] sm:$0xff]   ;;  %v2451_v28 = vld [vmem:[#allocation8 + $0x28] sm:$0xff]   ;;  %s2806_s26 = sshll.u32 %s2935_s14, 4  ;;  %s2807_s26 = int_to_ptr.vmem [resolvable:$false] %s2806_s26 }
 0x121   : > { %2213 = vmatpush3.bf16.msra.mxu0 %v2437_v1  ;;  %2231 = vmatpush3.bf16.msra.mxu1 %v2446_v23  ;;  %v2452_v29 = vld [vmem:[#allocation8 + $0x30] sm:$0xff]   ;;  %v2453_v30 = vld [vmem:[#allocation8 + $0x38] sm:$0xff]   ;;  %p2809_p9 = scmp.lt.s32.totalorder %s3544_s9, %s2807_s26 }
 0x122   : > { %2214 = vmatprep.subr.bf16.mxu0 %v2438_v2  ;;  %2232 = vmatprep.subr.bf16.mxu1 %v2447_v24  ;;  %s3550_s17 = scalar_lea.hbm %s3689_s2, %s2150_s3 }
 0x125   : > { %2215 = vmatpush3.bf16.msra.mxu0 %v2438_v2  ;;  %2233 = vmatpush3.bf16.msra.mxu1 %v2447_v24  ;;  %v2061_v2 = vld [vmem:[%s3638_s8 + $0x1] ss:$0 sm:$0xff] }
 0x126   : > { %2216 = vmatprep.subr.bf16.mxu0 %v2439_v3  ;;  %2234 = vmatprep.subr.bf16.mxu1 %v2448_v25 }
 0x129   : > { %2217 = vmatpush3.bf16.msra.mxu0 %v2439_v3  ;;  %2235 = vmatpush3.bf16.msra.mxu1 %v2448_v25 }
 0x12a   : > { %2218 = vmatprep.subr.bf16.mxu0 %v2440_v5  ;;  %2236 = vmatprep.subr.bf16.mxu1 %v2449_v26 }
 0x12d   : > { %2219 = vmatpush3.bf16.msra.mxu0 %v2440_v5  ;;  %2237 = vmatpush3.bf16.msra.mxu1 %v2449_v26  ;;  %v2062_v5 = vld [vmem:[%s3638_s8 + $0x2] ss:$0 sm:$0xff] }
 0x12e   : > { %2220 = vmatprep.subr.bf16.mxu0 %v2441_v6  ;;  %2238 = vmatprep.subr.bf16.mxu1 %v2450_v27 }
 0x131   : > { %2221 = vmatpush3.bf16.msra.mxu0 %v2441_v6  ;;  %2239 = vmatpush3.bf16.msra.mxu1 %v2450_v27 }
 0x132   : > { %2222 = vmatprep.subr.bf16.mxu0 %v2442_v7  ;;  %2240 = vmatprep.subr.bf16.mxu1 %v2451_v28 }
 0x135   : > { %2223 = vmatpush3.bf16.msra.mxu0 %v2442_v7  ;;  %2241 = vmatpush3.bf16.msra.mxu1 %v2451_v28 }
 0x136   : > { %2224 = vmatprep.subr.bf16.mxu0 %v2443_v8  ;;  %2242 = vmatprep.subr.bf16.mxu1 %v2452_v29 }
 0x139   : > { %2225 = vmatpush3.bf16.msra.mxu0 %v2443_v8  ;;  %2243 = vmatpush3.bf16.msra.mxu1 %v2452_v29 }
 0x13a   : > { %2244 = vmatprep.subr.bf16.mxu1 %v2453_v30 }
 0x13c   : > { %2227 = vmatmul.mubr.bf16.vlgmr.msra.gmra.mrb[0].mxu0 %v2445_v9 }
 0x13d   : > { %2245 = vmatpush3.bf16.msra.mxu1 %v2453_v30 }
 0x20f   : > { %v2228_v11 = vpop.f32.mrb[0].mxu0 }
 0x210   : > { %v3364_v12 = vadd.f32 %v2228_v11, %v2050_v10  ;;  %v694_v13 = vpop.f32.mrb[1].mxu0 }
 0x211   : > { %v3366_v14 = vadd.f32 %v2050_v10, %v694_v13  ;;  %v2229_v15 = vpop.f32.mrb[2].mxu0 }
 0x212   : > { %715 = vadd.xlane.f32.xlu1 %v3364_v12  ;;  %v697_v16 = vpop.f32.mrb[3].mxu0  ;;  %v3370_v17 = vadd.f32 %v2229_v15, %v2050_v10  ;;  %v726_v22 = vmul.f32 %v3364_v12, %v3364_v12 }
 0x213   : > { %711 = vadd.xlane.f32.xlu0 %v3366_v14  ;;  %v3372_v18 = vadd.f32 %v2050_v10, %v697_v16  ;;  %v724_v20 = vmul.f32 %v3366_v14, %v3366_v14 }
 0x214   : > { %v727_v21 = vmul.f32 %v3370_v17, %v3370_v17 }
 0x215   : > { %v725_v19 = vmul.f32 %v3372_v18, %v3372_v18 }
 0x216   : > { %717 = vadd.xlane.f32.xlu1 %v3370_v17 }
 0x217   : > { %713 = vadd.xlane.f32.xlu0 %v3372_v18 }
 0x21a   : > { %730 = vadd.xlane.f32.xlu1 %v725_v19 }
 0x21b   : > { %728 = vadd.xlane.f32.xlu0 %v724_v20 }
 0x21e   : > { %734 = vadd.xlane.f32.xlu1 %v727_v21 }
 0x21f   : > { %732 = vadd.xlane.f32.xlu0 %v726_v22 }
 0x29f   : > { %v716_v31 = vpop.xlane.xlu1 %715 }
 0x2a0   : > { %v712_v32 = vpop.xlane.xlu0 %711  ;;  %v722_v42 = vmul.f32 0.0078125, %v716_v31 }
 0x2a1   : > { %v720_v35 = vmul.f32 0.0078125, %v712_v32 }
 0x2a2   : > { %v742_v52 = vmul.f32 %v722_v42, %v722_v42  ;;  %v754_v10 = vsub.f32 %v3364_v12, %v722_v42 }
 0x2a3   : > { %v718_v33 = vpop.xlane.xlu1 %717  ;;  %v740_v43 = vmul.f32 %v720_v35, %v720_v35  ;;  %v752_v1 = vsub.f32 %v3366_v14, %v720_v35 }
 0x2a4   : > { %v714_v34 = vpop.xlane.xlu0 %713  ;;  %v723_v39 = vmul.f32 0.0078125, %v718_v33 }
 0x2a5   : > { %v721_v36 = vmul.f32 0.0078125, %v714_v34 }
 0x2a6   : > { %v743_v48 = vmul.f32 %v723_v39, %v723_v39  ;;  %v755_v7 = vsub.f32 %v3370_v17, %v723_v39 }
 0x2a7   : > { %v741_v37 = vmul.f32 %v721_v36, %v721_v36  ;;  %v731_v38 = vpop.xlane.xlu1 %730  ;;  %v753_v63 = vsub.f32 %v3372_v18, %v721_v36 }
 0x2a8   : > { %v737_v40 = vmul.f32 0.0078125, %v731_v38  ;;  %v729_v41 = vpop.xlane.xlu0 %728 }
 0x2a9   : > { %v736_v44 = vmul.f32 0.0078125, %v729_v41 }
 0x2aa   : > { %v745_v45 = vsub.f32 %v737_v40, %v741_v37 }
 0x2ab   : > { %v744_v46 = vsub.f32 %v736_v44, %v740_v43  ;;  %v735_v47 = vpop.xlane.xlu1 %734  ;;  %v2067_v43 = vld [vmem:[%s3638_s8 + $0x3] ss:$0 sm:$0xff] }
 0x2ac   : > { %v749_v49 = vmax.f32 %v745_v45, 0.0  ;;  %v739_v50 = vmul.f32 0.0078125, %v735_v47  ;;  %v733_v51 = vpop.xlane.xlu0 %732 }
 0x2ad   : > { %v748_v53 = vmax.f32 %v744_v46, 0.0  ;;  %v738_v54 = vmul.f32 0.0078125, %v733_v51 }
 0x2ae   : > { %v757_v55 = vadd.f32 1e-05, %v749_v49  ;;  %v747_v56 = vsub.f32 %v739_v50, %v743_v48 }
 0x2af   : > { %v756_v57 = vadd.f32 1e-05, %v748_v53  ;;  %v746_v58 = vsub.f32 %v738_v54, %v742_v52 }
 0x2b0   : > { %2502 = vrsqrt.f32 %v757_v55  ;;  %v751_v59 = vmax.f32 %v747_v56, 0.0  ;;  %v2456_v56 = vld [vmem:[#allocation10 + $0x4] ss:$8 sps:$4 sm:$0xff]  }
 0x2b1   : > { %2504 = vrsqrt.f32 %v756_v57  ;;  %v750_v60 = vmax.f32 %v746_v58, 0.0  ;;  %v2454_v57 = vld [vmem:[#allocation10] ss:$8 sps:$4 sm:$0xff]   ;;  %1140 = vmatprep.subr.bf16.mxu0 %v2456_v56  ;;  %v2459_v58 = vld [vmem:[#allocation10 + $0x14] ss:$8 sps:$4 sm:$0xff]  }
 0x2b2   : > { %v759_v61 = vadd.f32 1e-05, %v751_v59  ;;  %1141 = vmatpush1.bf16.msra.mxu0 %v2454_v57  ;;  %v2457_v59 = vld [vmem:[#allocation10 + $0x10] ss:$8 sps:$4 sm:$0xff]  }
 0x2b3   : > { %v758_v62 = vadd.f32 1e-05, %v750_v60  ;;  %1142 = vmatprep.subr.bf16.mxu0 %v2459_v58  ;;  %v2462_v60 = vld [vmem:[#allocation10 + $0x24] ss:$8 sps:$4 sm:$0xff]  }
 0x2b4   : > { %2506 = vrsqrt.f32 %v759_v61  ;;  %v2460_v61 = vld [vmem:[#allocation10 + $0x20] ss:$8 sps:$4 sm:$0xff]  }
 0x2b5   : > { %2508 = vrsqrt.f32 %v758_v62  ;;  %v2465_v62 = vld [vmem:[#allocation10 + $0x34] ss:$8 sps:$4 sm:$0xff]  }
 0x2b6   : > { %1143 = vmatpush1.bf16.msra.mxu0 %v2457_v59 }
 0x2b7   : > { %1144 = vmatprep.subr.bf16.mxu0 %v2462_v60 }
 0x2ba   : > { %v2503_v0 = vpop.eup %2502  ;;  %1145 = vmatpush1.bf16.msra.mxu0 %v2460_v61 }
 0x2bb   : > { %v2505_v3 = vpop.eup %2504  ;;  %v765_v4 = vmul.f32 %v2503_v0, %v753_v63  ;;  %v2463_v63 = vld [vmem:[#allocation10 + $0x30] ss:$8 sps:$4 sm:$0xff]   ;;  %v2468_v0 = vld [vmem:[#allocation10 + $0x44] ss:$8 sps:$4 sm:$0xff]   ;;  %1146 = vmatprep.subr.bf16.mxu0 %v2465_v62 }
 0x2bc   : > { %v764_v6 = vmul.f32 %v2505_v3, %v752_v1  ;;  %v2466_v1 = vld [vmem:[#allocation10 + $0x40] ss:$8 sps:$4 sm:$0xff]   ;;  %v2934_v3 = vmov 0  }
 0x2bd   : > { %v773_v8 = vmul.f32 %v2061_v2, %v765_v4  ;;  %1172 = vmatprep.mubr.bf16.mxu0 %v2934_v3  ;;  %v2469_v4 = vld [vmem:[#allocation10 + $0x50] ss:$8 sps:$4 sm:$0xff]  }
 0x2be   : > { %v2507_v9 = vpop.eup %2506  ;;  %v772_v11 = vmul.f32 %v2061_v2, %v764_v6  ;;  %1147 = vmatpush1.bf16.msra.mxu0 %v2463_v63  ;;  %v2472_v6 = vld [vmem:[#allocation10 + $0x60] ss:$8 sps:$4 sm:$0xff]  }
 0x2bf   : > { %v2509_v13 = vpop.eup %2508  ;;  %v781_v14 = vadd.f32 %v2062_v5, %v773_v8  ;;  %v767_v15 = vmul.f32 %v2507_v9, %v755_v7  ;;  %1148 = vmatprep.subr.bf16.mxu0 %v2468_v0  ;;  %v2477_v7 = vld [vmem:[#allocation10 + $0x74] ss:$8 sps:$4 sm:$0xff]   ;;  %v2475_v8 = vld [vmem:[#allocation10 + $0x70] ss:$8 sps:$4 sm:$0xff]  }
 0x2c0   : > { %v780_v16 = vadd.f32 %v2062_v5, %v772_v11  ;;  %v766_v18 = vmul.f32 %v2509_v13, %v754_v10 }
 0x2c1   : > { %v789_v19 = vmin.f32 %v781_v14, 0.0  ;;  %v775_v20 = vmul.f32 %v2061_v2, %v767_v15  ;;  %vm785_vm0 = vcmp.gt.f32.partialorder %v781_v14, 0.0 }
 0x2c2   : > { %v788_v21 = vmin.f32 %v780_v16, 0.0  ;;  %v774_v22 = vmul.f32 %v2061_v2, %v766_v18  ;;  %vm784_vm1 = vcmp.gt.f32.partialorder %v780_v16, 0.0  ;;  %v2471_v2 = vld [vmem:[#allocation10 + $0x54] ss:$8 sps:$4 sm:$0xff]   ;;  %1149 = vmatpush1.bf16.msra.mxu0 %v2466_v1 }
 0x2c3   : > { %v794_v23 = vmul.f32 1.442695, %v789_v19  ;;  %v783_v24 = vadd.f32 %v2062_v5, %v775_v20  ;;  %1150 = vmatprep.subr.bf16.mxu0 %v2471_v2 }
 0x2c4   : > { %v792_v25 = vmul.f32 1.442695, %v788_v21  ;;  %v782_v26 = vadd.f32 %v2062_v5, %v774_v22  ;;  %v2474_v5 = vld [vmem:[#allocation10 + $0x64] ss:$8 sps:$4 sm:$0xff]  }
 0x2c5   : > { %2510 = vpow2.f32 %v794_v23  ;;  %v791_v17 = vmin.f32 %v783_v24, 0.0  ;;  %vm787_vm2 = vcmp.gt.f32.partialorder %v783_v24, 0.0 }
 0x2c6   : > { %2512 = vpow2.f32 %v792_v25  ;;  %v790_v27 = vmin.f32 %v782_v26, 0.0  ;;  %vm786_vm3 = vcmp.gt.f32.partialorder %v782_v26, 0.0  ;;  %1151 = vmatpush1.bf16.msra.mxu0 %v2469_v4 }
 0x2c7   : > { %v798_v28 = vmul.f32 1.442695, %v791_v17  ;;  %1152 = vmatprep.subr.bf16.mxu0 %v2474_v5 }
 0x2c8   : > { %v796_v12 = vmul.f32 1.442695, %v790_v27 }
 0x2c9   : > { %2514 = vpow2.f32 %v798_v28 }
 0x2ca   : > { %2516 = vpow2.f32 %v796_v12  ;;  %1153 = vmatpush1.bf16.msra.mxu0 %v2472_v6 }
 0x2cb   : > { %1154 = vmatprep.subr.bf16.mxu0 %v2477_v7 }
 0x2ce   : > { %1155 = vmatpush1.bf16.msra.mxu0 %v2475_v8 }
 0x2cf   : > { %v2511_v29 = vpop.eup %2510 }
 0x2d0   : > { %v2513_v30 = vpop.eup %2512  ;;  %v2064_v31 = vadd.f32 -1.0, %v2511_v29 }
 0x2d1   : > { %v2063_v32 = vadd.f32 -1.0, %v2513_v30 }
 0x2d2   : > { %v3394_v33 = vsel %vm785_vm0, %v781_v14, %v2064_v31 }
 0x2d3   : > { %v2515_v34 = vpop.eup %2514  ;;  %v3396_v35 = vsel %vm784_vm1, %v780_v16, %v2063_v32 }
 0x2d4   : > { %v2517_v36 = vpop.eup %2516  ;;  %v825_v37 = vpack.c.bf16 %v3394_v33, %v3396_v35  ;;  %v2066_v38 = vadd.f32 -1.0, %v2515_v34 }
 0x2d5   : > { %v2065_v39 = vadd.f32 -1.0, %v2517_v36 }
 0x2d6   : > { %2246 = vmatprep.mubr.bf16.mxu1 %v825_v37  ;;  %v3400_v40 = vsel %vm787_vm2, %v783_v24, %v2066_v38 }
 0x2d7   : > { %v3402_v41 = vsel %vm786_vm3, %v782_v26, %v2065_v39 }
 0x2d8   : > { %v826_v42 = vpack.c.bf16 %v3400_v40, %v3402_v41 }
 0x2da   : > { %2247 = vmatmul.mubr.bf16.vlgmr.msra.gmra.mrb[0].mxu1 %v826_v42 }
 0x3ad   : > { %v2248_v44 = vpop.f32.mrb[0].mxu1 }
 0x3ae   : > { %v913_v45 = vpop.f32.mrb[1].mxu1  ;;  %v3419_v52 = vadd.f32 %v2248_v44, %v2067_v43 }
 0x3af   : > { %v3409_v46 = vadd.f32 %v2067_v43, %v913_v45  ;;  %v2249_v47 = vpop.f32.mrb[2].mxu1 }
 0x3b0   : > { %v916_v48 = vpop.f32.mrb[3].mxu1  ;;  %v3421_v53 = vadd.f32 %v2249_v47, %v2067_v43  ;;  %v944_v54 = vmul.f32 %v3419_v52, %v3419_v52 }
 0x3b1   : > { %v3411_v49 = vadd.f32 %v2067_v43, %v916_v48  ;;  %930 = vadd.xlane.f32.xlu0 %v3409_v46  ;;  %v942_v50 = vmul.f32 %v3409_v46, %v3409_v46  ;;  %v2076_v48 = vld [vmem:[%s3638_s8 + $0x4] ss:$0 sm:$0xff] }
 0x3b2   : > { %v945_v55 = vmul.f32 %v3421_v53, %v3421_v53 }
 0x3b3   : > { %932 = vadd.xlane.f32.xlu1 %v3411_v49  ;;  %v943_v51 = vmul.f32 %v3411_v49, %v3411_v49 }
 0x3b5   : > { %946 = vadd.xlane.f32.xlu0 %v942_v50 }
 0x3b7   : > { %948 = vadd.xlane.f32.xlu1 %v943_v51 }
 0x3b9   : > { %934 = vadd.xlane.f32.xlu0 %v3419_v52 }
 0x3bb   : > { %936 = vadd.xlane.f32.xlu1 %v3421_v53 }
 0x3bd   : > { %950 = vadd.xlane.f32.xlu0 %v944_v54 }
 0x3bf   : > { %952 = vadd.xlane.f32.xlu1 %v945_v55  ;;  %v2077_v55 = vld [vmem:[%s3638_s8 + $0x5] ss:$0 sm:$0xff] }
 0x43e   : > { %v931_v9 = vpop.xlane.xlu0 %930 }
 0x43f   : > { %v938_v10 = vmul.f32 0.0078125, %v931_v9 }
 0x440   : > { %v933_v11 = vpop.xlane.xlu1 %932 }
 0x441   : > { %v939_v13 = vmul.f32 0.0078125, %v933_v11  ;;  %v958_v15 = vmul.f32 %v938_v10, %v938_v10  ;;  %v970_v45 = vsub.f32 %v3409_v46, %v938_v10 }
 0x442   : > { %v947_v14 = vpop.xlane.xlu0 %946 }
 0x443   : > { %v954_v16 = vmul.f32 0.0078125, %v947_v14  ;;  %v959_v19 = vmul.f32 %v939_v13, %v939_v13  ;;  %v971_v50 = vsub.f32 %v3411_v49, %v939_v13 }
 0x444   : > { %v949_v18 = vpop.xlane.xlu1 %948 }
 0x445   : > { %v962_v20 = vsub.f32 %v954_v16, %v958_v15  ;;  %v955_v21 = vmul.f32 0.0078125, %v949_v18 }
 0x446   : > { %v935_v22 = vpop.xlane.xlu0 %934 }
 0x447   : > { %v966_v23 = vmax.f32 %v962_v20, 0.0  ;;  %v963_v24 = vsub.f32 %v955_v21, %v959_v19  ;;  %v940_v25 = vmul.f32 0.0078125, %v935_v22 }
 0x448   : > { %v937_v26 = vpop.xlane.xlu1 %936 }
 0x449   : > { %v974_v17 = vadd.f32 1e-05, %v966_v23  ;;  %v967_v27 = vmax.f32 %v963_v24, 0.0  ;;  %v941_v28 = vmul.f32 0.0078125, %v937_v26  ;;  %v960_v30 = vmul.f32 %v940_v25, %v940_v25 }
 0x44a   : > { %v951_v12 = vpop.xlane.xlu0 %950  ;;  %v972_v46 = vsub.f32 %v3419_v52, %v940_v25 }
 0x44b   : > { %2518 = vrsqrt.f32 %v974_v17  ;;  %v975_v29 = vadd.f32 1e-05, %v967_v27  ;;  %v956_v31 = vmul.f32 0.0078125, %v951_v12  ;;  %v961_v34 = vmul.f32 %v941_v28, %v941_v28 }
 0x44c   : > { %v953_v32 = vpop.xlane.xlu1 %952  ;;  %v973_v63 = vsub.f32 %v3421_v53, %v941_v28 }
 0x44d   : > { %2520 = vrsqrt.f32 %v975_v29  ;;  %v964_v36 = vsub.f32 %v956_v31, %v960_v30  ;;  %v957_v37 = vmul.f32 0.0078125, %v953_v32  ;;  %v2480_v30 = vld [vmem:[#allocation11 + $0x10] sm:$0xff]   ;;  %v2482_v31 = vld [vmem:[#allocation11 + $0x20] sm:$0xff]   ;;  %v2483_v32 = vld [vmem:[#allocation11 + $0x28] sm:$0xff]  }
 0x44f   : > { %v968_v38 = vmax.f32 %v964_v36, 0.0  ;;  %v965_v39 = vsub.f32 %v957_v37, %v961_v34  ;;  %v1050_v34 = vlaneseq }
 0x451   : > { %v976_v42 = vadd.f32 1e-05, %v968_v38  ;;  %v969_v43 = vmax.f32 %v965_v39, 0.0  ;;  %v1051_v36 = vshrl.u32 %v1050_v34, 7  ;;  %v1030_v38 = vld [vmem:[%s3688_s20] sm:$0x3] }
 0x453   : > { %2522 = vrsqrt.f32 %v976_v42  ;;  %v977_v44 = vadd.f32 1e-05, %v969_v43  ;;  %v1052_v37 = vsub.s32 0, %v1051_v36  ;;  %v1056_v39 = vsub.s32 1, %v1051_v36 }
 0x455   : > { %v2519_v47 = vpop.eup %2518  ;;  %2524 = vrsqrt.f32 %v977_v44  ;;  %v1053_v42 = vrot.slane %v1030_v38, %v1052_v37  ;;  %v1057_v43 = vrot.slane %v1030_v38, %v1056_v39 }
 0x456   : > { %v982_v51 = vmul.f32 %v2519_v47, %v970_v45 }
 0x457   : > { %v2521_v54 = vpop.eup %2520 }
 0x458   : > { %v983_v56 = vmul.f32 %v2521_v54, %v971_v50  ;;  %v990_v57 = vmul.f32 %v2076_v48, %v982_v51 }
 0x45a   : > { %v991_v58 = vmul.f32 %v2076_v48, %v983_v56  ;;  %v998_v59 = vadd.f32 %v2077_v55, %v990_v57 }
 0x45c   : > { %v999_v60 = vadd.f32 %v2077_v55, %v991_v58  ;;  %v1006_v61 = vmin.f32 %v998_v59, 0.0  ;;  %vm1002_vm4 = vcmp.gt.f32.partialorder %v998_v59, 0.0 }
 0x45d   : > { %v2523_v62 = vpop.eup %2522 }
 0x45e   : > { %v984_v0 = vmul.f32 %v2523_v62, %v972_v46  ;;  %v1007_v1 = vmin.f32 %v999_v60, 0.0  ;;  %v1010_v49 = vmul.f32 1.442695, %v1006_v61  ;;  %vm1003_vm5 = vcmp.gt.f32.partialorder %v999_v60, 0.0 }
 0x45f   : > { %v2525_v2 = vpop.eup %2524 }
 0x460   : > { %v985_v4 = vmul.f32 %v2525_v2, %v973_v63  ;;  %2526 = vpow2.f32 %v1010_v49  ;;  %v1012_v5 = vmul.f32 1.442695, %v1007_v1  ;;  %v992_v6 = vmul.f32 %v2076_v48, %v984_v0 }
 0x462   : > { %2528 = vpow2.f32 %v1012_v5  ;;  %v993_v7 = vmul.f32 %v2076_v48, %v985_v4  ;;  %v1000_v8 = vadd.f32 %v2077_v55, %v992_v6 }
 0x464   : > { %v1001_v9 = vadd.f32 %v2077_v55, %v993_v7  ;;  %v1008_v10 = vmin.f32 %v1000_v8, 0.0  ;;  %vm1004_vm6 = vcmp.gt.f32.partialorder %v1000_v8, 0.0 }
 0x466   : > { %v1009_v11 = vmin.f32 %v1001_v9, 0.0  ;;  %v1014_v52 = vmul.f32 1.442695, %v1008_v10  ;;  %vm1005_vm7 = vcmp.gt.f32.partialorder %v1001_v9, 0.0 }
 0x468   : > { %2530 = vpow2.f32 %v1014_v52  ;;  %v1016_v13 = vmul.f32 1.442695, %v1009_v11  ;;  %v2152_v52 = vld [vmem:[%s3337_s28] sm:$0xff]  }
 0x46a   : > { %v2527_v14 = vpop.eup %2526  ;;  %2532 = vpow2.f32 %v1016_v13 }
 0x46b   : > { %v2078_v53 = vadd.f32 -1.0, %v2527_v14 }
 0x46c   : > { %v2529_v15 = vpop.eup %2528 }
 0x46d   : > { %v2079_v16 = vadd.f32 -1.0, %v2529_v15  ;;  %v1022_v18 = vsel %vm1002_vm4, %v998_v59, %v2078_v53  ;;  %v2153_v53 = vunpack.c.l.bf16 %v2152_v52 }
 0x46e   : > { %v1026_v20 = vadd.f32 %v1022_v18, %v3396_v35  ;;  %v2478_v35 = vld [vmem:[#allocation11] sm:$0xff]  }
 0x46f   : > { %v1023_v19 = vsel %vm1003_vm5, %v999_v60, %v2079_v16  ;;  %2250 = vmatprep.subr.bf16.mxu1 %v2478_v35  ;;  %v2154_v16 = vunpack.c.h.bf16 %v2152_v52 }
 0x470   : > { %v1027_v21 = vadd.f32 %v1023_v19, %v3394_v33  ;;  %2251 = vmatpush3.bf16.msra.mxu1 %v2478_v35  ;;  %v2479_v33 = vld [vmem:[#allocation11 + $0x8] sm:$0xff]  }
 0x471   : > { %2252 = vmatprep.subr.bf16.mxu1 %v2479_v33 }
 0x472   : > { %v2531_v22 = vpop.eup %2530  ;;  %v1047_v23 = vpack.c.bf16 %v1027_v21, %v1026_v20  ;;  %v2159_v21 = vld [vmem:[%s3337_s28 + $0x8] sm:$0xff]   ;;  %s2802_s28 = scalar_lea.vmem %s3544_s9, 1024 }
 0x473   : > { %v2080_v24 = vadd.f32 -1.0, %v2531_v22  ;;  %p2803_p4 = scmp.ne.s32.totalorder %s3544_s9, %s2802_s28 }
 0x474   : > { %v2533_v25 = vpop.eup %2532  ;;  %1173 = vmatmul.mubr.bf16.vlgmr.msra.gmra.mrb[4].mxu0 %v1047_v23  ;;  %2253 = vmatpush3.bf16.msra.mxu1 %v2479_v33 }
 0x475   : > { %1182 = vmatprep.mubr.bf16.mxu0 %v2934_v3  ;;  %v2081_v26 = vadd.f32 -1.0, %v2533_v25  ;;  %v1024_v17 = vsel %vm1004_vm6, %v1000_v8, %v2080_v24  ;;  %2254 = vmatprep.subr.bf16.mxu1 %v2480_v30  ;;  %v2481_v3 = vld [vmem:[#allocation11 + $0x18] sm:$0xff]   ;;  %v2157_v25 = vunpack.c.l.bf16 %v2159_v21  ;;  %p2804_p5 = pnand %p2803_p4, %p3690_p10 }
 0x476   : > { %v1028_v28 = vadd.f32 %v1024_v17, %v3402_v41  ;;  %v2485_v41 = vld [vmem:[#allocation11 + $0x38] sm:$0xff]   ;;  %v2158_v17 = vunpack.c.h.bf16 %v2159_v21 }
 0x477   : > { %v1025_v27 = vsel %vm1005_vm7, %v1001_v9, %v2081_v26  ;;  %p2805_p7 = pneg %p2804_p5 }
 0x478   : > { %v1029_v12 = vadd.f32 %v1025_v27, %v3400_v40  ;;  %2255 = vmatpush3.bf16.msra.mxu1 %v2480_v30  ;;  %v2484_v40 = vld [vmem:[#allocation11 + $0x30] sm:$0xff]  }
 0x479   : > { %2256 = vmatprep.subr.bf16.mxu1 %v2481_v3 }
 0x47a   : > { %v1048_v29 = vpack.c.bf16 %v1029_v12, %v1028_v28 }
 0x47c   : > { %1183 = vmatmul.mubr.bf16.gmra.mrb[8].mxu0 %v1048_v29  ;;  %2257 = vmatpush3.bf16.msra.mxu1 %v2481_v3  ;;  %v2098_v3 = vld [vmem:[%s3638_s8 + $0x6] ss:$0 sm:$0xff] }
 0x47d   : > { %2258 = vmatprep.subr.bf16.mxu1 %v2482_v31 }
 0x480   : > { %2259 = vmatpush3.bf16.msra.mxu1 %v2482_v31 }
 0x481   : > { %2260 = vmatprep.subr.bf16.mxu1 %v2483_v32 }
 0x484   : > { %2261 = vmatpush3.bf16.msra.mxu1 %v2483_v32 }
 0x485   : > { %2262 = vmatprep.subr.bf16.mxu1 %v2484_v40 }
 0x488   : > { %2263 = vmatpush3.bf16.msra.mxu1 %v2484_v40 }
 0x489   : > { %2264 = vmatprep.subr.bf16.mxu1 %v2485_v41 }
 0x48c   : > { %2265 = vmatpush3.bf16.msra.mxu1 %v2485_v41 }
 0x547   : > { %v1174_v44 = vpop.f32.mrb[4].mxu0 }
 0x548   : > { %v1175_v45 = vadd.f32 %v1174_v44, %v1053_v42  ;;  %v1176_v47 = vpop.f32.mrb[5].mxu0 }
 0x549   : > { %v1177_v48 = vadd.f32 %v1176_v47, %v1057_v43  ;;  %v1178_v50 = vpop.f32.mrb[6].mxu0  ;;  %v2487_v47 = vld [vmem:[#allocation13 + $0x8] sm:$0xff]  }
 0x54a   : > { %1795 = vst [vmem:[%s3449_s5] sm:$0xff] %v1175_v45  ;;  %v1179_v51 = vadd.f32 %v1178_v50, %v1053_v42  ;;  %v1180_v54 = vpop.f32.mrb[7].mxu0  ;;  %v2489_v50 = vld [vmem:[#allocation13 + $0x18] sm:$0xff]  }
 0x54b   : > { %v1193_v55 = vmax.f32 %v1177_v48, -20.0  ;;  %1796 = vst [vmem:[%s3449_s5 + $0x8] sm:$0xff] %v1177_v48  ;;  %v1181_v56 = vadd.f32 %v1180_v54, %v1057_v43  ;;  %v2488_v48 = vld [vmem:[#allocation13 + $0x10] sm:$0xff]   ;;  %v2491_v54 = vld [vmem:[#allocation13 + $0x28] sm:$0xff]  }
 0x54c   : > { %1797 = vst [vmem:[%s3449_s5 + $0x10] sm:$0xff] %v1179_v51 }
 0x54d   : > { %v1197_v57 = vmin.f32 %v1193_v55, 2.0  ;;  %v1194_v58 = vmax.f32 %v1181_v56, -20.0  ;;  %1798 = vst [vmem:[%s3449_s5 + $0x18] sm:$0xff] %v1181_v56  ;;  %v2492_v55 = vld [vmem:[#allocation13 + $0x30] sm:$0xff]   ;;  %v2493_v56 = vld [vmem:[#allocation13 + $0x38] sm:$0xff]  }
 0x54f   : > { %v1201_v59 = vmul.f32 0.5, %v1197_v57  ;;  %v1198_v46 = vmin.f32 %v1194_v58, 2.0  ;;  %v1184_v60 = vpop.f32.mrb[8].mxu0 }
 0x550   : > { %v1185_v61 = vadd.f32 %v1184_v60, %v1053_v42  ;;  %v1186_v62 = vpop.f32.mrb[9].mxu0 }
 0x551   : > { %v1205_v63 = vmul.f32 1.442695, %v1201_v59  ;;  %v1202_v0 = vmul.f32 0.5, %v1198_v46  ;;  %v1187_v1 = vadd.f32 %v1186_v62, %v1057_v43  ;;  %v1188_v49 = vpop.f32.mrb[10].mxu0 }
 0x552   : > { %1799 = vst [vmem:[%s3449_s5 + $0x20] sm:$0xff] %v1185_v61  ;;  %v1189_v2 = vadd.f32 %v1188_v49, %v1053_v42  ;;  %v1190_v4 = vpop.f32.mrb[11].mxu0 }
 0x553   : > { %2534 = vpow2.f32 %v1205_v63  ;;  %v1207_v5 = vmul.f32 1.442695, %v1202_v0  ;;  %v1195_v6 = vmax.f32 %v1187_v1, -20.0  ;;  %1800 = vst [vmem:[%s3449_s5 + $0x28] sm:$0xff] %v1187_v1  ;;  %v1191_v7 = vadd.f32 %v1190_v4, %v1057_v43 }
 0x554   : > { %1801 = vst [vmem:[%s3449_s5 + $0x30] sm:$0xff] %v1189_v2 }
 0x555   : > { %2536 = vpow2.f32 %v1207_v5  ;;  %v1199_v8 = vmin.f32 %v1195_v6, 2.0  ;;  %v1196_v9 = vmax.f32 %v1191_v7, -20.0  ;;  %1802 = vst [vmem:[%s3449_s5 + $0x38] sm:$0xff] %v1191_v7  ;;  %s2808_s5 = scalar_lea.vmem %s2807_s26, 2048 }
 0x556   : > { %p2810_p8 = scmp.lt.s32.totalorder %s2808_s5, %s2802_s28 }
 0x557   : > { %v1203_v10 = vmul.f32 0.5, %v1199_v8  ;;  %v1200_v11 = vmin.f32 %v1196_v9, 2.0 }
 0x558   : > { %p2811_p11 = por %p2810_p8, %p2809_p9 }
 0x559   : > { %v1209_v13 = vmul.f32 1.442695, %v1203_v10  ;;  %v1204_v14 = vmul.f32 0.5, %v1200_v11 }
 0x55a   : > { %p2812_p3 = pnand %p2811_p11, %p2805_p7 }
 0x55b   : > { %2538 = vpow2.f32 %v1209_v13  ;;  %v1211_v15 = vmul.f32 1.442695, %v1204_v14 }
 0x55d   : > { %v2535_v18 = vpop.eup %2534  ;;  %2540 = vpow2.f32 %v1211_v15 }
 0x55e   : > { %v1221_v19 = vmul.f32 %v2535_v18, %v2153_v53 }
 0x55f   : > { %v2537_v20 = vpop.eup %2536 }
 0x560   : > { %v1222_v22 = vmul.f32 %v2537_v20, %v2154_v16  ;;  %v1225_v23 = vadd.f32 %v1221_v19, %v1175_v45  ;;  %v2486_v45 = vld [vmem:[#allocation13] sm:$0xff]  }
 0x561   : > { %2270 = vmatprep.subr.bf16.mxu0 %v2486_v45 }
 0x562   : > { %v1226_v24 = vadd.f32 %v1222_v22, %v1179_v51  ;;  %2271 = vmatpush3.bf16.msra.mxu0 %v2486_v45  ;;  %v2490_v51 = vld [vmem:[#allocation13 + $0x20] sm:$0xff]  }
 0x563   : > { %2272 = vmatprep.subr.bf16.mxu0 %v2487_v47 }
 0x564   : > { %v1246_v26 = vpack.c.bf16 %v1226_v24, %v1225_v23 }
 0x565   : > { %v2539_v27 = vpop.eup %2538 }
 0x566   : > { %2266 = vmatprep.mubr.bf16.mxu1 %v1246_v26  ;;  %v1223_v28 = vmul.f32 %v2539_v27, %v2157_v25  ;;  %2273 = vmatpush3.bf16.msra.mxu0 %v2487_v47  ;;  %v2107_v26 = vld [vmem:[%s3638_s8 + $0x7] ss:$0 sm:$0xff] }
 0x567   : > { %v2541_v12 = vpop.eup %2540  ;;  %2274 = vmatprep.subr.bf16.mxu0 %v2488_v48 }
 0x568   : > { %v1224_v29 = vmul.f32 %v2541_v12, %v2158_v17  ;;  %v1227_v35 = vadd.f32 %v1223_v28, %v1185_v61  ;;  %v2108_v12 = vld [vmem:[%s3638_s8 + $0x8] ss:$0 sm:$0xff] }
 0x56a   : > { %v1228_v33 = vadd.f32 %v1224_v29, %v1189_v2  ;;  %2275 = vmatpush3.bf16.msra.mxu0 %v2488_v48 }
 0x56b   : > { %2276 = vmatprep.subr.bf16.mxu0 %v2489_v50 }
 0x56c   : > { %v1247_v30 = vpack.c.bf16 %v1228_v33, %v1227_v35 }
 0x56e   : > { %2267 = vmatmul.mubr.bf16.vlgmr.msra.gmra.mrb[4].mxu1 %v1247_v30  ;;  %2277 = vmatpush3.bf16.msra.mxu0 %v2489_v50 }
 0x56f   : > { %2278 = vmatprep.subr.bf16.mxu0 %v2490_v51 }
 0x572   : > { %2279 = vmatpush3.bf16.msra.mxu0 %v2490_v51 }
 0x573   : > { %2280 = vmatprep.subr.bf16.mxu0 %v2491_v54 }
 0x576   : > { %2281 = vmatpush3.bf16.msra.mxu0 %v2491_v54 }
 0x577   : > { %2282 = vmatprep.subr.bf16.mxu0 %v2492_v55 }
 0x57a   : > { %2283 = vmatpush3.bf16.msra.mxu0 %v2492_v55 }
 0x57b   : > { %2284 = vmatprep.subr.bf16.mxu0 %v2493_v56 }
 0x57e   : > { %2285 = vmatpush3.bf16.msra.mxu0 %v2493_v56 }
 0x641   : > { %v2268_v31 = vpop.f32.mrb[4].mxu1 }
 0x642   : > { %v3464_v32 = vadd.f32 %v2268_v31, %v2098_v3  ;;  %v1334_v40 = vpop.f32.mrb[5].mxu1 }
 0x643   : > { %v2269_v41 = vpop.f32.mrb[6].mxu1  ;;  %v3469_v37 = vadd.f32 %v2098_v3, %v1334_v40 }
 0x644   : > { %v3466_v34 = vadd.f32 %v2269_v41, %v2098_v3  ;;  %1355 = vadd.xlane.f32.xlu0 %v3464_v32  ;;  %v1337_v36 = vpop.f32.mrb[7].mxu1  ;;  %v1365_v43 = vmul.f32 %v3464_v32, %v3464_v32 }
 0x645   : > { %v3472_v38 = vadd.f32 %v2098_v3, %v1337_v36  ;;  %v1363_v39 = vmul.f32 %v3469_v37, %v3469_v37 }
 0x646   : > { %1357 = vadd.xlane.f32.xlu1 %v3466_v34  ;;  %v1366_v44 = vmul.f32 %v3466_v34, %v3466_v34 }
 0x647   : > { %v1364_v42 = vmul.f32 %v3472_v38, %v3472_v38 }
 0x648   : > { %1351 = vadd.xlane.f32.xlu0 %v3469_v37 }
 0x64a   : > { %1353 = vadd.xlane.f32.xlu1 %v3472_v38 }
 0x64c   : > { %1367 = vadd.xlane.f32.xlu0 %v1363_v39 }
 0x64e   : > { %1369 = vadd.xlane.f32.xlu1 %v1364_v42 }
 0x650   : > { %1371 = vadd.xlane.f32.xlu0 %v1365_v43 }
 0x652   : > { %1373 = vadd.xlane.f32.xlu1 %v1366_v44 }
 0x6d1   : > { %v1356_v57 = vpop.xlane.xlu0 %1355 }
 0x6d2   : > { %v1361_v63 = vmul.f32 0.0078125, %v1356_v57 }
 0x6d3   : > { %v1358_v58 = vpop.xlane.xlu1 %1357 }
 0x6d4   : > { %v1362_v49 = vmul.f32 0.0078125, %v1358_v58  ;;  %v1381_v8 = vmul.f32 %v1361_v63, %v1361_v63  ;;  %v1393_v29 = vsub.f32 %v3464_v32, %v1361_v63 }
 0x6d5   : > { %v1352_v59 = vpop.xlane.xlu0 %1351 }
 0x6d6   : > { %v1359_v46 = vmul.f32 0.0078125, %v1352_v59  ;;  %v1382_v52 = vmul.f32 %v1362_v49, %v1362_v49  ;;  %v1394_v3 = vsub.f32 %v3466_v34, %v1362_v49 }
 0x6d7   : > { %v1354_v60 = vpop.xlane.xlu1 %1353 }
 0x6d8   : > { %v1360_v61 = vmul.f32 0.0078125, %v1354_v60  ;;  %v1379_v0 = vmul.f32 %v1359_v46, %v1359_v46  ;;  %v1391_v24 = vsub.f32 %v3469_v37, %v1359_v46 }
 0x6d9   : > { %v1368_v62 = vpop.xlane.xlu0 %1367 }
 0x6da   : > { %v1375_v1 = vmul.f32 0.0078125, %v1368_v62  ;;  %v1380_v4 = vmul.f32 %v1360_v61, %v1360_v61  ;;  %v1392_v17 = vsub.f32 %v3472_v38, %v1360_v61 }
 0x6db   : > { %v1370_v2 = vpop.xlane.xlu1 %1369 }
 0x6dc   : > { %v1383_v5 = vsub.f32 %v1375_v1, %v1379_v0  ;;  %v1376_v6 = vmul.f32 0.0078125, %v1370_v2 }
 0x6dd   : > { %v1372_v7 = vpop.xlane.xlu0 %1371 }
 0x6de   : > { %v1387_v9 = vmax.f32 %v1383_v5, 0.0  ;;  %v1384_v10 = vsub.f32 %v1376_v6, %v1380_v4  ;;  %v1377_v11 = vmul.f32 0.0078125, %v1372_v7  ;;  %v2113_v4 = vld [vmem:[%s3638_s8 + $0x9] ss:$0 sm:$0xff] }
 0x6df   : > { %v1374_v13 = vpop.xlane.xlu1 %1373 }
 0x6e0   : > { %v1395_v14 = vadd.f32 1e-05, %v1387_v9  ;;  %v1388_v53 = vmax.f32 %v1384_v10, 0.0  ;;  %v1385_v15 = vsub.f32 %v1377_v11, %v1381_v8  ;;  %v1378_v16 = vmul.f32 0.0078125, %v1374_v13 }
 0x6e2   : > { %2542 = vrsqrt.f32 %v1395_v14  ;;  %v1396_v18 = vadd.f32 1e-05, %v1388_v53  ;;  %v1389_v19 = vmax.f32 %v1385_v15, 0.0  ;;  %v1386_v20 = vsub.f32 %v1378_v16, %v1382_v52  ;;  %v2494_v16 = vld [vmem:[#allocation14] sm:$0xff]  }
 0x6e3   : > { %2290 = vmatprep.subr.bf16.mxu1 %v2494_v16 }
 0x6e4   : > { %2544 = vrsqrt.f32 %v1396_v18  ;;  %v1397_v21 = vadd.f32 1e-05, %v1389_v19  ;;  %v1390_v22 = vmax.f32 %v1386_v20, 0.0  ;;  %2291 = vmatpush3.bf16.msra.mxu1 %v2494_v16  ;;  %v2495_v18 = vld [vmem:[#allocation14 + $0x8] sm:$0xff]   ;;  %v2496_v19 = vld [vmem:[#allocation14 + $0x10] sm:$0xff]   ;;  %v2497_v20 = vld [vmem:[#allocation14 + $0x18] sm:$0xff]  }
 0x6e5   : > { %2292 = vmatprep.subr.bf16.mxu1 %v2495_v18 }
 0x6e6   : > { %2546 = vrsqrt.f32 %v1397_v21  ;;  %v1398_v23 = vadd.f32 1e-05, %v1390_v22  ;;  %v2498_v21 = vld [vmem:[#allocation14 + $0x20] sm:$0xff]   ;;  %v2499_v22 = vld [vmem:[#allocation14 + $0x28] sm:$0xff]  }
 0x6e8   : > { %2548 = vrsqrt.f32 %v1398_v23  ;;  %2293 = vmatpush3.bf16.msra.mxu1 %v2495_v18  ;;  %v2500_v23 = vld [vmem:[#allocation14 + $0x30] sm:$0xff]  }
 0x6e9   : > { %2294 = vmatprep.subr.bf16.mxu1 %v2496_v19 }
 0x6ec   : > { %v2543_v25 = vpop.eup %2542  ;;  %2295 = vmatpush3.bf16.msra.mxu1 %v2496_v19 }
 0x6ed   : > { %v1403_v27 = vmul.f32 %v2543_v25, %v1391_v24  ;;  %2296 = vmatprep.subr.bf16.mxu1 %v2497_v20  ;;  %v2501_v24 = vld [vmem:[#allocation14 + $0x38] sm:$0xff]  }
 0x6ee   : > { %v2545_v28 = vpop.eup %2544 }
 0x6ef   : > { %v1404_v35 = vmul.f32 %v2545_v28, %v1392_v17  ;;  %v1411_v33 = vmul.f32 %v2107_v26, %v1403_v27 }
 0x6f0   : > { %v2547_v30 = vpop.eup %2546  ;;  %2297 = vmatpush3.bf16.msra.mxu1 %v2497_v20 }
 0x6f1   : > { %v1405_v31 = vmul.f32 %v2547_v30, %v1393_v29  ;;  %v1412_v40 = vmul.f32 %v2107_v26, %v1404_v35  ;;  %v1419_v41 = vadd.f32 %v2108_v12, %v1411_v33  ;;  %2298 = vmatprep.subr.bf16.mxu1 %v2498_v21 }
 0x6f2   : > { %v2549_v36 = vpop.eup %2548 }
 0x6f3   : > { %v1406_v37 = vmul.f32 %v2549_v36, %v1394_v3  ;;  %v1420_v39 = vadd.f32 %v2108_v12, %v1412_v40  ;;  %v1427_v38 = vmin.f32 %v1419_v41, 0.0  ;;  %v1413_v42 = vmul.f32 %v2107_v26, %v1405_v31 }
 0x6f4   : > { %vm1423_vm8 = vcmp.gt.f32.partialorder %v1419_v41, 0.0  ;;  %2299 = vmatpush3.bf16.msra.mxu1 %v2498_v21 }
 0x6f5   : > { %v1428_v43 = vmin.f32 %v1420_v39, 0.0  ;;  %v1431_v44 = vmul.f32 1.442695, %v1427_v38  ;;  %v1414_v45 = vmul.f32 %v2107_v26, %v1406_v37  ;;  %v1421_v47 = vadd.f32 %v2108_v12, %v1413_v42  ;;  %2300 = vmatprep.subr.bf16.mxu1 %v2499_v22 }
 0x6f6   : > { %vm1424_vm9 = vcmp.gt.f32.partialorder %v1420_v39, 0.0 }
 0x6f7   : > { %2550 = vpow2.f32 %v1431_v44  ;;  %v1433_v48 = vmul.f32 1.442695, %v1428_v43  ;;  %v1422_v32 = vadd.f32 %v2108_v12, %v1414_v45  ;;  %v1429_v50 = vmin.f32 %v1421_v47, 0.0 }
 0x6f8   : > { %vm1425_vm10 = vcmp.gt.f32.partialorder %v1421_v47, 0.0  ;;  %2301 = vmatpush3.bf16.msra.mxu1 %v2499_v22 }
 0x6f9   : > { %2552 = vpow2.f32 %v1433_v48  ;;  %v1430_v51 = vmin.f32 %v1422_v32, 0.0  ;;  %v1435_v54 = vmul.f32 1.442695, %v1429_v50  ;;  %vm1426_vm11 = vcmp.gt.f32.partialorder %v1422_v32, 0.0  ;;  %2302 = vmatprep.subr.bf16.mxu1 %v2500_v23 }
 0x6fb   : > { %v1437_v34 = vmul.f32 1.442695, %v1430_v51  ;;  %2554 = vpow2.f32 %v1435_v54 }
 0x6fc   : > { %2303 = vmatpush3.bf16.msra.mxu1 %v2500_v23 }
 0x6fd   : > { %2556 = vpow2.f32 %v1437_v34  ;;  %2304 = vmatprep.subr.bf16.mxu1 %v2501_v24 }
 0x700   : > { %2305 = vmatpush3.bf16.msra.mxu1 %v2501_v24 }
 0x701   : > { %v2551_v55 = vpop.eup %2550 }
 0x702   : > { %v2109_v56 = vadd.f32 -1.0, %v2551_v55 }
 0x703   : > { %v2553_v57 = vpop.eup %2552 }
 0x704   : > { %v2110_v58 = vadd.f32 -1.0, %v2553_v57  ;;  %v3494_v46 = vsel %vm1423_vm8, %v1419_v41, %v2109_v56 }
 0x705   : > { %v2555_v59 = vpop.eup %2554 }
 0x706   : > { %v3496_v60 = vsel %vm1424_vm9, %v1420_v39, %v2110_v58  ;;  %v2111_v63 = vadd.f32 -1.0, %v2555_v59 }
 0x707   : > { %v2557_v61 = vpop.eup %2556  ;;  %v1464_v62 = vpack.c.bf16 %v3496_v60, %v3494_v46 }
 0x708   : > { %v2112_v0 = vadd.f32 -1.0, %v2557_v61  ;;  %v3500_v1 = vsel %vm1425_vm10, %v1421_v47, %v2111_v63  ;;  %v2122_v61 = vld [vmem:[%s3638_s8 + $0xa] ss:$0 sm:$0xff] }
 0x709   : > { %2286 = vmatprep.mubr.bf16.mxu0 %v1464_v62 }
 0x70a   : > { %v3502_v49 = vsel %vm1426_vm11, %v1422_v32, %v2112_v0 }
 0x70b   : > { %v1465_v2 = vpack.c.bf16 %v3502_v49, %v3500_v1 }
 0x70d   : > { %2287 = vmatmul.mubr.bf16.vlgmr.msra.gmra.mrb[12].mxu0 %v1465_v2  ;;  %v2123_v2 = vld [vmem:[%s3638_s8 + $0xb] ss:$0 sm:$0xff] }
 0x7e0   : > { %v2288_v5 = vpop.f32.mrb[12].mxu0 }
 0x7e1   : > { %v3509_v6 = vadd.f32 %v2288_v5, %v2113_v4  ;;  %v1552_v7 = vpop.f32.mrb[13].mxu0 }
 0x7e2   : > { %v2289_v8 = vpop.f32.mrb[14].mxu0  ;;  %v3514_v11 = vadd.f32 %v2113_v4, %v1552_v7 }
 0x7e3   : > { %v3511_v9 = vadd.f32 %v2289_v8, %v2113_v4  ;;  %1573 = vadd.xlane.f32.xlu0 %v3509_v6  ;;  %v1555_v10 = vpop.f32.mrb[15].mxu0  ;;  %v1583_v53 = vmul.f32 %v3509_v6, %v3509_v6 }
 0x7e4   : > { %v3517_v52 = vadd.f32 %v2113_v4, %v1555_v10  ;;  %v1581_v13 = vmul.f32 %v3514_v11, %v3514_v11 }
 0x7e5   : > { %1575 = vadd.xlane.f32.xlu1 %v3511_v9  ;;  %v1584_v15 = vmul.f32 %v3511_v9, %v3511_v9 }
 0x7e6   : > { %v1582_v14 = vmul.f32 %v3517_v52, %v3517_v52 }
 0x7e7   : > { %1569 = vadd.xlane.f32.xlu0 %v3514_v11 }
 0x7e9   : > { %1571 = vadd.xlane.f32.xlu1 %v3517_v52 }
 0x7eb   : > { %1585 = vadd.xlane.f32.xlu0 %v1581_v13 }
 0x7ed   : > { %1587 = vadd.xlane.f32.xlu1 %v1582_v14 }
 0x7ef   : > { %1589 = vadd.xlane.f32.xlu0 %v1583_v53 }
 0x7f1   : > { %1591 = vadd.xlane.f32.xlu1 %v1584_v15 }
 0x870   : > { %v1574_v25 = vpop.xlane.xlu0 %1573 }
 0x871   : > { %v1579_v35 = vmul.f32 0.0078125, %v1574_v25 }
 0x872   : > { %v1576_v26 = vpop.xlane.xlu1 %1575 }
 0x873   : > { %v1580_v3 = vmul.f32 0.0078125, %v1576_v26  ;;  %v1599_v39 = vmul.f32 %v1579_v35, %v1579_v35  ;;  %v1611_v4 = vsub.f32 %v3509_v6, %v1579_v35 }
 0x874   : > { %v1570_v17 = vpop.xlane.xlu0 %1569 }
 0x875   : > { %v1577_v27 = vmul.f32 0.0078125, %v1570_v17  ;;  %v1600_v44 = vmul.f32 %v1580_v3, %v1580_v3  ;;  %v1612_v10 = vsub.f32 %v3511_v9, %v1580_v3 }
 0x876   : > { %v1572_v28 = vpop.xlane.xlu1 %1571 }
 0x877   : > { %v1578_v12 = vmul.f32 0.0078125, %v1572_v28  ;;  %v1597_v33 = vmul.f32 %v1577_v27, %v1577_v27  ;;  %v1609_v58 = vsub.f32 %v3514_v11, %v1577_v27 }
 0x878   : > { %v1586_v29 = vpop.xlane.xlu0 %1585 }
 0x879   : > { %v1593_v30 = vmul.f32 0.0078125, %v1586_v29  ;;  %v1598_v40 = vmul.f32 %v1578_v12, %v1578_v12  ;;  %v1610_v62 = vsub.f32 %v3517_v52, %v1578_v12 }
 0x87a   : > { %v1588_v31 = vpop.xlane.xlu1 %1587 }
 0x87b   : > { %v1601_v41 = vsub.f32 %v1593_v30, %v1597_v33  ;;  %v1594_v36 = vmul.f32 0.0078125, %v1588_v31 }
 0x87c   : > { %v1590_v37 = vpop.xlane.xlu0 %1589 }
 0x87d   : > { %v1605_v38 = vmax.f32 %v1601_v41, 0.0  ;;  %v1602_v42 = vsub.f32 %v1594_v36, %v1598_v40  ;;  %v1595_v43 = vmul.f32 0.0078125, %v1590_v37 }
 0x87e   : > { %v1592_v45 = vpop.xlane.xlu1 %1591 }
 0x87f   : > { %v1613_v47 = vadd.f32 1e-05, %v1605_v38  ;;  %v1606_v48 = vmax.f32 %v1602_v42, 0.0  ;;  %v1603_v32 = vsub.f32 %v1595_v43, %v1599_v39  ;;  %v1596_v50 = vmul.f32 0.0078125, %v1592_v45 }
 0x881   : > { %2558 = vrsqrt.f32 %v1613_v47  ;;  %v1614_v51 = vadd.f32 1e-05, %v1606_v48  ;;  %v1607_v54 = vmax.f32 %v1603_v32, 0.0  ;;  %v1604_v34 = vsub.f32 %v1596_v50, %v1600_v44 }
 0x883   : > { %2560 = vrsqrt.f32 %v1614_v51  ;;  %v1615_v55 = vadd.f32 1e-05, %v1607_v54  ;;  %v1608_v56 = vmax.f32 %v1604_v34, 0.0 }
 0x885   : > { %2562 = vrsqrt.f32 %v1615_v55  ;;  %v1616_v57 = vadd.f32 1e-05, %v1608_v56 }
 0x887   : > { %2564 = vrsqrt.f32 %v1616_v57 }
 0x88b   : > { %v2559_v59 = vpop.eup %2558 }
 0x88c   : > { %v1621_v63 = vmul.f32 %v2559_v59, %v1609_v58 }
 0x88d   : > { %v2561_v0 = vpop.eup %2560 }
 0x88e   : > { %v1622_v5 = vmul.f32 %v2561_v0, %v1610_v62  ;;  %v1629_v7 = vmul.f32 %v2122_v61, %v1621_v63 }
 0x88f   : > { %v2563_v8 = vpop.eup %2562 }
 0x890   : > { %v1623_v11 = vmul.f32 %v2563_v8, %v1611_v4  ;;  %v1630_v13 = vmul.f32 %v2122_v61, %v1622_v5  ;;  %v1637_v14 = vadd.f32 %v2123_v2, %v1629_v7 }
 0x891   : > { %v2565_v53 = vpop.eup %2564 }
 0x892   : > { %v1631_v15 = vmul.f32 %v2122_v61, %v1623_v11  ;;  %v1624_v16 = vmul.f32 %v2565_v53, %v1612_v10  ;;  %v1638_v52 = vadd.f32 %v2123_v2, %v1630_v13  ;;  %v1645_v18 = vmin.f32 %v1637_v14, 0.0 }
 0x893   : > { %vm1641_vm12 = vcmp.gt.f32.partialorder %v1637_v14, 0.0 }
 0x894   : > { %v1632_v19 = vmul.f32 %v2122_v61, %v1624_v16  ;;  %v1646_v20 = vmin.f32 %v1638_v52, 0.0  ;;  %v1639_v21 = vadd.f32 %v2123_v2, %v1631_v15  ;;  %v1649_v22 = vmul.f32 1.442695, %v1645_v18 }
 0x895   : > { %vm1642_vm13 = vcmp.gt.f32.partialorder %v1638_v52, 0.0 }
 0x896   : > { %v1651_v23 = vmul.f32 1.442695, %v1646_v20  ;;  %v1640_v24 = vadd.f32 %v2123_v2, %v1632_v19  ;;  %v1647_v6 = vmin.f32 %v1639_v21, 0.0  ;;  %2566 = vpow2.f32 %v1649_v22 }
 0x897   : > { %vm1643_vm14 = vcmp.gt.f32.partialorder %v1639_v21, 0.0 }
 0x898   : > { %2568 = vpow2.f32 %v1651_v23  ;;  %v1648_v25 = vmin.f32 %v1640_v24, 0.0  ;;  %v1653_v26 = vmul.f32 1.442695, %v1647_v6  ;;  %vm1644_vm15 = vcmp.gt.f32.partialorder %v1640_v24, 0.0 }
 0x89a   : > { %2570 = vpow2.f32 %v1653_v26  ;;  %v1655_v9 = vmul.f32 1.442695, %v1648_v25 }
 0x89c   : > { %2572 = vpow2.f32 %v1655_v9 }
 0x8a0   : > { %v2567_v17 = vpop.eup %2566 }
 0x8a1   : > { %v2124_v28 = vadd.f32 -1.0, %v2567_v17 }
 0x8a2   : > { %v2569_v27 = vpop.eup %2568 }
 0x8a3   : > { %v2125_v12 = vadd.f32 -1.0, %v2569_v27  ;;  %v1661_v35 = vsel %vm1641_vm12, %v1637_v14, %v2124_v28 }
 0x8a4   : > { %v2571_v29 = vpop.eup %2570  ;;  %v1665_v31 = vadd.f32 %v1661_v35, %v3494_v46 }
 0x8a5   : > { %v1662_v33 = vsel %vm1642_vm13, %v1638_v52, %v2125_v12  ;;  %v2126_v30 = vadd.f32 -1.0, %v2571_v29 }
 0x8a6   : > { %v2573_v3 = vpop.eup %2572  ;;  %v1666_v40 = vadd.f32 %v1662_v33, %v3496_v60 }
 0x8a7   : > { %v2127_v41 = vadd.f32 -1.0, %v2573_v3  ;;  %v1663_v36 = vsel %vm1643_vm14, %v1639_v21, %v2126_v30 }
 0x8a8   : > { %v1686_v37 = vpack.c.bf16 %v1666_v40, %v1665_v31  ;;  %v1667_v38 = vadd.f32 %v1663_v36, %v3500_v1 }
 0x8a9   : > { %v1664_v39 = vsel %vm1644_vm15, %v1640_v24, %v2127_v41 }
 0x8aa   : > { %2306 = vmatprep.mubr.bf16.mxu1 %v1686_v37  ;;  %v1668_v42 = vadd.f32 %v1664_v39, %v3502_v49 }
 0x8ac   : > { %v1687_v43 = vpack.c.bf16 %v1668_v42, %v1667_v38 }
 0x8ae   : > { %2307 = vmatmul.mubr.bf16.vlgmr.msra.gmra.mrb[8].mxu1 %v1687_v43 }
 0x8af   : > { %2815 = shalt.err (!%p2812_p3)
}
 0x8b0   : > { %s2816_s16 = scalar_lea.hbm %s3550_s17, 1024  ;;  %s2820_s11 = scalar_lea.hbm %s3689_s2, 2048 }
 0x8b1   : > { %p2817_p12 = scmp.ne.s32.totalorder %s3550_s17, %s2816_s16  ;;  %p2821_p0 = scmp.lt.u32.totalorder %s3550_s17, %s3689_s2 }
 0x8b2   : > { %p2822_p6 = scmp.lt.u32.totalorder %s2820_s11, %s2816_s16  ;;  %p2824_p4 = scmp.lt.u32.totalorder %s2816_s16, %s3550_s17 }
 0x8b3   : > { %p2818_p1 = pnand %p2817_p12, %p3690_p10 }
 0x8b4   : > { %p2823_p2 = por %p2822_p6, %p2821_p0 }
 0x8b5   : > { %p2819_p13 = pneg %p2818_p1 }
 0x8b6   : > { %p2825_p5 = por %p2824_p4, %p2823_p2 }
 0x8b8   : > { %p2826_p7 = pnand %p2825_p5, %p2819_p13 }
 0x8ba   : > { %2829 = shalt.err (!%p2826_p7)
}
 0x8bb   : > { %s2936_s19 = smov 256   ;;  %s2937_s3 = smov 16  }
 0x8bc   : > { %2339 = dma.vmem_to_hbm [thread:$0]  (%p3690_p10), %s3544_s9, 1024, %s3550_s17, %s1809_s18, %s2936_s19, %s2936_s19, %s2937_s3  }
 0x8bd   : > { %s2048_s4 = sshll.u32 %s3326_s13, 5  ;;  %s3691_s14 = sld [smem:[#allocation34_spill]] }
 0x8be   : > { %s562_s26 = scalar_lea.vmem [#allocation16], %s2048_s4  ;;  %s2148_s16 = sshll.u32 %s3027_s27, 9 }
 0x8bf   : > { %s1822_s5 = sshll.u32 %s562_s26, 4  ;;  %s3692_s18 = sld [smem:[#allocation35_spill]]  ;;  %s3581_s5 = int_to_ptr.vmem [resolvable:$true] %s1822_s5 }
 0x8c0   : > { %s1804_s27 = scalar_lea.sflag [#allocation4], %s3326_s13  ;;  %s2830_s7 = scalar_lea.vmem %s3581_s5, 512 }
 0x8c1   : > { %p2831_p9 = scmp.ne.s32.totalorder %s3581_s5, %s2830_s7  ;;  %s2938_s11 = smov [#allocation16]  }
 0x8c2   : > { %s2834_s6 = sshll.u32 %s2938_s11, 4  ;;  %s2835_s6 = int_to_ptr.vmem [resolvable:$false] %s2834_s6 }
 0x8c3   : > { %v2128_v46 = vld [vmem:[%s3691_s14] ss:$0 sm:$0xff]  ;;  %p2832_p8 = pnand %p2831_p9, %p3690_p10  ;;  %s2836_s12 = scalar_lea.vmem %s2835_s6, 1024 }
 0x8c4   : > { %p2837_p3 = scmp.lt.s32.totalorder %s3581_s5, %s2835_s6  ;;  %p2838_p12 = scmp.lt.s32.totalorder %s2836_s12, %s2830_s7 }
 0x8c5   : > { %s3586_s30 = scalar_lea.hbm %s3692_s18, %s2148_s16  ;;  %p2833_p11 = pneg %p2832_p8 }
 0x8c6   : > { %p2839_p1 = por %p2838_p12, %p2837_p3 }
 0x8c8   : > { %p2840_p13 = pnand %p2839_p1, %p2833_p11 }
 0x981   : > { %v2308_v60 = vpop.f32.mrb[8].mxu1 }
 0x982   : > { %v1785_v1 = vadd.f32 %v2308_v60, %v2128_v46  ;;  %v1776_v49 = vpop.f32.mrb[9].mxu1 }
 0x983   : > { %v1777_v44 = vadd.f32 %v2128_v46, %v1776_v49  ;;  %v2309_v45 = vpop.f32.mrb[10].mxu1 }
 0x984   : > { %1793 = vst [vmem:[%s562_s26 + $0x10] sm:$0xff] %v1785_v1  ;;  %v1788_v47 = vadd.f32 %v2309_v45, %v2128_v46  ;;  %v1779_v48 = vpop.f32.mrb[11].mxu1 }
 0x985   : > { %1791 = vst [vmem:[%s562_s26] sm:$0xff] %v1777_v44  ;;  %v1780_v32 = vadd.f32 %v2128_v46, %v1779_v48 }
 0x986   : > { %1794 = vst [vmem:[%s562_s26 + $0x18] sm:$0xff] %v1788_v47 }
 0x987   : > { %1792 = vst [vmem:[%s562_s26 + $0x8] sm:$0xff] %v1780_v32 }
 0x988   : > { %2843 = shalt.err (!%p2840_p13)
}
 0x989   : > { %s2844_s19 = scalar_lea.hbm %s3586_s30, 512  ;;  %s2848_s20 = scalar_lea.hbm %s3692_s18, 1024 }
 0x98a   : > { %p2845_p0 = scmp.ne.s32.totalorder %s3586_s30, %s2844_s19  ;;  %p2849_p4 = scmp.lt.u32.totalorder %s3586_s30, %s3692_s18 }
 0x98b   : > { %p2850_p5 = scmp.lt.u32.totalorder %s2848_s20, %s2844_s19  ;;  %p2852_p9 = scmp.lt.u32.totalorder %s2844_s19, %s3586_s30 }
 0x98c   : > { %p2846_p6 = pnand %p2845_p0, %p3690_p10 }
 0x98d   : > { %p2851_p7 = por %p2850_p5, %p2849_p4 }
 0x98e   : > { %p2847_p2 = pneg %p2846_p6 }
 0x98f   : > { %p2853_p8 = por %p2852_p9, %p2851_p7 }
 0x991   : > { %p2854_p11 = pnand %p2853_p8, %p2847_p2 }
 0x993   : > { %2857 = shalt.err (!%p2854_p11)
}
 0x994   : > { %s2939_s26 = smov 128   ;;  %s2940_s16 = smov 8  }
 0x995   : > { %2338 = dma.vmem_to_hbm [thread:$0]  (%p3690_p10), %s3581_s5, 512, %s3586_s30, %s1804_s27, %s2939_s26, %s2939_s26, %s2940_s16  }
 0x996 PF: > { %s1854_s9 = sand.u32 1, %s2908_s21   ;;  %p3693_p3 = scmp.ne.s32.totalorder %s3677_s10, 0 }
 0x997   : > { %p3694_p12 = scmp.ge.s32.totalorder %s2920_s24, 2  ;;  %s1855_s17 = scalar_lea.sflag [#allocation4], %s1854_s9 }
 0x999   : > { %p2369_p1 = pnand %p3694_p12, %p3693_p3 }
 0x99b   : > { %2899 = dma.done.wait (!%p2369_p1), %s1855_s17, 512  }
 0x99c   : > { %2901 = vsyncadd (!%p2369_p1), %s1855_s17, 4294966784  ;;  %s1864_s7 = scalar_lea.sflag [#allocation18], %s1854_s9 }
 0x99d   : > { %2903 = dma.done.wait (!%p2369_p1), %s1864_s7, 1024  }
 0x99e   : > { %2905 = vsyncadd (!%p2369_p1), %s1864_s7, 4294966272  ;;  %p35_p10 = scmp.ge.s32.totalorder %s3204_s25, 4   ;;  %s3695_s21 = smov %s2912_s22 }
 0x99f   : > { %s3696_s22 = smov %s2916_s23  ;;  %s3697_s23 = smov %s3215_s29 }
 0x9a0   : > { %s3698_s24 = smov %s3204_s25  ;;  %37 = sbr.rel (!%p35_p10) target bundleno = 23 (0x17), region = 163 }
 0x9a7   :  { %1869 = vsyncpa [#allocation3], 1 }
 0x9a8   :  { %1871 = vsyncpa [#allocation3 + $0x1], 1 }
 0x9a9   :  { %1872 = vsyncpa [#allocation6], 1 }
 0x9aa   :  { %1874 = vsyncpa [#allocation6 + $0x1], 1 }
 0x9ab   :  { %1875 = vsyncpa [#allocation9], 1 }
 0x9ac   :  { %1876 = vsyncpa [#allocation12], 1 }
 0x9ad   :  { %1877 = vsyncpa [#allocation15], 1 }
 0x9ae   :  { %1878 = vsyncpa [#allocation4], 1 }
 0x9af   :  { %1880 = vsyncpa [#allocation4 + $0x1], 1 }
 0x9b0   :  { %1881 = vsyncpa [#allocation18], 1 }
 0x9b1   :  { %1883 = vsyncpa [#allocation18 + $0x1], 1 }

</bundles_post_ra>
